<compile_context>
chip_gen: v7x
topology: tpu7x:2x2x1
jax: 0.10.0
libtpu: 0.0.40
codegen_flags: <defaults>
</compile_context>

<pallas_src>
import functools

import jax
import jax.numpy as jnp
from jax.experimental import pallas as pl
from jax.experimental.pallas import tpu as pltpu


def _double_conv_kernel(xb_ref, xt_ref, xq_ref, w1_ref, b1_ref, w2_ref, b2_ref,
                        o_ref, xpad_s, p1_s, hpad_s, p2_s, *, TH, W, Cin, Cp, K):
    """One (batch, row-tile) grid step of the fused DoubleConv.

    xb_ref : (1, TH, W, Cin)  body rows [r0, r0+TH)                (MXU dtype)
    xt_ref : (1, 2,  W, Cin)  rows [r0-2, r0)     (clamped copy at i==0, masked)
    xq_ref : (1, 2,  W, Cin)  rows [r0+TH, r0+TH+2) (clamped at last, masked)
    w1_ref : (K*K*Cin, Cp)    conv1 weights with BN1 scale folded in
    b1_ref : (1, Cp)          folded BN1 bias (f32)
    w2_ref : (K*K*Cp, Cp)     conv2 weights with BN2 scale folded in
    b2_ref : (1, Cp)          folded BN2 bias (f32)
    o_ref  : (1, TH, W, Cp)   output rows [r0, r0+TH), lane-dense channels
    scratch (f32 VMEM):
      xpad_s : (TH+4, W+2, Cin)    zero-padded input window
      p1_s   : (TH+2, W, K*K*Cin)  im2col patches for conv1
      hpad_s : (TH+2, W+2, Cp)     zero-padded stage-1 activations
      p2_s   : (TH,   W, K*K*Cp)   im2col patches for conv2
    """
    i = pl.program_id(1)
    n_rows = pl.num_programs(1)
    R1 = TH + 2
    f32 = jnp.float32
    mxu_dtype = w1_ref.dtype

    # ---- assemble the zero-padded input window (halo handled in-kernel) ----
    xpad_s[:, 0:1, :] = jnp.zeros((TH + 4, 1, Cin), f32)            # conv1 left pad
    xpad_s[:, W + 1:W + 2, :] = jnp.zeros((TH + 4, 1, Cin), f32)    # conv1 right pad
    xpad_s[2:TH + 2, 1:W + 1, :] = xb_ref[0].astype(f32)

    @pl.when(i > 0)
    def _():
        xpad_s[0:2, 1:W + 1, :] = xt_ref[0].astype(f32)

    @pl.when(i == 0)                                # image-top zero padding
    def _():
        xpad_s[0:2, 1:W + 1, :] = jnp.zeros((2, W, Cin), f32)

    @pl.when(i < n_rows - 1)
    def _():
        xpad_s[TH + 2:TH + 4, 1:W + 1, :] = xq_ref[0].astype(f32)

    @pl.when(i == n_rows - 1)                       # image-bottom zero padding
    def _():
        xpad_s[TH + 2:TH + 4, 1:W + 1, :] = jnp.zeros((2, W, Cin), f32)

    # ---- stage 1: im2col -> single MXU matmul -> folded BN -> ReLU ----
    for kh in range(K):
        for kw in range(K):
            t = kh * K + kw
            p1_s[:, :, t * Cin:(t + 1) * Cin] = xpad_s[kh:kh + R1, kw:kw + W, :]

    lhs1 = p1_s[...].reshape(R1 * W, K * K * Cin).astype(mxu_dtype)
    h = jnp.dot(lhs1, w1_ref[...], preferred_element_type=f32)
    h = jnp.maximum(h + b1_ref[0], 0.0).reshape(R1, W, Cp)

    # stage-1 activations surrounded by conv2's zero padding
    hpad_s[:, 1:W + 1, :] = h
    hpad_s[:, 0:1, :] = jnp.zeros((R1, 1, Cp), f32)
    hpad_s[:, W + 1:W + 2, :] = jnp.zeros((R1, 1, Cp), f32)

    @pl.when(i == 0)          # h row r0-1 is conv2 zero padding at the image top
    def _():
        hpad_s[0:1, :, :] = jnp.zeros((1, W + 2, Cp), f32)

    @pl.when(i == n_rows - 1)  # h row r0+TH is conv2 zero padding at the bottom
    def _():
        hpad_s[R1 - 1:R1, :, :] = jnp.zeros((1, W + 2, Cp), f32)

    # ---- stage 2: im2col -> single MXU matmul -> folded BN -> ReLU ----
    for kh in range(K):
        for kw in range(K):
            t = kh * K + kw
            p2_s[:, :, t * Cp:(t + 1) * Cp] = hpad_s[kh:kh + TH, kw:kw + W, :]

    lhs2 = p2_s[...].reshape(TH * W, K * K * Cp).astype(mxu_dtype)
    y = jnp.dot(lhs2, w2_ref[...], preferred_element_type=f32)
    y = jnp.maximum(y + b2_ref[0], 0.0)

    # Dropout(p) is identity in eval mode.
    o_ref[0] = y.reshape(TH, W, Cp).astype(o_ref.dtype)


def _fold_bn(gamma, beta, mean, var, eps):
    scale = gamma.astype(jnp.float32) / jnp.sqrt(var.astype(jnp.float32) + eps)
    bias = beta.astype(jnp.float32) - mean.astype(jnp.float32) * scale
    return scale, bias


def double_conv(x_nchw, params, *, row_tile=8, use_bf16=True, eps=1e-5):
    """Fused DoubleConv forward (eval mode). Input/output are NCHW float32."""
    N, Cin, H, W = x_nchw.shape
    K = params["w1"].shape[0]
    Cout = params["w1"].shape[-1]
    assert params["w1"].shape == (K, K, Cin, Cout)
    assert params["w2"].shape == (K, K, Cout, Cout)
    assert K == 3, "kernel is specialized for filtersize=3, stride=1, dilation=1"

    TH = min(row_tile, H)
    assert H % TH == 0 and TH % 2 == 0, (H, TH)
    assert W % 8 == 0, W        # keeps in-kernel reshapes layout-preserving
    R1 = TH + 2

    LANE = 128
    Cp = ((Cout + LANE - 1) // LANE) * LANE          # lane-dense channel padding
    cdt = jnp.bfloat16 if use_bf16 else jnp.float32  # MXU / activation HBM dtype

    # NCHW -> NHWC once, in the MXU dtype (halves activation HBM traffic).
    # TODO(synk): callers that can produce/consume NHWC directly should skip
    #             these transposes (full extra HBM passes done by XLA).
    x = jnp.transpose(x_nchw, (0, 2, 3, 1)).astype(cdt)

    # Fold inference-mode BatchNorm into conv weights (scale) + bias.
    s1, b1 = _fold_bn(params["bn1_gamma"], params["bn1_beta"],
                      params["bn1_mean"], params["bn1_var"], eps)
    s2, b2 = _fold_bn(params["bn2_gamma"], params["bn2_beta"],
                      params["bn2_mean"], params["bn2_var"], eps)
    w1f = (params["w1"].astype(jnp.float32) * s1).astype(cdt)
    w2f = (params["w2"].astype(jnp.float32) * s2).astype(cdt)

    # Zero-pad channels to the lane boundary (padded channels stay exactly 0
    # through both stages) and flatten taps for the im2col matmuls.
    w1p = jnp.zeros((K, K, Cin, Cp), cdt).at[..., :Cout].set(w1f)
    w1p = w1p.reshape(K * K * Cin, Cp)
    w2p = jnp.zeros((K, K, Cp, Cp), cdt).at[:, :, :Cout, :Cout].set(w2f)
    w2p = w2p.reshape(K * K * Cp, Cp)
    b1p = jnp.zeros((1, Cp), jnp.float32).at[0, :Cout].set(b1)
    b2p = jnp.zeros((1, Cp), jnp.float32).at[0, :Cout].set(b2)

    HB = TH // 2                 # halo blocks are 2 rows tall
    grid = (N, H // TH)

    kernel = functools.partial(_double_conv_kernel,
                               TH=TH, W=W, Cin=Cin, Cp=Cp, K=K)
    out = pl.pallas_call(
        kernel,
        out_shape=jax.ShapeDtypeStruct((N, H, W, Cp), jnp.float32),
        grid_spec=pltpu.PrefetchScalarGridSpec(
            num_scalar_prefetch=0,
            grid=grid,
            in_specs=[
                # body rows [i*TH, (i+1)*TH)
                pl.BlockSpec((1, TH, W, Cin), lambda n, i: (n, i, 0, 0)),
                # top halo rows [i*TH-2, i*TH): clamped at the top, masked in-kernel
                pl.BlockSpec((1, 2, W, Cin),
                             lambda n, i: (n, jnp.maximum(i * HB - 1, 0), 0, 0)),
                # bottom halo rows [(i+1)*TH, (i+1)*TH+2): clamped, masked in-kernel
                pl.BlockSpec((1, 2, W, Cin),
                             lambda n, i: (n, jnp.minimum((i + 1) * HB, H // 2 - 1),
                                           0, 0)),
                # weights / folded-BN biases: constant blocks, fetched once.
                # TODO(synk): pipeline_mode=pl.Buffered(1) would drop their 2nd buffer.
                pl.BlockSpec((K * K * Cin, Cp), lambda n, i: (0, 0)),
                pl.BlockSpec((1, Cp), lambda n, i: (0, 0)),
                pl.BlockSpec((K * K * Cp, Cp), lambda n, i: (0, 0)),
                pl.BlockSpec((1, Cp), lambda n, i: (0, 0)),
            ],
            out_specs=pl.BlockSpec((1, TH, W, Cp), lambda n, i: (n, i, 0, 0)),
            scratch_shapes=[
                pltpu.VMEM((TH + 4, W + 2, Cin), jnp.float32),
                pltpu.VMEM((R1, W, K * K * Cin), jnp.float32),
                pltpu.VMEM((R1, W + 2, Cp), jnp.float32),
                pltpu.VMEM((TH, W, K * K * Cp), jnp.float32),
            ]),
        compiler_params=pltpu.CompilerParams(
            dimension_semantics=("parallel", "parallel"),
            vmem_limit_bytes=48 * 1024 * 1024),
    )(x, x, x, w1p, b1p, w2p, b2p)

    # Dropout(p) is identity in eval mode. Drop channel padding, back to NCHW.
    return jnp.transpose(out[..., :Cout], (0, 3, 1, 2))


# ------------------------- references for self-check -------------------------

def _conv3x3(x_nhwc, w_hwio):
    return jax.lax.conv_general_dilated(
        x_nhwc, w_hwio, window_strides=(1, 1), padding=((1, 1), (1, 1)),
        dimension_numbers=("NHWC", "HWIO", "NHWC"),
        preferred_element_type=jnp.float32)


def _reference_exact(x_nchw, params, eps=1e-5):
    """Pure-f32 eval-mode DoubleConv (true module semantics) via lax.conv."""
    x = jnp.transpose(x_nchw, (0, 2, 3, 1)).astype(jnp.float32)

    def block(xx, w, g, b, m, v):
        y = _conv3x3(xx, w.astype(jnp.float32))
        s = g / jnp.sqrt(v + eps)
        return jnp.maximum((y - m) * s + b, 0.0)

    h = block(x, params["w1"], params["bn1_gamma"], params["bn1_beta"],
              params["bn1_mean"], params["bn1_var"])
    y = block(h, params["w2"], params["bn2_gamma"], params["bn2_beta"],
              params["bn2_mean"], params["bn2_var"])
    return jnp.transpose(y, (0, 3, 1, 2))


def _reference_matched(x_nchw, params, *, use_bf16=True, eps=1e-5):
    """lax.conv reference using the kernel's exact dtype policy (folded BN, bf16)."""
    cdt = jnp.bfloat16 if use_bf16 else jnp.float32
    s1, b1 = _fold_bn(params["bn1_gamma"], params["bn1_beta"],
                      params["bn1_mean"], params["bn1_var"], eps)
    s2, b2 = _fold_bn(params["bn2_gamma"], params["bn2_beta"],
                      params["bn2_mean"], params["bn2_var"], eps)
    w1f = (params["w1"].astype(jnp.float32) * s1).astype(cdt)
    w2f = (params["w2"].astype(jnp.float32) * s2).astype(cdt)

    x = jnp.transpose(x_nchw, (0, 2, 3, 1)).astype(cdt)
    h = jnp.maximum(_conv3x3(x, w1f) + b1, 0.0)
    y = jnp.maximum(_conv3x3(h.astype(cdt), w2f) + b2, 0.0)
    return jnp.transpose(y, (0, 3, 1, 2))


if __name__ == "__main__":
    key = jax.random.PRNGKey(0)
    (kx, k1, k2, kg1, kb1, km1, kv1, kg2, kb2, km2, kv2) = jax.random.split(key, 11)

    N, Cin, H, W = 2, 4, 16, 16
    Cout, K = 8, 3

    x = jax.random.normal(kx, (N, Cin, H, W), dtype=jnp.float32)
    params = {
        # Conv weights in HWIO layout (torch OIHW transposed), no bias.
        "w1": 0.1 * jax.random.normal(k1, (K, K, Cin, Cout), jnp.float32),
        "w2": 0.1 * jax.random.normal(k2, (K, K, Cout, Cout), jnp.float32),
        "bn1_gamma": 1.0 + 0.1 * jax.random.normal(kg1, (Cout,), jnp.float32),
        "bn1_beta": 0.1 * jax.random.normal(kb1, (Cout,), jnp.float32),
        "bn1_mean": 0.1 * jax.random.normal(km1, (Cout,), jnp.float32),
        "bn1_var": jnp.abs(1.0 + 0.1 * jax.random.normal(kv1, (Cout,), jnp.float32)),
        "bn2_gamma": 1.0 + 0.1 * jax.random.normal(kg2, (Cout,), jnp.float32),
        "bn2_beta": 0.1 * jax.random.normal(kb2, (Cout,), jnp.float32),
        "bn2_mean": 0.1 * jax.random.normal(km2, (Cout,), jnp.float32),
        "bn2_var": jnp.abs(1.0 + 0.1 * jax.random.normal(kv2, (Cout,), jnp.float32)),
    }

    out = jax.block_until_ready(double_conv(x, params, row_tile=8, use_bf16=True))
    ref_m = jax.block_until_ready(_reference_matched(x, params, use_bf16=True))
    ref_x = jax.block_until_ready(_reference_exact(x, params))

    assert out.shape == (N, Cout, H, W), out.shape
    err_kernel = float(jnp.max(jnp.abs(out - ref_m)))   # kernel-logic check
    err_module = float(jnp.max(jnp.abs(out - ref_x)))   # vs pure-f32 module semantics
    assert err_kernel < 2e-3, ("kernel vs dtype-matched reference", err_kernel)
    assert err_module < 5e-2, ("kernel vs f32 module reference", err_module)

    print("KERNEL_OK")
</pallas_src>

<mosaic_0001>
module attributes {stable_mosaic.version = 11 : i64} {
  func.func @_double_conv_kernel(%arg0: i32, %arg1: i32, %arg2: memref<1x8x16x4xbf16, #tpu.memory_space<vmem>>, %arg3: memref<1x2x16x4xbf16, #tpu.memory_space<vmem>>, %arg4: memref<1x2x16x4xbf16, #tpu.memory_space<vmem>>, %arg5: memref<36x128xbf16, #tpu.memory_space<vmem>>, %arg6: memref<1x128xf32, #tpu.memory_space<vmem>>, %arg7: memref<1152x128xbf16, #tpu.memory_space<vmem>>, %arg8: memref<1x128xf32, #tpu.memory_space<vmem>>, %arg9: memref<1x8x16x128xf32, #tpu.memory_space<vmem>>, %arg10: memref<12x18x4xf32, #tpu.memory_space<vmem>>, %arg11: memref<10x16x36xf32, #tpu.memory_space<vmem>>, %arg12: memref<10x18x128xf32, #tpu.memory_space<vmem>>, %arg13: memref<8x16x1152xf32, #tpu.memory_space<vmem>>) attributes {dimension_semantics = [#tpu.dimension_semantics<parallel>, #tpu.dimension_semantics<parallel>], iteration_bounds = array<i64: 2, 2>, scalar_prefetch = 0 : i64, scratch_operands = 4 : i64, tpu.core_type = #tpu.core_type<tc>, window_params = [{transform_indices = @transform_0, window_bounds = array<i64: 1, 8, 16, 4>}, {transform_indices = @transform_1, window_bounds = array<i64: 1, 2, 16, 4>}, {transform_indices = @transform_2, window_bounds = array<i64: 1, 2, 16, 4>}, {pipeline_mode = #tpu.pipeline_mode<synchronous>, transform_indices = @transform_3, window_bounds = array<i64: 36, 128>}, {pipeline_mode = #tpu.pipeline_mode<synchronous>, transform_indices = @transform_4, window_bounds = array<i64: 1, 128>}, {pipeline_mode = #tpu.pipeline_mode<synchronous>, transform_indices = @transform_5, window_bounds = array<i64: 1152, 128>}, {pipeline_mode = #tpu.pipeline_mode<synchronous>, transform_indices = @transform_6, window_bounds = array<i64: 1, 128>}, {transform_indices = @transform_7, window_bounds = array<i64: 1, 8, 16, 128>}]} {
    %cst = arith.constant 0.000000e+00 : f32
    %0 = vector.broadcast %cst : f32 to vector<12x1x4xf32>
    %c0 = arith.constant 0 : index
    %c0_0 = arith.constant 0 : index
    %c0_1 = arith.constant 0 : index
    %1 = vector.load %arg10[%c0, %c0_0, %c0_1] : memref<12x18x4xf32, #tpu.memory_space<vmem>>, vector<12x1x4xf32>
    tpu.vector_store %arg10[%c0, %c0_0, %c0_1], %0 {strides = array<i32>} : memref<12x18x4xf32, #tpu.memory_space<vmem>>, vector<12x1x4xf32>,
    %cst_2 = arith.constant 0.000000e+00 : f32
    %2 = vector.broadcast %cst_2 : f32 to vector<12x1x4xf32>
    %c0_3 = arith.constant 0 : index
    %c17 = arith.constant 17 : index
    %c0_4 = arith.constant 0 : index
    %3 = vector.load %arg10[%c0_3, %c17, %c0_4] : memref<12x18x4xf32, #tpu.memory_space<vmem>>, vector<12x1x4xf32>
    tpu.vector_store %arg10[%c0_3, %c17, %c0_4], %2 {strides = array<i32>} : memref<12x18x4xf32, #tpu.memory_space<vmem>>, vector<12x1x4xf32>,
    %c0_5 = arith.constant 0 : index
    %c0_6 = arith.constant 0 : index
    %c0_7 = arith.constant 0 : index
    %c0_8 = arith.constant 0 : index
    %4 = vector.load %arg2[%c0_5, %c0_6, %c0_7, %c0_8] : memref<1x8x16x4xbf16, #tpu.memory_space<vmem>>, vector<1x8x16x4xbf16>
    %5 = vector.shape_cast %4 : vector<1x8x16x4xbf16> to vector<8x16x4xbf16>
    %6 = arith.extf %5 : vector<8x16x4xbf16> to vector<8x16x4xf32>
    %c2 = arith.constant 2 : index
    %c1 = arith.constant 1 : index
    %c0_9 = arith.constant 0 : index
    %7 = vector.load %arg10[%c2, %c1, %c0_9] : memref<12x18x4xf32, #tpu.memory_space<vmem>>, vector<8x16x4xf32>
    tpu.vector_store %arg10[%c2, %c1, %c0_9], %6 {strides = array<i32>} : memref<12x18x4xf32, #tpu.memory_space<vmem>>, vector<8x16x4xf32>,
    %c0_i32 = arith.constant 0 : i32
    %8 = arith.cmpi sgt, %arg1, %c0_i32 : i32
    %9 = arith.extui %8 : i1 to i32
    %c0_i32_10 = arith.constant 0 : i32
    %10 = arith.cmpi ne, %9, %c0_i32_10 : i32
    scf.if %10 {
      %c0_145 = arith.constant 0 : index
      %c0_146 = arith.constant 0 : index
      %c0_147 = arith.constant 0 : index
      %c0_148 = arith.constant 0 : index
      %96 = vector.load %arg3[%c0_145, %c0_146, %c0_147, %c0_148] : memref<1x2x16x4xbf16, #tpu.memory_space<vmem>>, vector<1x2x16x4xbf16>
      %97 = vector.shape_cast %96 : vector<1x2x16x4xbf16> to vector<2x16x4xbf16>
      %98 = arith.extf %97 : vector<2x16x4xbf16> to vector<2x16x4xf32>
      %c0_149 = arith.constant 0 : index
      %c1_150 = arith.constant 1 : index
      %c0_151 = arith.constant 0 : index
      %99 = vector.load %arg10[%c0_149, %c1_150, %c0_151] : memref<12x18x4xf32, #tpu.memory_space<vmem>>, vector<2x16x4xf32>
      tpu.vector_store %arg10[%c0_149, %c1_150, %c0_151], %98 {strides = array<i32>} : memref<12x18x4xf32, #tpu.memory_space<vmem>>, vector<2x16x4xf32>,
    } else {
    }
    %c0_i32_11 = arith.constant 0 : i32
    %11 = arith.cmpi eq, %arg1, %c0_i32_11 : i32
    %12 = arith.extui %11 : i1 to i32
    %c0_i32_12 = arith.constant 0 : i32
    %13 = arith.cmpi ne, %12, %c0_i32_12 : i32
    scf.if %13 {
      %cst_145 = arith.constant 0.000000e+00 : f32
      %96 = vector.broadcast %cst_145 : f32 to vector<2x16x4xf32>
      %c0_146 = arith.constant 0 : index
      %c1_147 = arith.constant 1 : index
      %c0_148 = arith.constant 0 : index
      %97 = vector.load %arg10[%c0_146, %c1_147, %c0_148] : memref<12x18x4xf32, #tpu.memory_space<vmem>>, vector<2x16x4xf32>
      tpu.vector_store %arg10[%c0_146, %c1_147, %c0_148], %96 {strides = array<i32>} : memref<12x18x4xf32, #tpu.memory_space<vmem>>, vector<2x16x4xf32>,
    } else {
    }
    %c1_i32 = arith.constant 1 : i32
    %14 = arith.cmpi slt, %arg1, %c1_i32 : i32
    %15 = arith.extui %14 : i1 to i32
    %c0_i32_13 = arith.constant 0 : i32
    %16 = arith.cmpi ne, %15, %c0_i32_13 : i32
    scf.if %16 {
      %c0_145 = arith.constant 0 : index
      %c0_146 = arith.constant 0 : index
      %c0_147 = arith.constant 0 : index
      %c0_148 = arith.constant 0 : index
      %96 = vector.load %arg4[%c0_145, %c0_146, %c0_147, %c0_148] : memref<1x2x16x4xbf16, #tpu.memory_space<vmem>>, vector<1x2x16x4xbf16>
      %97 = vector.shape_cast %96 : vector<1x2x16x4xbf16> to vector<2x16x4xbf16>
      %98 = arith.extf %97 : vector<2x16x4xbf16> to vector<2x16x4xf32>
      %c10 = arith.constant 10 : index
      %c1_149 = arith.constant 1 : index
      %c0_150 = arith.constant 0 : index
      %99 = vector.load %arg10[%c10, %c1_149, %c0_150] : memref<12x18x4xf32, #tpu.memory_space<vmem>>, vector<2x16x4xf32>
      tpu.vector_store %arg10[%c10, %c1_149, %c0_150], %98 {strides = array<i32>} : memref<12x18x4xf32, #tpu.memory_space<vmem>>, vector<2x16x4xf32>,
    } else {
    }
    %c1_i32_14 = arith.constant 1 : i32
    %17 = arith.cmpi eq, %arg1, %c1_i32_14 : i32
    %18 = arith.extui %17 : i1 to i32
    %c0_i32_15 = arith.constant 0 : i32
    %19 = arith.cmpi ne, %18, %c0_i32_15 : i32
    scf.if %19 {
      %cst_145 = arith.constant 0.000000e+00 : f32
      %96 = vector.broadcast %cst_145 : f32 to vector<2x16x4xf32>
      %c10 = arith.constant 10 : index
      %c1_146 = arith.constant 1 : index
      %c0_147 = arith.constant 0 : index
      %97 = vector.load %arg10[%c10, %c1_146, %c0_147] : memref<12x18x4xf32, #tpu.memory_space<vmem>>, vector<2x16x4xf32>
      tpu.vector_store %arg10[%c10, %c1_146, %c0_147], %96 {strides = array<i32>} : memref<12x18x4xf32, #tpu.memory_space<vmem>>, vector<2x16x4xf32>,
    } else {
    }
    %c0_16 = arith.constant 0 : index
    %c0_17 = arith.constant 0 : index
    %c0_18 = arith.constant 0 : index
    %20 = vector.load %arg10[%c0_16, %c0_17, %c0_18] : memref<12x18x4xf32, #tpu.memory_space<vmem>>, vector<10x16x4xf32>
    %c0_19 = arith.constant 0 : index
    %c0_20 = arith.constant 0 : index
    %c0_21 = arith.constant 0 : index
    %21 = vector.load %arg11[%c0_19, %c0_20, %c0_21] : memref<10x16x36xf32, #tpu.memory_space<vmem>>, vector<10x16x4xf32>
    tpu.vector_store %arg11[%c0_19, %c0_20, %c0_21], %20 {strides = array<i32>} : memref<10x16x36xf32, #tpu.memory_space<vmem>>, vector<10x16x4xf32>,
    %c0_22 = arith.constant 0 : index
    %c1_23 = arith.constant 1 : index
    %c0_24 = arith.constant 0 : index
    %22 = vector.load %arg10[%c0_22, %c1_23, %c0_24] : memref<12x18x4xf32, #tpu.memory_space<vmem>>, vector<10x16x4xf32>
    %c0_25 = arith.constant 0 : index
    %c0_26 = arith.constant 0 : index
    %c4 = arith.constant 4 : index
    %23 = vector.load %arg11[%c0_25, %c0_26, %c4] : memref<10x16x36xf32, #tpu.memory_space<vmem>>, vector<10x16x4xf32>
    tpu.vector_store %arg11[%c0_25, %c0_26, %c4], %22 {strides = array<i32>} : memref<10x16x36xf32, #tpu.memory_space<vmem>>, vector<10x16x4xf32>,
    %c0_27 = arith.constant 0 : index
    %c2_28 = arith.constant 2 : index
    %c0_29 = arith.constant 0 : index
    %24 = vector.load %arg10[%c0_27, %c2_28, %c0_29] : memref<12x18x4xf32, #tpu.memory_space<vmem>>, vector<10x16x4xf32>
    %c0_30 = arith.constant 0 : index
    %c0_31 = arith.constant 0 : index
    %c8 = arith.constant 8 : index
    %25 = vector.load %arg11[%c0_30, %c0_31, %c8] : memref<10x16x36xf32, #tpu.memory_space<vmem>>, vector<10x16x4xf32>
    tpu.vector_store %arg11[%c0_30, %c0_31, %c8], %24 {strides = array<i32>} : memref<10x16x36xf32, #tpu.memory_space<vmem>>, vector<10x16x4xf32>,
    %c1_32 = arith.constant 1 : index
    %c0_33 = arith.constant 0 : index
    %c0_34 = arith.constant 0 : index
    %26 = vector.load %arg10[%c1_32, %c0_33, %c0_34] : memref<12x18x4xf32, #tpu.memory_space<vmem>>, vector<10x16x4xf32>
    %c0_35 = arith.constant 0 : index
    %c0_36 = arith.constant 0 : index
    %c12 = arith.constant 12 : index
    %27 = vector.load %arg11[%c0_35, %c0_36, %c12] : memref<10x16x36xf32, #tpu.memory_space<vmem>>, vector<10x16x4xf32>
    tpu.vector_store %arg11[%c0_35, %c0_36, %c12], %26 {strides = array<i32>} : memref<10x16x36xf32, #tpu.memory_space<vmem>>, vector<10x16x4xf32>,
    %c1_37 = arith.constant 1 : index
    %c1_38 = arith.constant 1 : index
    %c0_39 = arith.constant 0 : index
    %28 = vector.load %arg10[%c1_37, %c1_38, %c0_39] : memref<12x18x4xf32, #tpu.memory_space<vmem>>, vector<10x16x4xf32>
    %c0_40 = arith.constant 0 : index
    %c0_41 = arith.constant 0 : index
    %c16 = arith.constant 16 : index
    %29 = vector.load %arg11[%c0_40, %c0_41, %c16] : memref<10x16x36xf32, #tpu.memory_space<vmem>>, vector<10x16x4xf32>
    tpu.vector_store %arg11[%c0_40, %c0_41, %c16], %28 {strides = array<i32>} : memref<10x16x36xf32, #tpu.memory_space<vmem>>, vector<10x16x4xf32>,
    %c1_42 = arith.constant 1 : index
    %c2_43 = arith.constant 2 : index
    %c0_44 = arith.constant 0 : index
    %30 = vector.load %arg10[%c1_42, %c2_43, %c0_44] : memref<12x18x4xf32, #tpu.memory_space<vmem>>, vector<10x16x4xf32>
    %c0_45 = arith.constant 0 : index
    %c0_46 = arith.constant 0 : index
    %c20 = arith.constant 20 : index
    %31 = vector.load %arg11[%c0_45, %c0_46, %c20] : memref<10x16x36xf32, #tpu.memory_space<vmem>>, vector<10x16x4xf32>
    tpu.vector_store %arg11[%c0_45, %c0_46, %c20], %30 {strides = array<i32>} : memref<10x16x36xf32, #tpu.memory_space<vmem>>, vector<10x16x4xf32>,
    %c2_47 = arith.constant 2 : index
    %c0_48 = arith.constant 0 : index
    %c0_49 = arith.constant 0 : index
    %32 = vector.load %arg10[%c2_47, %c0_48, %c0_49] : memref<12x18x4xf32, #tpu.memory_space<vmem>>, vector<10x16x4xf32>
    %c0_50 = arith.constant 0 : index
    %c0_51 = arith.constant 0 : index
    %c24 = arith.constant 24 : index
    %33 = vector.load %arg11[%c0_50, %c0_51, %c24] : memref<10x16x36xf32, #tpu.memory_space<vmem>>, vector<10x16x4xf32>
    tpu.vector_store %arg11[%c0_50, %c0_51, %c24], %32 {strides = array<i32>} : memref<10x16x36xf32, #tpu.memory_space<vmem>>, vector<10x16x4xf32>,
    %c2_52 = arith.constant 2 : index
    %c1_53 = arith.constant 1 : index
    %c0_54 = arith.constant 0 : index
    %34 = vector.load %arg10[%c2_52, %c1_53, %c0_54] : memref<12x18x4xf32, #tpu.memory_space<vmem>>, vector<10x16x4xf32>
    %c0_55 = arith.constant 0 : index
    %c0_56 = arith.constant 0 : index
    %c28 = arith.constant 28 : index
    %35 = vector.load %arg11[%c0_55, %c0_56, %c28] : memref<10x16x36xf32, #tpu.memory_space<vmem>>, vector<10x16x4xf32>
    tpu.vector_store %arg11[%c0_55, %c0_56, %c28], %34 {strides = array<i32>} : memref<10x16x36xf32, #tpu.memory_space<vmem>>, vector<10x16x4xf32>,
    %c2_57 = arith.constant 2 : index
    %c2_58 = arith.constant 2 : index
    %c0_59 = arith.constant 0 : index
    %36 = vector.load %arg10[%c2_57, %c2_58, %c0_59] : memref<12x18x4xf32, #tpu.memory_space<vmem>>, vector<10x16x4xf32>
    %c0_60 = arith.constant 0 : index
    %c0_61 = arith.constant 0 : index
    %c32 = arith.constant 32 : index
    %37 = vector.load %arg11[%c0_60, %c0_61, %c32] : memref<10x16x36xf32, #tpu.memory_space<vmem>>, vector<10x16x4xf32>
    tpu.vector_store %arg11[%c0_60, %c0_61, %c32], %36 {strides = array<i32>} : memref<10x16x36xf32, #tpu.memory_space<vmem>>, vector<10x16x4xf32>,
    %c0_62 = arith.constant 0 : index
    %c0_63 = arith.constant 0 : index
    %c0_64 = arith.constant 0 : index
    %38 = vector.load %arg11[%c0_62, %c0_63, %c0_64] : memref<10x16x36xf32, #tpu.memory_space<vmem>>, vector<10x16x36xf32>
    %39 = vector.shape_cast %38 : vector<10x16x36xf32> to vector<160x36xf32>
    %40 = arith.truncf %39 : vector<160x36xf32> to vector<160x36xbf16>
    %c0_65 = arith.constant 0 : index
    %c0_66 = arith.constant 0 : index
    %41 = vector.load %arg5[%c0_65, %c0_66] : memref<36x128xbf16, #tpu.memory_space<vmem>>, vector<36x128xbf16>
    %cst_67 = arith.constant dense<0.000000e+00> : vector<160x128xf32>
    %42 = tpu.matmul %40, %41, %cst_67 {dimension_numbers = #tpu.dot_dimension_numbers<[1], [0], [0], [1], [0, 0, 1, 1], [], []>} : vector<160x36xbf16>, vector<36x128xbf16>, vector<160x128xf32> -> vector<160x128xf32>
    %c0_68 = arith.constant 0 : index
    %c0_69 = arith.constant 0 : index
    %43 = vector.load %arg6[%c0_68, %c0_69] : memref<1x128xf32, #tpu.memory_space<vmem>>, vector<1x128xf32>
    %44 = vector.shape_cast %43 : vector<1x128xf32> to vector<128xf32>
    %45 = vector.shape_cast %44 : vector<128xf32> to vector<1x128xf32>
    %46 = vector.broadcast %45 : vector<1x128xf32> to vector<160x128xf32>
    %47 = arith.addf %42, %46 : vector<160x128xf32>
    %cst_70 = arith.constant 0.000000e+00 : f32
    %48 = vector.broadcast %cst_70 : f32 to vector<160x128xf32>
    %49 = arith.maximumf %47, %48 : vector<160x128xf32>
    %50 = vector.shape_cast %49 : vector<160x128xf32> to vector<10x16x128xf32>
    %c0_71 = arith.constant 0 : index
    %c1_72 = arith.constant 1 : index
    %c0_73 = arith.constant 0 : index
    %51 = vector.load %arg12[%c0_71, %c1_72, %c0_73] : memref<10x18x128xf32, #tpu.memory_space<vmem>>, vector<10x16x128xf32>
    tpu.vector_store %arg12[%c0_71, %c1_72, %c0_73], %50 {strides = array<i32>} : memref<10x18x128xf32, #tpu.memory_space<vmem>>, vector<10x16x128xf32>,
    %cst_74 = arith.constant 0.000000e+00 : f32
    %52 = vector.broadcast %cst_74 : f32 to vector<10x1x128xf32>
    %c0_75 = arith.constant 0 : index
    %c0_76 = arith.constant 0 : index
    %c0_77 = arith.constant 0 : index
    %53 = vector.load %arg12[%c0_75, %c0_76, %c0_77] : memref<10x18x128xf32, #tpu.memory_space<vmem>>, vector<10x1x128xf32>
    tpu.vector_store %arg12[%c0_75, %c0_76, %c0_77], %52 {strides = array<i32>} : memref<10x18x128xf32, #tpu.memory_space<vmem>>, vector<10x1x128xf32>,
    %cst_78 = arith.constant 0.000000e+00 : f32
    %54 = vector.broadcast %cst_78 : f32 to vector<10x1x128xf32>
    %c0_79 = arith.constant 0 : index
    %c17_80 = arith.constant 17 : index
    %c0_81 = arith.constant 0 : index
    %55 = vector.load %arg12[%c0_79, %c17_80, %c0_81] : memref<10x18x128xf32, #tpu.memory_space<vmem>>, vector<10x1x128xf32>
    tpu.vector_store %arg12[%c0_79, %c17_80, %c0_81], %54 {strides = array<i32>} : memref<10x18x128xf32, #tpu.memory_space<vmem>>, vector<10x1x128xf32>,
    %c0_i32_82 = arith.constant 0 : i32
    %56 = arith.cmpi eq, %arg1, %c0_i32_82 : i32
    %57 = arith.extui %56 : i1 to i32
    %c0_i32_83 = arith.constant 0 : i32
    %58 = arith.cmpi ne, %57, %c0_i32_83 : i32
    scf.if %58 {
      %cst_145 = arith.constant 0.000000e+00 : f32
      %96 = vector.broadcast %cst_145 : f32 to vector<1x18x128xf32>
      %c0_146 = arith.constant 0 : index
      %c0_147 = arith.constant 0 : index
      %c0_148 = arith.constant 0 : index
      %97 = vector.load %arg12[%c0_146, %c0_147, %c0_148] : memref<10x18x128xf32, #tpu.memory_space<vmem>>, vector<1x18x128xf32>
      tpu.vector_store %arg12[%c0_146, %c0_147, %c0_148], %96 {strides = array<i32>} : memref<10x18x128xf32, #tpu.memory_space<vmem>>, vector<1x18x128xf32>,
    } else {
    }
    %c1_i32_84 = arith.constant 1 : i32
    %59 = arith.cmpi eq, %arg1, %c1_i32_84 : i32
    %60 = arith.extui %59 : i1 to i32
    %c0_i32_85 = arith.constant 0 : i32
    %61 = arith.cmpi ne, %60, %c0_i32_85 : i32
    scf.if %61 {
      %cst_145 = arith.constant 0.000000e+00 : f32
      %96 = vector.broadcast %cst_145 : f32 to vector<1x18x128xf32>
      %c9 = arith.constant 9 : index
      %c0_146 = arith.constant 0 : index
      %c0_147 = arith.constant 0 : index
      %97 = vector.load %arg12[%c9, %c0_146, %c0_147] : memref<10x18x128xf32, #tpu.memory_space<vmem>>, vector<1x18x128xf32>
      tpu.vector_store %arg12[%c9, %c0_146, %c0_147], %96 {strides = array<i32>} : memref<10x18x128xf32, #tpu.memory_space<vmem>>, vector<1x18x128xf32>,
    } else {
    }
    %c0_86 = arith.constant 0 : index
    %c0_87 = arith.constant 0 : index
    %c0_88 = arith.constant 0 : index
    %62 = vector.load %arg12[%c0_86, %c0_87, %c0_88] : memref<10x18x128xf32, #tpu.memory_space<vmem>>, vector<8x16x128xf32>
    %c0_89 = arith.constant 0 : index
    %c0_90 = arith.constant 0 : index
    %c0_91 = arith.constant 0 : index
    %63 = vector.load %arg13[%c0_89, %c0_90, %c0_91] : memref<8x16x1152xf32, #tpu.memory_space<vmem>>, vector<8x16x128xf32>
    tpu.vector_store %arg13[%c0_89, %c0_90, %c0_91], %62 {strides = array<i32>} : memref<8x16x1152xf32, #tpu.memory_space<vmem>>, vector<8x16x128xf32>,
    %c0_92 = arith.constant 0 : index
    %c1_93 = arith.constant 1 : index
    %c0_94 = arith.constant 0 : index
    %64 = vector.load %arg12[%c0_92, %c1_93, %c0_94] : memref<10x18x128xf32, #tpu.memory_space<vmem>>, vector<8x16x128xf32>
    %c0_95 = arith.constant 0 : index
    %c0_96 = arith.constant 0 : index
    %c128 = arith.constant 128 : index
    %65 = vector.load %arg13[%c0_95, %c0_96, %c128] : memref<8x16x1152xf32, #tpu.memory_space<vmem>>, vector<8x16x128xf32>
    tpu.vector_store %arg13[%c0_95, %c0_96, %c128], %64 {strides = array<i32>} : memref<8x16x1152xf32, #tpu.memory_space<vmem>>, vector<8x16x128xf32>,
    %c0_97 = arith.constant 0 : index
    %c2_98 = arith.constant 2 : index
    %c0_99 = arith.constant 0 : index
    %66 = vector.load %arg12[%c0_97, %c2_98, %c0_99] : memref<10x18x128xf32, #tpu.memory_space<vmem>>, vector<8x16x128xf32>
    %c0_100 = arith.constant 0 : index
    %c0_101 = arith.constant 0 : index
    %c256 = arith.constant 256 : index
    %67 = vector.load %arg13[%c0_100, %c0_101, %c256] : memref<8x16x1152xf32, #tpu.memory_space<vmem>>, vector<8x16x128xf32>
    tpu.vector_store %arg13[%c0_100, %c0_101, %c256], %66 {strides = array<i32>} : memref<8x16x1152xf32, #tpu.memory_space<vmem>>, vector<8x16x128xf32>,
    %c1_102 = arith.constant 1 : index
    %c0_103 = arith.constant 0 : index
    %c0_104 = arith.constant 0 : index
    %68 = vector.load %arg12[%c1_102, %c0_103, %c0_104] : memref<10x18x128xf32, #tpu.memory_space<vmem>>, vector<8x16x128xf32>
    %c0_105 = arith.constant 0 : index
    %c0_106 = arith.constant 0 : index
    %c384 = arith.constant 384 : index
    %69 = vector.load %arg13[%c0_105, %c0_106, %c384] : memref<8x16x1152xf32, #tpu.memory_space<vmem>>, vector<8x16x128xf32>
    tpu.vector_store %arg13[%c0_105, %c0_106, %c384], %68 {strides = array<i32>} : memref<8x16x1152xf32, #tpu.memory_space<vmem>>, vector<8x16x128xf32>,
    %c1_107 = arith.constant 1 : index
    %c1_108 = arith.constant 1 : index
    %c0_109 = arith.constant 0 : index
    %70 = vector.load %arg12[%c1_107, %c1_108, %c0_109] : memref<10x18x128xf32, #tpu.memory_space<vmem>>, vector<8x16x128xf32>
    %c0_110 = arith.constant 0 : index
    %c0_111 = arith.constant 0 : index
    %c512 = arith.constant 512 : index
    %71 = vector.load %arg13[%c0_110, %c0_111, %c512] : memref<8x16x1152xf32, #tpu.memory_space<vmem>>, vector<8x16x128xf32>
    tpu.vector_store %arg13[%c0_110, %c0_111, %c512], %70 {strides = array<i32>} : memref<8x16x1152xf32, #tpu.memory_space<vmem>>, vector<8x16x128xf32>,
    %c1_112 = arith.constant 1 : index
    %c2_113 = arith.constant 2 : index
    %c0_114 = arith.constant 0 : index
    %72 = vector.load %arg12[%c1_112, %c2_113, %c0_114] : memref<10x18x128xf32, #tpu.memory_space<vmem>>, vector<8x16x128xf32>
    %c0_115 = arith.constant 0 : index
    %c0_116 = arith.constant 0 : index
    %c640 = arith.constant 640 : index
    %73 = vector.load %arg13[%c0_115, %c0_116, %c640] : memref<8x16x1152xf32, #tpu.memory_space<vmem>>, vector<8x16x128xf32>
    tpu.vector_store %arg13[%c0_115, %c0_116, %c640], %72 {strides = array<i32>} : memref<8x16x1152xf32, #tpu.memory_space<vmem>>, vector<8x16x128xf32>,
    %c2_117 = arith.constant 2 : index
    %c0_118 = arith.constant 0 : index
    %c0_119 = arith.constant 0 : index
    %74 = vector.load %arg12[%c2_117, %c0_118, %c0_119] : memref<10x18x128xf32, #tpu.memory_space<vmem>>, vector<8x16x128xf32>
    %c0_120 = arith.constant 0 : index
    %c0_121 = arith.constant 0 : index
    %c768 = arith.constant 768 : index
    %75 = vector.load %arg13[%c0_120, %c0_121, %c768] : memref<8x16x1152xf32, #tpu.memory_space<vmem>>, vector<8x16x128xf32>
    tpu.vector_store %arg13[%c0_120, %c0_121, %c768], %74 {strides = array<i32>} : memref<8x16x1152xf32, #tpu.memory_space<vmem>>, vector<8x16x128xf32>,
    %c2_122 = arith.constant 2 : index
    %c1_123 = arith.constant 1 : index
    %c0_124 = arith.constant 0 : index
    %76 = vector.load %arg12[%c2_122, %c1_123, %c0_124] : memref<10x18x128xf32, #tpu.memory_space<vmem>>, vector<8x16x128xf32>
    %c0_125 = arith.constant 0 : index
    %c0_126 = arith.constant 0 : index
    %c896 = arith.constant 896 : index
    %77 = vector.load %arg13[%c0_125, %c0_126, %c896] : memref<8x16x1152xf32, #tpu.memory_space<vmem>>, vector<8x16x128xf32>
    tpu.vector_store %arg13[%c0_125, %c0_126, %c896], %76 {strides = array<i32>} : memref<8x16x1152xf32, #tpu.memory_space<vmem>>, vector<8x16x128xf32>,
    %c2_127 = arith.constant 2 : index
    %c2_128 = arith.constant 2 : index
    %c0_129 = arith.constant 0 : index
    %78 = vector.load %arg12[%c2_127, %c2_128, %c0_129] : memref<10x18x128xf32, #tpu.memory_space<vmem>>, vector<8x16x128xf32>
    %c0_130 = arith.constant 0 : index
    %c0_131 = arith.constant 0 : index
    %c1024 = arith.constant 1024 : index
    %79 = vector.load %arg13[%c0_130, %c0_131, %c1024] : memref<8x16x1152xf32, #tpu.memory_space<vmem>>, vector<8x16x128xf32>
    tpu.vector_store %arg13[%c0_130, %c0_131, %c1024], %78 {strides = array<i32>} : memref<8x16x1152xf32, #tpu.memory_space<vmem>>, vector<8x16x128xf32>,
    %c0_132 = arith.constant 0 : index
    %c0_133 = arith.constant 0 : index
    %c0_134 = arith.constant 0 : index
    %80 = vector.load %arg13[%c0_132, %c0_133, %c0_134] : memref<8x16x1152xf32, #tpu.memory_space<vmem>>, vector<8x16x1152xf32>
    %81 = vector.shape_cast %80 : vector<8x16x1152xf32> to vector<128x1152xf32>
    %82 = arith.truncf %81 : vector<128x1152xf32> to vector<128x1152xbf16>
    %c0_135 = arith.constant 0 : index
    %c0_136 = arith.constant 0 : index
    %83 = vector.load %arg7[%c0_135, %c0_136] : memref<1152x128xbf16, #tpu.memory_space<vmem>>, vector<1152x128xbf16>
    %cst_137 = arith.constant dense<0.000000e+00> : vector<128x128xf32>
    %84 = tpu.matmul %82, %83, %cst_137 {dimension_numbers = #tpu.dot_dimension_numbers<[1], [0], [0], [1], [0, 0, 1, 1], [], []>} : vector<128x1152xbf16>, vector<1152x128xbf16>, vector<128x128xf32> -> vector<128x128xf32>
    %c0_138 = arith.constant 0 : index
    %c0_139 = arith.constant 0 : index
    %85 = vector.load %arg8[%c0_138, %c0_139] : memref<1x128xf32, #tpu.memory_space<vmem>>, vector<1x128xf32>
    %86 = vector.shape_cast %85 : vector<1x128xf32> to vector<128xf32>
    %87 = vector.shape_cast %86 : vector<128xf32> to vector<1x128xf32>
    %88 = vector.broadcast %87 : vector<1x128xf32> to vector<128x128xf32>
    %89 = arith.addf %84, %88 : vector<128x128xf32>
    %cst_140 = arith.constant 0.000000e+00 : f32
    %90 = vector.broadcast %cst_140 : f32 to vector<128x128xf32>
    %91 = arith.maximumf %89, %90 : vector<128x128xf32>
    %92 = vector.shape_cast %91 : vector<128x128xf32> to vector<8x16x128xf32>
    %c0_141 = arith.constant 0 : index
    %c0_142 = arith.constant 0 : index
    %c0_143 = arith.constant 0 : index
    %c0_144 = arith.constant 0 : index
    %93 = vector.load %arg9[%c0_141, %c0_142, %c0_143, %c0_144] : memref<1x8x16x128xf32, #tpu.memory_space<vmem>>, vector<1x8x16x128xf32>
    %94 = vector.shape_cast %93 : vector<1x8x16x128xf32> to vector<8x16x128xf32>
    %95 = vector.shape_cast %92 : vector<8x16x128xf32> to vector<1x8x16x128xf32>
    tpu.vector_store %arg9[%c0_141, %c0_142, %c0_143, %c0_144], %95 {strides = array<i32>} : memref<1x8x16x128xf32, #tpu.memory_space<vmem>>, vector<1x8x16x128xf32>,
    return
  }
  func.func @transform_0(%arg0: i32, %arg1: i32) -> (i32, i32, i32, i32) {
    %c0_i32 = arith.constant 0 : i32
    %c0_i32_0 = arith.constant 0 : i32
    %c0_i32_1 = arith.constant 0 : i32
    return %arg0, %arg1, %c0_i32, %c0_i32_0 : i32, i32, i32, i32
  }
  func.func @transform_1(%arg0: i32, %arg1: i32) -> (i32, i32, i32, i32) {
    %c4_i32 = arith.constant 4 : i32
    %0 = arith.muli %arg1, %c4_i32 : i32
    %c1_i32 = arith.constant 1 : i32
    %1 = arith.subi %0, %c1_i32 : i32
    %c0_i32 = arith.constant 0 : i32
    %2 = arith.maxsi %1, %c0_i32 : i32
    %c0_i32_0 = arith.constant 0 : i32
    %c0_i32_1 = arith.constant 0 : i32
    %c0_i32_2 = arith.constant 0 : i32
    return %arg0, %2, %c0_i32_0, %c0_i32_1 : i32, i32, i32, i32
  }
  func.func @transform_2(%arg0: i32, %arg1: i32) -> (i32, i32, i32, i32) {
    %c1_i32 = arith.constant 1 : i32
    %0 = arith.addi %arg1, %c1_i32 : i32
    %c4_i32 = arith.constant 4 : i32
    %1 = arith.muli %0, %c4_i32 : i32
    %c7_i32 = arith.constant 7 : i32
    %2 = arith.minsi %1, %c7_i32 : i32
    %c0_i32 = arith.constant 0 : i32
    %c0_i32_0 = arith.constant 0 : i32
    %c0_i32_1 = arith.constant 0 : i32
    return %arg0, %2, %c0_i32, %c0_i32_0 : i32, i32, i32, i32
  }
  func.func @transform_3(%arg0: i32, %arg1: i32) -> (i32, i32) {
    %c0_i32 = arith.constant 0 : i32
    %c0_i32_0 = arith.constant 0 : i32
    %c0_i32_1 = arith.constant 0 : i32
    return %c0_i32, %c0_i32_0 : i32, i32
  }
  func.func @transform_4(%arg0: i32, %arg1: i32) -> (i32, i32) {
    %c0_i32 = arith.constant 0 : i32
    %c0_i32_0 = arith.constant 0 : i32
    %c0_i32_1 = arith.constant 0 : i32
    return %c0_i32, %c0_i32_0 : i32, i32
  }
  func.func @transform_5(%arg0: i32, %arg1: i32) -> (i32, i32) {
    %c0_i32 = arith.constant 0 : i32
    %c0_i32_0 = arith.constant 0 : i32
    %c0_i32_1 = arith.constant 0 : i32
    return %c0_i32, %c0_i32_0 : i32, i32
  }
  func.func @transform_6(%arg0: i32, %arg1: i32) -> (i32, i32) {
    %c0_i32 = arith.constant 0 : i32
    %c0_i32_0 = arith.constant 0 : i32
    %c0_i32_1 = arith.constant 0 : i32
    return %c0_i32, %c0_i32_0 : i32, i32
  }
  func.func @transform_7(%arg0: i32, %arg1: i32) -> (i32, i32, i32, i32) {
    %c0_i32 = arith.constant 0 : i32
    %c0_i32_0 = arith.constant 0 : i32
    %c0_i32_1 = arith.constant 0 : i32
    return %arg0, %arg1, %c0_i32, %c0_i32_0 : i32, i32, i32, i32
  }
}

</mosaic_0001>

<bundles_post_ra>
// kernel: tpu_custom_call.1
= control target key start
LH: loop header
LB: loop body
LE: loop exit
PB: predicated region body
PF: predicated region fallthrough
CT: control target
= control target key end

     0   :  { %s5723_s0 = inlined_call_operand.vmem [shape: bf16[2,16,16,4], index: 0, kind: input, shape index: {}]   ;;  %s5724_s1 = inlined_call_operand.vmem [shape: bf16[2,16,16,4], index: 1, kind: input, shape index: {}]   ;;  %s5725_s2 = inlined_call_operand.vmem [shape: bf16[2,16,16,4], index: 2, kind: input, shape index: {}]   ;;  %s5726_s3 = inlined_call_operand.vmem [shape: bf16[36,128], index: 3, kind: input, shape index: {}]   ;;  %s5727_s4 = inlined_call_operand.vmem [shape: f32[1,128], index: 4, kind: input, shape index: {}]   ;;  %s5728_s5 = inlined_call_operand.vmem [shape: bf16[1152,128], index: 5, kind: input, shape index: {}]   ;;  %s5729_s6 = inlined_call_operand.vmem [shape: f32[1,128], index: 6, kind: input, shape index: {}]   ;;  %s5730_s7 = inlined_call_operand.hbm [shape: f32[2,16,16,128], index: 7, kind: output, shape index: {}]  }
   0x1   :  { %5737 = sst [smem:[#allocation15_spill]] %s5723_s0 }
   0x2   :  { %12 = vsyncpa [#allocation7], 0 }
   0x3   :  { %14 = vsyncpa [#allocation7 + $0x1], 0  ;;  %s4454_s24 = smov 0   ;;  %s4456_s25 = smov 0  }
   0x4   :  { %s4458_s26 = smov 0   ;;  %s4460_s27 = smov 0  }
   0x5   :  { %s4462_s28 = smov 0   ;;  %s4464_s29 = smov 0  }
   0x6   :  { %s4466_s30 = smov 0   ;;  %s4468_s8 = smov 0  }
   0x7 LB: > { %5738 = sst [smem:[#allocation9_spill]] %s4377_s26  ;;  %s3608_s9 = sadd.s32 4294967295, %s4397_s8   ;;  %s4397_s8 = sphi %s4468_s8, %s20_s8   ;;  %s4393_s30 = sphi %s4466_s30, %s5755_s30   ;;  %s4389_s29 = sphi %s4464_s29, %s5754_s29   ;;  %s4385_s28 = sphi %s4462_s28, %s5753_s28   ;;  %s4381_s27 = sphi %s4460_s27, %s5752_s27   ;;  %s4377_s26 = sphi %s4458_s26, %s5751_s26   ;;  %s4373_s25 = sphi %s4456_s25, %s5757_s25   ;;  %s4369_s24 = sphi %s4454_s24, %s5756_s24  }
   0x8   : > { %5739 = sst [smem:[#allocation10_spill]] %s4389_s29  ;;  %s3609_s10 = sadd.s32 4294967294, %s4397_s8  }
   0x9   : > { %5740 = sst [smem:[#allocation11_spill]] %s4393_s30  ;;  %s29_s11 = sadd.s32 1, %s4389_s29 }
   0xa   : > { %p30_p0 = scmp.ge.s32.totalorder %s29_s11, 2  ;;  %s32_s12 = sadd.s32 1, %s4393_s30 }
   0xb   : > { %p235_p1 = scmp.ne.s32.totalorder %s4377_s26, %s4373_s25  ;;  %p236_p2 = scmp.eq.s32.totalorder %s3608_s9, 3 }
   0xc   : > { %s5759_s11 = smov (%p30_p0, %s29_s11), 0  ;;  %s5761_s12 = smov (!%p30_p0, %s32_s12), %s4393_s30 }
   0xd   : > { %5741 = sst [smem:[#allocation12_spill]] %s5759_s11  ;;  %s221_s13 = ssub.s32 %s4389_s29, %s5759_s11 }
   0xe   : > { %p4505_p3 = por %p236_p2, %p235_p1  ;;  %p34_p4 = scmp.ge.s32.totalorder %s5761_s12, 2 }
   0xf   : > { %p241_p5 = scmp.ne.s32.totalorder %s4373_s25, %s4369_s24  ;;  %p242_p6 = scmp.eq.s32.totalorder %s3609_s10, 3 }
  0x10   : > { %p3618_p7 = scmp.ge.s32.totalorder %s4397_s8, 1  ;;  %s5763_s12 = smov (%p34_p4, %s5761_s12), 0 }
  0x11   : > { %5743 = sst [smem:[#allocation13_spill]] %s5763_s12  ;;  %p4514_p8 = por %p242_p6, %p241_p5 }
  0x12   : > { %p330_p9 = scmp.lt.s32.totalorder %s4397_s8, 5  ;;  %s220_s16 = ssub.s32 %s4393_s30, %s5763_s12 }
  0x13   : > { %s225_s17 = sadd.s32 1, %s4377_s26  ;;  %s222_s18 = sor.u32 %s221_s13, %s220_s16 }
  0x14   : > { %p331_p10 = pnand %p3618_p7, %p330_p9  ;;  %p223_p11 = scmp.eq.s32.totalorder %s222_s18, 0 }
  0x15   : > { %s5731_s20 = sand.u32 (!%p331_p10), 1, %s4373_s25   ;;  %vm446_vm0 = vcmask (!%p331_p10), 24576   ;;  %s3620_s21 = sshll.u32 (!%p331_p10), %s4381_s27, 3  ;;  %v4399_v0 = vmov (!%p331_p10), 0.0   ;;  %vm504_vm1 = vcmask (!%p331_p10), 31744  }
  0x16   : > { %s4523_s19 = scalar_select %p223_p11, %s4377_s26, %s225_s17  }
  0x17   : > { %334 = sbr.rel (%p331_p10) target bundleno = 1165 (0x48d), region = 48  ;;  %s4529_s22 = sshll.u32 (!%p331_p10), %s5731_s20, 7  ;;  %447 = vst.msk [vmem:[#allocation2] sm:$0x1] (!%p331_p10), %vm446_vm0, %v4399_v0  ;;  %448 = vst.msk [vmem:[#allocation2 + $0x18] sm:$0x1] (!%p331_p10), %vm446_vm0, %v4399_v0 }
  0x18   : > { %5745 = sst [smem:[#allocation14_spill]] %s4523_s19  ;;  %449 = vst.msk [vmem:[#allocation2 + $0x30] sm:$0x1] (!%p331_p10), %vm446_vm0, %v4399_v0  ;;  %450 = vst.msk [vmem:[#allocation2 + $0x48] sm:$0x1] (!%p331_p10), %vm446_vm0, %v4399_v0  ;;  %p396_p12 = scmp.lt.s32.totalorder (!%p331_p10), %s4385_s28, 1 }
  0x19   : > { %451 = vst.msk [vmem:[#allocation2 + $0x60] sm:$0x1] (!%p331_p10), %vm446_vm0, %v4399_v0  ;;  %452 = vst.msk [vmem:[#allocation2 + $0x78] sm:$0x1] (!%p331_p10), %vm446_vm0, %v4399_v0  ;;  %p398_p13 = scmp.lt.s32.totalorder (!%p331_p10), %s3620_s21, 15  ;;  %s3624_s10 = sshll.u32 (!%p331_p10), %s4381_s27, 2 }
  0x1a   : > { %453 = vst.msk [vmem:[#allocation2 + $0x90] sm:$0x1] (!%p331_p10), %vm446_vm0, %v4399_v0  ;;  %454 = vst.msk [vmem:[#allocation2 + $0xa8] sm:$0x1] (!%p331_p10), %vm446_vm0, %v4399_v0  ;;  %s3625_s16 = sadd.s32 (!%p331_p10), 4294967295, %s3624_s10  ;;  %s3740_s20 = sadd.s32 (!%p331_p10), 4, %s3624_s10 }
  0x1b   : > { %455 = vst.msk [vmem:[#allocation2 + $0xc0] sm:$0x1] (!%p331_p10), %vm446_vm0, %v4399_v0  ;;  %456 = vst.msk [vmem:[#allocation2 + $0xd8] sm:$0x1] (!%p331_p10), %vm446_vm0, %v4399_v0  ;;  %p408_p0 = scmp.gt.s32.totalorder (!%p331_p10), %s3625_s16, 0  ;;  %s5746_s0 = sld [smem:[#allocation15_spill]] (!%p331_p10) }
  0x1c   : > { %457 = vst.msk [vmem:[#allocation2 + $0xf0] sm:$0x1] (!%p331_p10), %vm446_vm0, %v4399_v0  ;;  %458 = vst.msk [vmem:[#allocation2 + $0x108] sm:$0x1] (!%p331_p10), %vm446_vm0, %v4399_v0  ;;  %p427_p1 = scmp.lt.s32.totalorder (!%p331_p10), %s3740_s20, 7  ;;  %s4635_s26 = scalar_lea.vmem (!%p331_p10), [#allocation6], %s4529_s22 }
  0x1d   : > { %459 = vst.msk [vmem:[#allocation2 + $0x11] sm:$0x1] (!%p331_p10), %vm446_vm0, %v4399_v0  ;;  %460 = vst.msk [vmem:[#allocation2 + $0x29] sm:$0x1] (!%p331_p10), %vm446_vm0, %v4399_v0  ;;  %p3635_p5 = scmp.le.s32.totalorder (!%p331_p10), %s4381_s27, 0 }
  0x1e   : > { %461 = vst.msk [vmem:[#allocation2 + $0x41] sm:$0x1] %vm446_vm0, %v4399_v0  ;;  %462 = vst.msk [vmem:[#allocation2 + $0x59] sm:$0x1] %vm446_vm0, %v4399_v0  ;;  %s397_s23 = scalar_select %p396_p12, %s4385_s28, 1 }
  0x1f   : > { %463 = vst.msk [vmem:[#allocation2 + $0x71] sm:$0x1] %vm446_vm0, %v4399_v0  ;;  %464 = vst.msk [vmem:[#allocation2 + $0x89] sm:$0x1] %vm446_vm0, %v4399_v0  ;;  %s5765_s21 = smov (!%p398_p13, %s3620_s21), 15  ;;  %s5767_s16 = smov (!%p408_p0, %s3625_s16), 0 }
  0x20   : > { %465 = vst.msk [vmem:[#allocation2 + $0xa1] sm:$0x1] %vm446_vm0, %v4399_v0  ;;  %466 = vst.msk [vmem:[#allocation2 + $0xb9] sm:$0x1] %vm446_vm0, %v4399_v0  ;;  %s4585_s9 = sshll.u32 %s397_s23, 5  ;;  %s3621_s13 = sshll.u32 %s5765_s21, 1 }
  0x21   : > { %467 = vst.msk [vmem:[#allocation2 + $0xd1] sm:$0x1] %vm446_vm0, %v4399_v0  ;;  %468 = vst.msk [vmem:[#allocation2 + $0xe9] sm:$0x1] %vm446_vm0, %v4399_v0  ;;  %s402_s17 = sadd.s32 %s4585_s9, %s3621_s13  ;;  %s5769_s20 = smov (!%p427_p1, %s3740_s20), 7 }
  0x22   : > { %469 = vst.msk [vmem:[#allocation2 + $0x101] sm:$0x1] %vm446_vm0, %v4399_v0  ;;  %470 = vst.msk [vmem:[#allocation2 + $0x119] sm:$0x1] %vm446_vm0, %v4399_v0  ;;  %s3623_s18 = sshll.u32 %s402_s17, 2  ;;  %s3626_s11 = sshll.u32 %s5767_s16, 1 }
  0x23   : > { %s404_s30 = scalar_lea.vmem %s5746_s0, %s3623_s18  ;;  %p4597_p2 = scmp.lt.s32.totalorder %s3626_s11, 15 }
  0x24   : > { %v3743_v1 = vld [vmem:[%s404_s30] sm:$0xff]   ;;  %v3790_v2 = vld [vmem:[%s404_s30 + $0x8] sm:$0xff]   ;;  %v3791_v3 = vld [vmem:[%s404_s30 + $0x10] sm:$0xff]   ;;  %s3631_s21 = sshll.u32 %s5769_s20, 1 }
  0x25   : > { %v3744_v4 = vunpack.c.l.bf16 %v3743_v1  ;;  %v3745_v5 = vunpack.c.h.bf16 %v3743_v1  ;;  %v3748_v6 = vunpack.c.l.bf16 %v3790_v2  ;;  %v3749_v7 = vunpack.c.h.bf16 %v3790_v2  ;;  %v3792_v8 = vld [vmem:[%s404_s30 + $0x18] sm:$0xff]   ;;  %v3793_v9 = vld [vmem:[%s404_s30 + $0x20] sm:$0xff]   ;;  %v3794_v10 = vld [vmem:[%s404_s30 + $0x28] sm:$0xff]   ;;  %p4606_p4 = scmp.lt.s32.totalorder %s3631_s21, 15  ;;  %s5771_s11 = smov (!%p4597_p2, %s3626_s11), 15 }
  0x26   : > { %v3752_v11 = vunpack.c.l.bf16 %v3791_v3  ;;  %v3753_v12 = vunpack.c.h.bf16 %v3791_v3  ;;  %v3756_v13 = vunpack.c.l.bf16 %v3792_v8  ;;  %v3757_v14 = vunpack.c.h.bf16 %v3792_v8  ;;  %v3795_v15 = vld [vmem:[%s404_s30 + $0x30] sm:$0xff]   ;;  %v3796_v16 = vld [vmem:[%s404_s30 + $0x38] sm:$0xff]   ;;  %s3627_s20 = sshll.u32 %s5771_s11, 1 }
  0x27   : > { %505 = vst.msk [vmem:[#allocation2 + $0x31] sm:$0xff] %vm504_vm1, %v3744_v4  ;;  %506 = vst.msk [vmem:[#allocation2 + $0x39] sm:$0xff] %vm504_vm1, %v3745_v5  ;;  %v3760_v17 = vunpack.c.l.bf16 %v3793_v9  ;;  %v3761_v18 = vunpack.c.h.bf16 %v3793_v9  ;;  %v3764_v19 = vunpack.c.l.bf16 %v3794_v10  ;;  %v3765_v20 = vunpack.c.h.bf16 %v3794_v10  ;;  %s5773_s21 = smov (!%p4606_p4, %s3631_s21), 15  ;;  %s417_s23 = sadd.s32 %s3627_s20, %s4585_s9 }
  0x28   : > { %507 = vst.msk [vmem:[#allocation2 + $0x49] sm:$0xff] %vm504_vm1, %v3748_v6  ;;  %508 = vst.msk [vmem:[#allocation2 + $0x51] sm:$0xff] %vm504_vm1, %v3749_v7  ;;  %v3768_v21 = vunpack.c.l.bf16 %v3795_v15  ;;  %v3769_v22 = vunpack.c.h.bf16 %v3795_v15  ;;  %v3772_v23 = vunpack.c.l.bf16 %v3796_v16  ;;  %v3773_v24 = vunpack.c.h.bf16 %v3796_v16  ;;  %s3632_s10 = sshll.u32 %s5773_s21, 1  ;;  %s3629_s13 = sshll.u32 %s417_s23, 2 }
  0x29   : > { %509 = vst.msk [vmem:[#allocation2 + $0x61] sm:$0xff] %vm504_vm1, %v3752_v11  ;;  %510 = vst.msk [vmem:[#allocation2 + $0x69] sm:$0xff] %vm504_vm1, %v3753_v12  ;;  %s436_s16 = sadd.s32 %s3632_s10, %s4585_s9  ;;  %s419_s12 = scalar_lea.vmem %s5724_s1, %s3629_s13 }
  0x2a   : > { %511 = vst.msk [vmem:[#allocation2 + $0x79] sm:$0xff] %vm504_vm1, %v3756_v13  ;;  %512 = vst.msk [vmem:[#allocation2 + $0x81] sm:$0xff] %vm504_vm1, %v3757_v14  ;;  %s3634_s0 = sshll.u32 %s436_s16, 2  ;;  %524 = sbr.rel (%p3635_p5) target bundleno = 49 (0x31), region = 52  ;;  %v3775_v25 = vld [vmem:[%s419_s12] sm:$0xff] (!%p3635_p5)   ;;  %v3797_v26 = vld [vmem:[%s419_s12 + $0x8] sm:$0xff] (!%p3635_p5)  }
  0x2b   : > { %513 = vst.msk [vmem:[#allocation2 + $0x91] sm:$0xff] %vm504_vm1, %v3760_v17  ;;  %514 = vst.msk [vmem:[#allocation2 + $0x99] sm:$0xff] %vm504_vm1, %v3761_v18  ;;  %s438_s19 = scalar_lea.vmem %s5725_s2, %s3634_s0  ;;  %v3776_v27 = vunpack.c.l.bf16 (!%p3635_p5), %v3775_v25  ;;  %v3777_v28 = vunpack.c.h.bf16 (!%p3635_p5), %v3775_v25  ;;  %v3780_v29 = vunpack.c.l.bf16 (!%p3635_p5), %v3797_v26  ;;  %v3781_v30 = vunpack.c.h.bf16 (!%p3635_p5), %v3797_v26 }
  0x2c   : > { %515 = vst.msk [vmem:[#allocation2 + $0xa9] sm:$0xff] %vm504_vm1, %v3764_v19  ;;  %516 = vst.msk [vmem:[#allocation2 + $0xb1] sm:$0xff] %vm504_vm1, %v3765_v20 }
  0x2d   : > { %517 = vst.msk [vmem:[#allocation2 + $0xc1] sm:$0xff] %vm504_vm1, %v3768_v21  ;;  %518 = vst.msk [vmem:[#allocation2 + $0xc9] sm:$0xff] %vm504_vm1, %v3769_v22 }
  0x2e   : > { %519 = vst.msk [vmem:[#allocation2 + $0xd9] sm:$0xff] %vm504_vm1, %v3772_v23  ;;  %520 = vst.msk [vmem:[#allocation2 + $0xe1] sm:$0xff] %vm504_vm1, %v3773_v24 }
  0x2f   : > { %533 = vst.msk [vmem:[#allocation2 + $0x1] sm:$0xff] (!%p3635_p5), %vm504_vm1, %v3776_v27  ;;  %534 = vst.msk [vmem:[#allocation2 + $0x9] sm:$0xff] (!%p3635_p5), %vm504_vm1, %v3777_v28 }
  0x30   : > { %535 = vst.msk [vmem:[#allocation2 + $0x19] sm:$0xff] (!%p3635_p5), %vm504_vm1, %v3780_v29  ;;  %536 = vst.msk [vmem:[#allocation2 + $0x21] sm:$0xff] (!%p3635_p5), %vm504_vm1, %v3781_v30 }
  0x31 PF: > { %p3636_p6 = scmp.ne.s32.totalorder %s4381_s27, 0 }
  0x32   : > { %v4400_v31 = vmov (!%p3636_p6), 0.0  }
  0x33   : > { %540 = sbr.rel (%p3636_p6) target bundleno = 58 (0x3a), region = 56  ;;  %541 = vst.msk [vmem:[#allocation2 + $0x1] sm:$0xff] (!%p3636_p6), %vm504_vm1, %v4400_v31  ;;  %542 = vst.msk [vmem:[#allocation2 + $0x9] sm:$0xff] (!%p3636_p6), %vm504_vm1, %v4400_v31 }
  0x34   : > { %543 = vst.msk [vmem:[#allocation2 + $0x19] sm:$0xff] (!%p3636_p6), %vm504_vm1, %v4400_v31  ;;  %544 = vst.msk [vmem:[#allocation2 + $0x21] sm:$0xff] (!%p3636_p6), %vm504_vm1, %v4400_v31 }
  0x3a PF: > { %p3637_p7 = scmp.ge.s32.totalorder %s4381_s27, 1 }
  0x3b   : > { %v3783_v32 = vld [vmem:[%s438_s19] sm:$0xff] (!%p3637_p7)   ;;  %v3798_v33 = vld [vmem:[%s438_s19 + $0x8] sm:$0xff] (!%p3637_p7)  }
  0x3c   : > { %548 = sbr.rel (%p3637_p7) target bundleno = 67 (0x43), region = 60  ;;  %v3784_v34 = vunpack.c.l.bf16 (!%p3637_p7), %v3783_v32  ;;  %v3785_v35 = vunpack.c.h.bf16 (!%p3637_p7), %v3783_v32  ;;  %v3788_v36 = vunpack.c.l.bf16 (!%p3637_p7), %v3798_v33  ;;  %v3789_v37 = vunpack.c.h.bf16 (!%p3637_p7), %v3798_v33 }
  0x3e   : > { %558 = vst.msk [vmem:[#allocation2 + $0xf1] sm:$0xff] (!%p3637_p7), %vm504_vm1, %v3784_v34  ;;  %559 = vst.msk [vmem:[#allocation2 + $0xf9] sm:$0xff] (!%p3637_p7), %vm504_vm1, %v3785_v35 }
  0x3f   : > { %560 = vst.msk [vmem:[#allocation2 + $0x109] sm:$0xff] (!%p3637_p7), %vm504_vm1, %v3788_v36  ;;  %561 = vst.msk [vmem:[#allocation2 + $0x111] sm:$0xff] (!%p3637_p7), %vm504_vm1, %v3789_v37 }
  0x43 PF: > { %p3638_p9 = scmp.ne.s32.totalorder %s4381_s27, 1 }
  0x44   : > { %v4401_v38 = vmov (!%p3638_p9), 0.0  }
  0x45   : > { %565 = sbr.rel (%p3638_p9) target bundleno = 76 (0x4c), region = 64  ;;  %567 = vst.msk [vmem:[#allocation2 + $0xf1] sm:$0xff] (!%p3638_p9), %vm504_vm1, %v4401_v38  ;;  %568 = vst.msk [vmem:[#allocation2 + $0xf9] sm:$0xff] (!%p3638_p9), %vm504_vm1, %v4401_v38 }
  0x46   : > { %569 = vst.msk [vmem:[#allocation2 + $0x109] sm:$0xff] (!%p3638_p9), %vm504_vm1, %v4401_v38  ;;  %570 = vst.msk [vmem:[#allocation2 + $0x111] sm:$0xff] (!%p3638_p9), %vm504_vm1, %v4401_v38 }
  0x4c PF: > { %v4661_v39 = vld [vmem:[#allocation2 + $0x19] sm:$0xff]  ;;  %v611_v40 = vld [vmem:[#allocation2 + $0x1] sm:$0xff]  ;;  %1825 = vst [vmem:[#allocation4] sm:$0x1] %v4399_v0  ;;  %1826 = vst [vmem:[#allocation4 + $0x18] sm:$0x1] %v4399_v0 }
  0x4d   : > { %1827 = vst [vmem:[#allocation4 + $0x30] sm:$0x1] %v4399_v0  ;;  %1828 = vst [vmem:[#allocation4 + $0x48] sm:$0x1] %v4399_v0  ;;  %s4402_s0 = smov 4   ;;  %v614_v41 = vld [vmem:[#allocation2 + $0x21] sm:$0xff] }
  0x4e   : > { %1829 = vst [vmem:[#allocation4 + $0x60] sm:$0x1] %v4399_v0  ;;  %1830 = vst [vmem:[#allocation4 + $0x78] sm:$0x1] %v4399_v0  ;;  %655 = vrot.lane.b32.xlu1 %v4661_v39, %s4402_s0  ;;  %651 = vrot.lane.b32.xlu0 %v611_v40, %s4402_s0  ;;  %v612_v42 = vld [vmem:[#allocation2 + $0x9] sm:$0xff]  ;;  %v855_v43 = vld [vmem:[#allocation2 + $0x20] sm:$0xff] }
  0x4f   : > { %1831 = vst [vmem:[#allocation4 + $0x90] sm:$0x1] %v4399_v0  ;;  %1832 = vst [vmem:[#allocation4 + $0xa8] sm:$0x1] %v4399_v0  ;;  %v854_v44 = vld [vmem:[#allocation2 + $0x18] sm:$0xff]  ;;  %v856_v46 = vld [vmem:[#allocation2 + $0x30] sm:$0xff] }
  0x50   : > { %1833 = vst [vmem:[#allocation4 + $0xc0] sm:$0x1] %v4399_v0  ;;  %1834 = vst [vmem:[#allocation4 + $0xd8] sm:$0x1] %v4399_v0  ;;  %v857_v45 = vld [vmem:[#allocation2 + $0x38] sm:$0xff]  ;;  %v4692_v47 = vld [vmem:[#allocation2 + $0x50] sm:$0xff] }
  0x51   : > { %1835 = vst [vmem:[#allocation4 + $0x11] sm:$0x1] %v4399_v0  ;;  %1836 = vst [vmem:[#allocation4 + $0x29] sm:$0x1] %v4399_v0  ;;  %v4694_v48 = vld [vmem:[#allocation2 + $0x48] sm:$0xff]  ;;  %v4702_v52 = vld [vmem:[#allocation2 + $0x60] sm:$0xff] }
  0x52   : > { %1837 = vst [vmem:[#allocation4 + $0x41] sm:$0x1] %v4399_v0  ;;  %1838 = vst [vmem:[#allocation4 + $0x59] sm:$0x1] %v4399_v0  ;;  %657 = vrot.lane.b32.xlu1 %v614_v41, %s4402_s0  ;;  %653 = vrot.lane.b32.xlu0 %v612_v42, %s4402_s0  ;;  %v733_v49 = vld [vmem:[#allocation2 + $0xa] sm:$0xff]  ;;  %v732_v50 = vld [vmem:[#allocation2 + $0x2] sm:$0xff] }
  0x53   : > { %1839 = vst [vmem:[#allocation4 + $0x71] sm:$0x1] %v4399_v0  ;;  %1840 = vst [vmem:[#allocation4 + $0x89] sm:$0x1] %v4399_v0  ;;  %v4700_v51 = vld [vmem:[#allocation2 + $0x68] sm:$0xff]  ;;  %s4403_s29 = smov 8  }
  0x54   : > { %1841 = vst [vmem:[#allocation4 + $0xa1] sm:$0x1] %v4399_v0  ;;  %1842 = vst [vmem:[#allocation4 + $0xb9] sm:$0x1] %v4399_v0  ;;  %v4710_v53 = vld [vmem:[#allocation2 + $0x80] sm:$0xff]  ;;  %v4712_v54 = vld [vmem:[#allocation2 + $0x78] sm:$0xff] }
  0x55   : > { %1843 = vst [vmem:[#allocation4 + $0xd1] sm:$0x1] %v4399_v0  ;;  %1844 = vst [vmem:[#allocation4 + $0xe9] sm:$0x1] %v4399_v0  ;;  %v735_v55 = vld [vmem:[#allocation2 + $0x22] sm:$0xff]  ;;  %v734_v56 = vld [vmem:[#allocation2 + $0x1a] sm:$0xff] }
  0x56   : > { %594 = vst.msk [vmem:[#allocation3 + $0x18] sm:$0xff] %vm504_vm1, %v855_v43  ;;  %593 = vst.msk [vmem:[#allocation3 + $0x10] sm:$0xff] %vm504_vm1, %v854_v44  ;;  %774 = vrot.lane.b32.xlu1 %v733_v49, %s4403_s29  ;;  %772 = vrot.lane.b32.xlu0 %v732_v50, %s4403_s29  ;;  %v571_v57 = vld [vmem:[#allocation2] sm:$0xff]  ;;  %v572_v58 = vld [vmem:[#allocation2 + $0x8] sm:$0xff]  ;;  %s4404_s19 = smov 12   ;;  %s4405_s22 = smov 16  }
  0x57   : > { %596 = vst.msk [vmem:[#allocation3 + $0x28] sm:$0xff] %vm504_vm1, %v857_v45  ;;  %595 = vst.msk [vmem:[#allocation3 + $0x20] sm:$0xff] %vm504_vm1, %v856_v46  ;;  %v4724_v59 = vld [vmem:[#allocation2 + $0x98] sm:$0xff]  ;;  %v4726_v60 = vld [vmem:[#allocation2 + $0x90] sm:$0xff]  ;;  %s4406_s9 = smov 20   ;;  %s4407_s11 = smov 24  }
  0x58   : > { %598 = vst.msk [vmem:[#allocation3 + $0x38] sm:$0xff] %vm504_vm1, %v4692_v47  ;;  %597 = vst.msk [vmem:[#allocation3 + $0x30] sm:$0xff] %vm504_vm1, %v4694_v48  ;;  %v978_v61 = vld [vmem:[#allocation2 + $0x39] sm:$0xff]  ;;  %v977_v62 = vld [vmem:[#allocation2 + $0x31] sm:$0xff]  ;;  %s4408_s23 = smov 28   ;;  %s4409_s18 = smov 32  }
  0x59   : > { %600 = vst.msk [vmem:[#allocation3 + $0x48] sm:$0xff] %vm504_vm1, %v4700_v51  ;;  %599 = vst.msk [vmem:[#allocation3 + $0x40] sm:$0xff] %vm504_vm1, %v4702_v52  ;;  %v1099_v63 = vld [vmem:[#allocation2 + $0x3a] sm:$0xff]  ;;  %v1098_v0 = vld [vmem:[#allocation2 + $0x32] sm:$0xff]  ;;  %vm1668_vm2 = vcmask 1041408   ;;  %vm711_vm3 = vcmask 64544  }
  0x5a   : > { %602 = vst.msk [vmem:[#allocation3 + $0x58] sm:$0xff] %vm504_vm1, %v4710_v53  ;;  %601 = vst.msk [vmem:[#allocation3 + $0x50] sm:$0xff] %vm504_vm1, %v4712_v54  ;;  %778 = vrot.lane.b32.xlu1 %v735_v55, %s4403_s29  ;;  %776 = vrot.lane.b32.xlu0 %v734_v56, %s4403_s29  ;;  %v4745_v1 = vld [vmem:[#allocation2 + $0xb0] sm:$0xff]  ;;  %v4747_v2 = vld [vmem:[#allocation2 + $0xa8] sm:$0xff]  ;;  %vm832_vm4 = vcmask 97344   ;;  %vm954_vm5 = vcmask 130144  }
  0x5b   : > { %591 = vst.msk [vmem:[#allocation3] sm:$0xff] %vm504_vm1, %v571_v57  ;;  %592 = vst.msk [vmem:[#allocation3 + $0x8] sm:$0xff] %vm504_vm1, %v572_v58  ;;  %v4228_v3 = vld [vmem:[%s5726_s3] sm:$0xff]   ;;  %v1341_v4 = vld [vmem:[#allocation2 + $0x51] sm:$0xff]  ;;  %vm1075_vm6 = vcmask 162944   ;;  %vm1196_vm7 = vcmask 195744  }
  0x5c   : > { %604 = vst.msk [vmem:[#allocation3 + $0x68] sm:$0xff] %vm504_vm1, %v4724_v59  ;;  %603 = vst.msk [vmem:[#allocation3 + $0x60] sm:$0xff] %vm504_vm1, %v4726_v60  ;;  %v1340_v5 = vld [vmem:[#allocation2 + $0x49] sm:$0xff]  ;;  %4084 = vmatprep.subr.bf16.mxu0 %v4228_v3  ;;  %v1462_v9 = vld [vmem:[#allocation2 + $0x52] sm:$0xff]  ;;  %vm1317_vm8 = vcmask 228544   ;;  %vm1438_vm9 = vcmask 261344  }
  0x5d   : > { %606 = vst.msk [vmem:[#allocation3 + $0x78] sm:$0xff] %vm504_vm1, %v4745_v1  ;;  %605 = vst.msk [vmem:[#allocation3 + $0x70] sm:$0xff] %vm504_vm1, %v4747_v2  ;;  %4085 = vmatpush3.bf16.msra.mxu0 %v4228_v3  ;;  %v4229_v6 = vld [vmem:[%s5726_s3 + $0x8] sm:$0xff]   ;;  %v4230_v7 = vld [vmem:[%s5726_s3 + $0x10] ss:$0 sps:$4 sm:$0x33]  }
  0x5e   : > { %896 = vrot.lane.b32.xlu1 %v855_v43, %s4404_s19  ;;  %894 = vrot.lane.b32.xlu0 %v854_v44, %s4404_s19  ;;  %v1670_v8 = vsel %vm1668_vm2, %v4230_v7, 0  ;;  %v1461_v10 = vld [vmem:[#allocation2 + $0x4a] sm:$0xff]  ;;  %v4788_v12 = vld [vmem:[#allocation2 + $0xc0] sm:$0xff]  ;;  %v4812_v18 = vld [vmem:[#allocation2 + $0xd8] sm:$0xff]  ;;  %vm1559_vm10 = vcmask 294144   ;;  %vm1637_vm11 = vcmask 293888  }
  0x5f   : > { %4086 = vmatprep.subr.bf16.mxu0 %v4229_v6  ;;  %v4786_v11 = vld [vmem:[#allocation2 + $0xc8] sm:$0xff]  ;;  %607 = vst.msk [vmem:[#allocation3 + $0x80] sm:$0xff] %vm504_vm1, %v4788_v12  ;;  %v4810_v17 = vld [vmem:[#allocation2 + $0xe0] sm:$0xff]  ;;  %609 = vst.msk [vmem:[#allocation3 + $0x90] sm:$0xff] %vm504_vm1, %v4812_v18 }
  0x60   : > { %608 = vst.msk [vmem:[#allocation3 + $0x88] sm:$0xff] %vm504_vm1, %v4786_v11  ;;  %v982_v13 = vld [vmem:[#allocation2 + $0x69] sm:$0xff]  ;;  %v981_v14 = vld [vmem:[#allocation2 + $0x61] sm:$0xff]  ;;  %610 = vst.msk [vmem:[#allocation3 + $0x98] sm:$0xff] %vm504_vm1, %v4810_v17 }
  0x61   : > { %4087 = vmatpush3.bf16.msra.mxu0 %v4229_v6  ;;  %v1103_v15 = vld [vmem:[#allocation2 + $0x6a] sm:$0xff]  ;;  %v1102_v16 = vld [vmem:[#allocation2 + $0x62] sm:$0xff]  ;;  %v4826_v20 = vld [vmem:[#allocation2 + $0x79] sm:$0xff] }
  0x62   : > { %900 = vrot.lane.b32.xlu1 %v857_v45, %s4404_s19  ;;  %898 = vrot.lane.b32.xlu0 %v856_v46, %s4404_s19  ;;  %v4824_v19 = vld [vmem:[#allocation2 + $0x81] sm:$0xff]  ;;  %v4878_v43 = vld [vmem:[#allocation2 + $0x99] sm:$0xff]  ;;  %v4880_v44 = vld [vmem:[#allocation2 + $0x91] sm:$0xff] }
  0x63   : > { %4142 = vmatprep.subr.msk.bf16.mxu0 %vm1668_vm2, %v4230_v7  ;;  %v1466_v27 = vld [vmem:[#allocation2 + $0x82] sm:$0xff]  ;;  %v1465_v28 = vld [vmem:[#allocation2 + $0x7a] sm:$0xff]  ;;  %v4894_v50 = vld [vmem:[#allocation2 + $0x92] sm:$0xff] }
  0x64   : > { %v4892_v49 = vld [vmem:[#allocation2 + $0x9a] sm:$0xff] }
  0x65   : > { %4089 = vmatpush3.bf16.msra.mxu0 %v1670_v8 }
  0x66   : > { %1017 = vrot.lane.b32.xlu1 %v614_v41, %s4405_s22  ;;  %1015 = vrot.lane.b32.xlu0 %v4661_v39, %s4405_s22 }
  0x6a   : > { %1021 = vrot.lane.b32.xlu1 %v978_v61, %s4405_s22  ;;  %1019 = vrot.lane.b32.xlu0 %v977_v62, %s4405_s22 }
  0x6e   : > { %1138 = vrot.lane.b32.xlu1 %v735_v55, %s4406_s9  ;;  %1136 = vrot.lane.b32.xlu0 %v734_v56, %s4406_s9 }
  0x72   : > { %1142 = vrot.lane.b32.xlu1 %v1099_v63, %s4406_s9  ;;  %1140 = vrot.lane.b32.xlu0 %v1098_v0, %s4406_s9 }
  0x76   : > { %1259 = vrot.lane.b32.xlu1 %v857_v45, %s4407_s11  ;;  %1257 = vrot.lane.b32.xlu0 %v856_v46, %s4407_s11 }
  0x7a   : > { %1263 = vrot.lane.b32.xlu1 %v4692_v47, %s4407_s11  ;;  %1261 = vrot.lane.b32.xlu0 %v4694_v48, %s4407_s11 }
  0x7e   : > { %1380 = vrot.lane.b32.xlu1 %v978_v61, %s4408_s23  ;;  %1378 = vrot.lane.b32.xlu0 %v977_v62, %s4408_s23 }
  0x82   : > { %1384 = vrot.lane.b32.xlu1 %v1341_v4, %s4408_s23  ;;  %1382 = vrot.lane.b32.xlu0 %v1340_v5, %s4408_s23 }
  0x86   : > { %1501 = vrot.lane.b32.xlu1 %v1099_v63, %s4409_s18  ;;  %1499 = vrot.lane.b32.xlu0 %v1098_v0, %s4409_s18 }
  0x8a   : > { %661 = vrot.lane.b32.xlu1 %v978_v61, %s4402_s0  ;;  %659 = vrot.lane.b32.xlu0 %v977_v62, %s4402_s0 }
  0x8e   : > { %1505 = vrot.lane.b32.xlu1 %v1462_v9, %s4409_s18  ;;  %1503 = vrot.lane.b32.xlu0 %v1461_v10, %s4409_s18 }
  0x92   : > { %665 = vrot.lane.b32.xlu1 %v1341_v4, %s4402_s0  ;;  %663 = vrot.lane.b32.xlu0 %v1340_v5, %s4402_s0 }
  0x96   : > { %782 = vrot.lane.b32.xlu1 %v1099_v63, %s4403_s29  ;;  %780 = vrot.lane.b32.xlu0 %v1098_v0, %s4403_s29 }
  0x9a   : > { %786 = vrot.lane.b32.xlu1 %v1462_v9, %s4403_s29  ;;  %784 = vrot.lane.b32.xlu0 %v1461_v10, %s4403_s29 }
  0x9e   : > { %904 = vrot.lane.b32.xlu1 %v4692_v47, %s4404_s19  ;;  %902 = vrot.lane.b32.xlu0 %v4694_v48, %s4404_s19 }
  0xa2   : > { %908 = vrot.lane.b32.xlu1 %v4700_v51, %s4404_s19  ;;  %906 = vrot.lane.b32.xlu0 %v4702_v52, %s4404_s19 }
  0xa6   : > { %1025 = vrot.lane.b32.xlu1 %v1341_v4, %s4405_s22  ;;  %1023 = vrot.lane.b32.xlu0 %v1340_v5, %s4405_s22 }
  0xaa   : > { %1029 = vrot.lane.b32.xlu1 %v982_v13, %s4405_s22  ;;  %1027 = vrot.lane.b32.xlu0 %v981_v14, %s4405_s22 }
  0xae   : > { %1146 = vrot.lane.b32.xlu1 %v1462_v9, %s4406_s9  ;;  %1144 = vrot.lane.b32.xlu0 %v1461_v10, %s4406_s9 }
  0xb2   : > { %1150 = vrot.lane.b32.xlu1 %v1103_v15, %s4406_s9  ;;  %1148 = vrot.lane.b32.xlu0 %v1102_v16, %s4406_s9 }
  0xb6   : > { %1267 = vrot.lane.b32.xlu1 %v4700_v51, %s4407_s11  ;;  %1265 = vrot.lane.b32.xlu0 %v4702_v52, %s4407_s11 }
  0xba   : > { %1271 = vrot.lane.b32.xlu1 %v4710_v53, %s4407_s11  ;;  %1269 = vrot.lane.b32.xlu0 %v4712_v54, %s4407_s11 }
  0xbe   : > { %1388 = vrot.lane.b32.xlu1 %v982_v13, %s4408_s23  ;;  %1386 = vrot.lane.b32.xlu0 %v981_v14, %s4408_s23 }
  0xc0   : > { %v656_v21 = vpop.permute.xlu1 %655  ;;  %v652_v22 = vpop.permute.xlu0 %651 }
  0xc1   : > { %714 = vst.msk [vmem:[#allocation3 + $0x10] sm:$0xff] %vm711_vm3, %v656_v21  ;;  %712 = vst.msk [vmem:[#allocation3] sm:$0xff] %vm711_vm3, %v652_v22 }
  0xc2   : > { %1392 = vrot.lane.b32.xlu1 %v4824_v19, %s4408_s23  ;;  %1390 = vrot.lane.b32.xlu0 %v4826_v20, %s4408_s23 }
  0xc4   : > { %v658_v23 = vpop.permute.xlu1 %657  ;;  %v654_v24 = vpop.permute.xlu0 %653 }
  0xc5   : > { %715 = vst.msk [vmem:[#allocation3 + $0x18] sm:$0xff] %vm711_vm3, %v658_v23  ;;  %713 = vst.msk [vmem:[#allocation3 + $0x8] sm:$0xff] %vm711_vm3, %v654_v24 }
  0xc6   : > { %1509 = vrot.lane.b32.xlu1 %v1103_v15, %s4409_s18  ;;  %1507 = vrot.lane.b32.xlu0 %v1102_v16, %s4409_s18 }
  0xc8   : > { %v775_v25 = vpop.permute.xlu1 %774  ;;  %v773_v26 = vpop.permute.xlu0 %772 }
  0xc9   : > { %834 = vst.msk [vmem:[#allocation3 + $0x8] sm:$0xff] %vm832_vm4, %v775_v25  ;;  %833 = vst.msk [vmem:[#allocation3] sm:$0xff] %vm832_vm4, %v773_v26 }
  0xca   : > { %669 = vrot.lane.b32.xlu1 %v982_v13, %s4402_s0  ;;  %667 = vrot.lane.b32.xlu0 %v981_v14, %s4402_s0  ;;  %v1470_v13 = vld [vmem:[#allocation2 + $0xb2] sm:$0xff]  ;;  %v1469_v14 = vld [vmem:[#allocation2 + $0xaa] sm:$0xff] }
  0xcc   : > { %v779_v29 = vpop.permute.xlu1 %778  ;;  %v777_v30 = vpop.permute.xlu0 %776 }
  0xcd   : > { %836 = vst.msk [vmem:[#allocation3 + $0x18] sm:$0xff] %vm832_vm4, %v779_v29  ;;  %835 = vst.msk [vmem:[#allocation3 + $0x10] sm:$0xff] %vm832_vm4, %v777_v30 }
  0xce   : > { %1513 = vrot.lane.b32.xlu1 %v1466_v27, %s4409_s18  ;;  %1511 = vrot.lane.b32.xlu0 %v1465_v28, %s4409_s18 }
  0xd0   : > { %v897_v31 = vpop.permute.xlu1 %896  ;;  %v895_v32 = vpop.permute.xlu0 %894 }
  0xd1   : > { %956 = vst.msk [vmem:[#allocation3 + $0x8] sm:$0xff] %vm954_vm5, %v897_v31  ;;  %955 = vst.msk [vmem:[#allocation3] sm:$0xff] %vm954_vm5, %v895_v32 }
  0xd2   : > { %673 = vrot.lane.b32.xlu1 %v4824_v19, %s4402_s0  ;;  %671 = vrot.lane.b32.xlu0 %v4826_v20, %s4402_s0 }
  0xd4   : > { %v901_v33 = vpop.permute.xlu1 %900  ;;  %v899_v34 = vpop.permute.xlu0 %898 }
  0xd5   : > { %958 = vst.msk [vmem:[#allocation3 + $0x18] sm:$0xff] %vm954_vm5, %v901_v33  ;;  %957 = vst.msk [vmem:[#allocation3 + $0x10] sm:$0xff] %vm954_vm5, %v899_v34 }
  0xd6   : > { %790 = vrot.lane.b32.xlu1 %v1103_v15, %s4403_s29  ;;  %788 = vrot.lane.b32.xlu0 %v1102_v16, %s4403_s29 }
  0xd8   : > { %v1018_v35 = vpop.permute.xlu1 %1017  ;;  %v1016_v36 = vpop.permute.xlu0 %1015 }
  0xd9   : > { %1077 = vst.msk [vmem:[#allocation3 + $0x8] sm:$0xff] %vm1075_vm6, %v1018_v35  ;;  %1076 = vst.msk [vmem:[#allocation3] sm:$0xff] %vm1075_vm6, %v1016_v36  ;;  %v4996_v35 = vld [vmem:[#allocation2 + $0xca] sm:$0xff]  ;;  %v4998_v36 = vld [vmem:[#allocation2 + $0xc2] sm:$0xff] }
  0xda   : > { %794 = vrot.lane.b32.xlu1 %v1466_v27, %s4403_s29  ;;  %792 = vrot.lane.b32.xlu0 %v1465_v28, %s4403_s29 }
  0xdc   : > { %v1022_v37 = vpop.permute.xlu1 %1021  ;;  %v1020_v38 = vpop.permute.xlu0 %1019 }
  0xdd   : > { %1079 = vst.msk [vmem:[#allocation3 + $0x18] sm:$0xff] %vm1075_vm6, %v1022_v37  ;;  %1078 = vst.msk [vmem:[#allocation3 + $0x10] sm:$0xff] %vm1075_vm6, %v1020_v38 }
  0xde   : > { %912 = vrot.lane.b32.xlu1 %v4710_v53, %s4404_s19  ;;  %910 = vrot.lane.b32.xlu0 %v4712_v54, %s4404_s19 }
  0xe0   : > { %v1139_v39 = vpop.permute.xlu1 %1138  ;;  %v1137_v40 = vpop.permute.xlu0 %1136 }
  0xe1   : > { %1198 = vst.msk [vmem:[#allocation3 + $0x8] sm:$0xff] %vm1196_vm7, %v1139_v39  ;;  %1197 = vst.msk [vmem:[#allocation3] sm:$0xff] %vm1196_vm7, %v1137_v40 }
  0xe2   : > { %916 = vrot.lane.b32.xlu1 %v4724_v59, %s4404_s19  ;;  %914 = vrot.lane.b32.xlu0 %v4726_v60, %s4404_s19 }
  0xe4   : > { %v1143_v41 = vpop.permute.xlu1 %1142  ;;  %v1141_v42 = vpop.permute.xlu0 %1140 }
  0xe5   : > { %1200 = vst.msk [vmem:[#allocation3 + $0x18] sm:$0xff] %vm1196_vm7, %v1143_v41  ;;  %1199 = vst.msk [vmem:[#allocation3 + $0x10] sm:$0xff] %vm1196_vm7, %v1141_v42 }
  0xe6   : > { %1033 = vrot.lane.b32.xlu1 %v4824_v19, %s4405_s22  ;;  %1031 = vrot.lane.b32.xlu0 %v4826_v20, %s4405_s22 }
  0xe8   : > { %v1260_v45 = vpop.permute.xlu1 %1259  ;;  %v1258_v46 = vpop.permute.xlu0 %1257 }
  0xe9   : > { %1319 = vst.msk [vmem:[#allocation3 + $0x8] sm:$0xff] %vm1317_vm8, %v1260_v45  ;;  %1318 = vst.msk [vmem:[#allocation3] sm:$0xff] %vm1317_vm8, %v1258_v46 }
  0xea   : > { %1037 = vrot.lane.b32.xlu1 %v4878_v43, %s4405_s22  ;;  %1035 = vrot.lane.b32.xlu0 %v4880_v44, %s4405_s22 }
  0xec   : > { %v1264_v47 = vpop.permute.xlu1 %1263  ;;  %v1262_v48 = vpop.permute.xlu0 %1261 }
  0xed   : > { %1321 = vst.msk [vmem:[#allocation3 + $0x18] sm:$0xff] %vm1317_vm8, %v1264_v47  ;;  %1320 = vst.msk [vmem:[#allocation3 + $0x10] sm:$0xff] %vm1317_vm8, %v1262_v48 }
  0xee   : > { %1154 = vrot.lane.b32.xlu1 %v1466_v27, %s4406_s9  ;;  %1152 = vrot.lane.b32.xlu0 %v1465_v28, %s4406_s9 }
  0xf0   : > { %v1381_v51 = vpop.permute.xlu1 %1380  ;;  %v1379_v52 = vpop.permute.xlu0 %1378 }
  0xf1   : > { %1440 = vst.msk [vmem:[#allocation3 + $0x8] sm:$0xff] %vm1438_vm9, %v1381_v51  ;;  %1439 = vst.msk [vmem:[#allocation3] sm:$0xff] %vm1438_vm9, %v1379_v52 }
  0xf2   : > { %1158 = vrot.lane.b32.xlu1 %v4892_v49, %s4406_s9  ;;  %1156 = vrot.lane.b32.xlu0 %v4894_v50, %s4406_s9 }
  0xf4   : > { %v1385_v53 = vpop.permute.xlu1 %1384  ;;  %v1383_v54 = vpop.permute.xlu0 %1382 }
  0xf5   : > { %1442 = vst.msk [vmem:[#allocation3 + $0x18] sm:$0xff] %vm1438_vm9, %v1385_v53  ;;  %1441 = vst.msk [vmem:[#allocation3 + $0x10] sm:$0xff] %vm1438_vm9, %v1383_v54 }
  0xf6   : > { %1275 = vrot.lane.b32.xlu1 %v4724_v59, %s4407_s11  ;;  %1273 = vrot.lane.b32.xlu0 %v4726_v60, %s4407_s11  ;;  %v4920_v59 = vld [vmem:[#allocation2 + $0xb1] sm:$0xff]  ;;  %v4922_v60 = vld [vmem:[#allocation2 + $0xa9] sm:$0xff] }
  0xf8   : > { %v1502_v55 = vpop.permute.xlu1 %1501  ;;  %v1500_v56 = vpop.permute.xlu0 %1499 }
  0xf9   : > { %1561 = vst.msk [vmem:[#allocation3 + $0x8] sm:$0xff] %vm1559_vm10, %v1502_v55  ;;  %1560 = vst.msk [vmem:[#allocation3] sm:$0xff] %vm1559_vm10, %v1500_v56 }
  0xfa   : > { %1279 = vrot.lane.b32.xlu1 %v4745_v1, %s4407_s11  ;;  %1277 = vrot.lane.b32.xlu0 %v4747_v2, %s4407_s11 }
  0xfc   : > { %v662_v57 = vpop.permute.xlu1 %661  ;;  %v660_v58 = vpop.permute.xlu0 %659 }
  0xfd   : > { %717 = vst.msk [vmem:[#allocation3 + $0x28] sm:$0xff] %vm711_vm3, %v662_v57  ;;  %716 = vst.msk [vmem:[#allocation3 + $0x20] sm:$0xff] %vm711_vm3, %v660_v58  ;;  %v1474_v57 = vld [vmem:[#allocation2 + $0xe2] sm:$0xff]  ;;  %v1473_v58 = vld [vmem:[#allocation2 + $0xda] sm:$0xff] }
  0xfe   : > { %1396 = vrot.lane.b32.xlu1 %v4878_v43, %s4408_s23  ;;  %1394 = vrot.lane.b32.xlu0 %v4880_v44, %s4408_s23 }
 0x100   : > { %v1506_v61 = vpop.permute.xlu1 %1505  ;;  %v1504_v62 = vpop.permute.xlu0 %1503  ;;  %v1580_v63 = vld [vmem:[#allocation3] sm:$0xff]  ;;  %v1581_v0 = vld [vmem:[#allocation3 + $0x8] sm:$0xff] }
 0x101   : > { %1563 = vst.msk [vmem:[#allocation3 + $0x18] sm:$0xff] %vm1559_vm10, %v1506_v61  ;;  %1562 = vst.msk [vmem:[#allocation3 + $0x10] sm:$0xff] %vm1559_vm10, %v1504_v62  ;;  %v1600_v3 = vpack.c.bf16 %v1581_v0, %v1580_v63 }
 0x102   : > { %1400 = vrot.lane.b32.xlu1 %v4920_v59, %s4408_s23  ;;  %1398 = vrot.lane.b32.xlu0 %v4922_v60, %s4408_s23 }
 0x103   : > { %4090 = vmatprep.mubr.msk.bf16.mxu0 %vm1637_vm11, %v1600_v3 }
 0x104   : > { %v666_v4 = vpop.permute.xlu1 %665  ;;  %v664_v5 = vpop.permute.xlu0 %663 }
 0x105   : > { %719 = vst.msk [vmem:[#allocation3 + $0x38] sm:$0xff] %vm711_vm3, %v666_v4  ;;  %718 = vst.msk [vmem:[#allocation3 + $0x30] sm:$0xff] %vm711_vm3, %v664_v5 }
 0x106   : > { %1517 = vrot.lane.b32.xlu1 %v4892_v49, %s4409_s18  ;;  %1515 = vrot.lane.b32.xlu0 %v4894_v50, %s4409_s18 }
 0x108   : > { %v783_v6 = vpop.permute.xlu1 %782  ;;  %v781_v7 = vpop.permute.xlu0 %780  ;;  %v1582_v8 = vld [vmem:[#allocation3 + $0x10] sm:$0xff]  ;;  %v1583_v9 = vld [vmem:[#allocation3 + $0x18] sm:$0xff] }
 0x109   : > { %838 = vst.msk [vmem:[#allocation3 + $0x28] sm:$0xff] %vm832_vm4, %v783_v6  ;;  %837 = vst.msk [vmem:[#allocation3 + $0x20] sm:$0xff] %vm832_vm4, %v781_v7  ;;  %v1601_v10 = vpack.c.bf16 %v1583_v9, %v1582_v8  ;;  %v873_v7 = vld [vmem:[#allocation2 + $0xf8] sm:$0xff]  ;;  %v872_v8 = vld [vmem:[#allocation2 + $0xf0] sm:$0xff] }
 0x10a   : > { %677 = vrot.lane.b32.xlu1 %v4878_v43, %s4402_s0  ;;  %675 = vrot.lane.b32.xlu0 %v4880_v44, %s4402_s0 }
 0x10b   : > { %4091 = vmatmul.mubr.msk.bf16.vlgmr.msra.gmra.mrb[0].mxu0 %vm1637_vm11, %v1601_v10 }
 0x10c   : > { %v787_v15 = vpop.permute.xlu1 %786  ;;  %v785_v16 = vpop.permute.xlu0 %784 }
 0x10d   : > { %840 = vst.msk [vmem:[#allocation3 + $0x38] sm:$0xff] %vm832_vm4, %v787_v15  ;;  %839 = vst.msk [vmem:[#allocation3 + $0x30] sm:$0xff] %vm832_vm4, %v785_v16 }
 0x10e   : > { %1521 = vrot.lane.b32.xlu1 %v1470_v13, %s4409_s18  ;;  %1519 = vrot.lane.b32.xlu0 %v1469_v14, %s4409_s18 }
 0x110   : > { %v905_v19 = vpop.permute.xlu1 %904  ;;  %v903_v20 = vpop.permute.xlu0 %902 }
 0x111   : > { %960 = vst.msk [vmem:[#allocation3 + $0x28] sm:$0xff] %vm954_vm5, %v905_v19  ;;  %959 = vst.msk [vmem:[#allocation3 + $0x20] sm:$0xff] %vm954_vm5, %v903_v20 }
 0x112   : > { %681 = vrot.lane.b32.xlu1 %v4920_v59, %s4402_s0  ;;  %679 = vrot.lane.b32.xlu0 %v4922_v60, %s4402_s0 }
 0x114   : > { %v909_v21 = vpop.permute.xlu1 %908  ;;  %v907_v22 = vpop.permute.xlu0 %906 }
 0x115   : > { %962 = vst.msk [vmem:[#allocation3 + $0x38] sm:$0xff] %vm954_vm5, %v909_v21  ;;  %961 = vst.msk [vmem:[#allocation3 + $0x30] sm:$0xff] %vm954_vm5, %v907_v22  ;;  %v1115_v21 = vld [vmem:[#allocation2 + $0xfa] sm:$0xff]  ;;  %v1114_v22 = vld [vmem:[#allocation2 + $0xf2] sm:$0xff] }
 0x116   : > { %798 = vrot.lane.b32.xlu1 %v4892_v49, %s4403_s29  ;;  %796 = vrot.lane.b32.xlu0 %v4894_v50, %s4403_s29 }
 0x118   : > { %v1026_v23 = vpop.permute.xlu1 %1025  ;;  %v1024_v24 = vpop.permute.xlu0 %1023 }
 0x119   : > { %1081 = vst.msk [vmem:[#allocation3 + $0x28] sm:$0xff] %vm1075_vm6, %v1026_v23  ;;  %1080 = vst.msk [vmem:[#allocation3 + $0x20] sm:$0xff] %vm1075_vm6, %v1024_v24 }
 0x11a   : > { %802 = vrot.lane.b32.xlu1 %v1470_v13, %s4403_s29  ;;  %800 = vrot.lane.b32.xlu0 %v1469_v14, %s4403_s29 }
 0x11c   : > { %v1030_v25 = vpop.permute.xlu1 %1029  ;;  %v1028_v26 = vpop.permute.xlu0 %1027 }
 0x11d   : > { %1083 = vst.msk [vmem:[#allocation3 + $0x38] sm:$0xff] %vm1075_vm6, %v1030_v25  ;;  %1082 = vst.msk [vmem:[#allocation3 + $0x30] sm:$0xff] %vm1075_vm6, %v1028_v26 }
 0x11e   : > { %920 = vrot.lane.b32.xlu1 %v4745_v1, %s4404_s19  ;;  %918 = vrot.lane.b32.xlu0 %v4747_v2, %s4404_s19  ;;  %v4982_v1 = vld [vmem:[#allocation2 + $0xc9] sm:$0xff]  ;;  %v4984_v2 = vld [vmem:[#allocation2 + $0xc1] sm:$0xff] }
 0x120   : > { %v1147_v27 = vpop.permute.xlu1 %1146  ;;  %v1145_v28 = vpop.permute.xlu0 %1144 }
 0x121   : > { %1202 = vst.msk [vmem:[#allocation3 + $0x28] sm:$0xff] %vm1196_vm7, %v1147_v27  ;;  %1201 = vst.msk [vmem:[#allocation3 + $0x20] sm:$0xff] %vm1196_vm7, %v1145_v28  ;;  %v1236_v27 = vld [vmem:[#allocation2 + $0x110] sm:$0xff]  ;;  %v1235_v28 = vld [vmem:[#allocation2 + $0x108] sm:$0xff] }
 0x122   : > { %924 = vrot.lane.b32.xlu1 %v4786_v11, %s4404_s19  ;;  %922 = vrot.lane.b32.xlu0 %v4788_v12, %s4404_s19 }
 0x124   : > { %v1151_v29 = vpop.permute.xlu1 %1150  ;;  %v1149_v30 = vpop.permute.xlu0 %1148 }
 0x125   : > { %1204 = vst.msk [vmem:[#allocation3 + $0x38] sm:$0xff] %vm1196_vm7, %v1151_v29  ;;  %1203 = vst.msk [vmem:[#allocation3 + $0x30] sm:$0xff] %vm1196_vm7, %v1149_v30 }
 0x126   : > { %1041 = vrot.lane.b32.xlu1 %v4920_v59, %s4405_s22  ;;  %1039 = vrot.lane.b32.xlu0 %v4922_v60, %s4405_s22 }
 0x128   : > { %v1268_v31 = vpop.permute.xlu1 %1267  ;;  %v1266_v32 = vpop.permute.xlu0 %1265 }
 0x129   : > { %1323 = vst.msk [vmem:[#allocation3 + $0x28] sm:$0xff] %vm1317_vm8, %v1268_v31  ;;  %1322 = vst.msk [vmem:[#allocation3 + $0x20] sm:$0xff] %vm1317_vm8, %v1266_v32  ;;  %v1357_v31 = vld [vmem:[#allocation2 + $0x111] sm:$0xff]  ;;  %v1356_v32 = vld [vmem:[#allocation2 + $0x109] sm:$0xff] }
 0x12a   : > { %1045 = vrot.lane.b32.xlu1 %v4982_v1, %s4405_s22  ;;  %1043 = vrot.lane.b32.xlu0 %v4984_v2, %s4405_s22 }
 0x12c   : > { %v1272_v33 = vpop.permute.xlu1 %1271  ;;  %v1270_v34 = vpop.permute.xlu0 %1269 }
 0x12d   : > { %1325 = vst.msk [vmem:[#allocation3 + $0x38] sm:$0xff] %vm1317_vm8, %v1272_v33  ;;  %1324 = vst.msk [vmem:[#allocation3 + $0x30] sm:$0xff] %vm1317_vm8, %v1270_v34 }
 0x12e   : > { %1162 = vrot.lane.b32.xlu1 %v1470_v13, %s4406_s9  ;;  %1160 = vrot.lane.b32.xlu0 %v1469_v14, %s4406_s9 }
 0x130   : > { %v1389_v37 = vpop.permute.xlu1 %1388  ;;  %v1387_v38 = vpop.permute.xlu0 %1386 }
 0x131   : > { %1444 = vst.msk [vmem:[#allocation3 + $0x28] sm:$0xff] %vm1438_vm9, %v1389_v37  ;;  %1443 = vst.msk [vmem:[#allocation3 + $0x20] sm:$0xff] %vm1438_vm9, %v1387_v38 }
 0x132   : > { %1166 = vrot.lane.b32.xlu1 %v4996_v35, %s4406_s9  ;;  %1164 = vrot.lane.b32.xlu0 %v4998_v36, %s4406_s9 }
 0x134   : > { %v1393_v39 = vpop.permute.xlu1 %1392  ;;  %v1391_v40 = vpop.permute.xlu0 %1390 }
 0x135   : > { %1446 = vst.msk [vmem:[#allocation3 + $0x38] sm:$0xff] %vm1438_vm9, %v1393_v39  ;;  %1445 = vst.msk [vmem:[#allocation3 + $0x30] sm:$0xff] %vm1438_vm9, %v1391_v40  ;;  %v1478_v40 = vld [vmem:[#allocation2 + $0x112] sm:$0xff] }
 0x136   : > { %1283 = vrot.lane.b32.xlu1 %v4786_v11, %s4407_s11  ;;  %1281 = vrot.lane.b32.xlu0 %v4788_v12, %s4407_s11  ;;  %v5024_v11 = vld [vmem:[#allocation2 + $0xe1] sm:$0xff]  ;;  %v5026_v12 = vld [vmem:[#allocation2 + $0xd9] sm:$0xff] }
 0x138   : > { %v1510_v41 = vpop.permute.xlu1 %1509  ;;  %v1508_v42 = vpop.permute.xlu0 %1507 }
 0x139   : > { %1565 = vst.msk [vmem:[#allocation3 + $0x28] sm:$0xff] %vm1559_vm10, %v1510_v41  ;;  %1564 = vst.msk [vmem:[#allocation3 + $0x20] sm:$0xff] %vm1559_vm10, %v1508_v42  ;;  %v1477_v41 = vld [vmem:[#allocation2 + $0x10a] sm:$0xff] }
 0x13a   : > { %1287 = vrot.lane.b32.xlu1 %v4810_v17, %s4407_s11  ;;  %1285 = vrot.lane.b32.xlu0 %v4812_v18, %s4407_s11 }
 0x13c   : > { %v670_v43 = vpop.permute.xlu1 %669  ;;  %v668_v44 = vpop.permute.xlu0 %667 }
 0x13d   : > { %721 = vst.msk [vmem:[#allocation3 + $0x48] sm:$0xff] %vm711_vm3, %v670_v43  ;;  %720 = vst.msk [vmem:[#allocation3 + $0x40] sm:$0xff] %vm711_vm3, %v668_v44 }
 0x13e   : > { %1404 = vrot.lane.b32.xlu1 %v4982_v1, %s4408_s23  ;;  %1402 = vrot.lane.b32.xlu0 %v4984_v2, %s4408_s23 }
 0x140   : > { %v1514_v45 = vpop.permute.xlu1 %1513  ;;  %v1512_v46 = vpop.permute.xlu0 %1511  ;;  %v1584_v47 = vld [vmem:[#allocation3 + $0x20] sm:$0xff]  ;;  %v1585_v48 = vld [vmem:[#allocation3 + $0x28] sm:$0xff] }
 0x141   : > { %1567 = vst.msk [vmem:[#allocation3 + $0x38] sm:$0xff] %vm1559_vm10, %v1514_v45  ;;  %1566 = vst.msk [vmem:[#allocation3 + $0x30] sm:$0xff] %vm1559_vm10, %v1512_v46  ;;  %v1602_v49 = vpack.c.bf16 %v1585_v48, %v1584_v47 }
 0x142   : > { %1408 = vrot.lane.b32.xlu1 %v5024_v11, %s4408_s23  ;;  %1406 = vrot.lane.b32.xlu0 %v5026_v12, %s4408_s23 }
 0x143   : > { %4094 = vmatprep.mubr.msk.bf16.mxu0 %vm1637_vm11, %v1602_v49 }
 0x144   : > { %v674_v50 = vpop.permute.xlu1 %673  ;;  %v672_v51 = vpop.permute.xlu0 %671 }
 0x145   : > { %723 = vst.msk [vmem:[#allocation3 + $0x58] sm:$0xff] %vm711_vm3, %v674_v50  ;;  %722 = vst.msk [vmem:[#allocation3 + $0x50] sm:$0xff] %vm711_vm3, %v672_v51 }
 0x146   : > { %1525 = vrot.lane.b32.xlu1 %v4996_v35, %s4409_s18  ;;  %1523 = vrot.lane.b32.xlu0 %v4998_v36, %s4409_s18 }
 0x148   : > { %v791_v52 = vpop.permute.xlu1 %790  ;;  %v789_v53 = vpop.permute.xlu0 %788  ;;  %v1586_v54 = vld [vmem:[#allocation3 + $0x30] sm:$0xff]  ;;  %v1587_v55 = vld [vmem:[#allocation3 + $0x38] sm:$0xff] }
 0x149   : > { %842 = vst.msk [vmem:[#allocation3 + $0x48] sm:$0xff] %vm832_vm4, %v791_v52  ;;  %841 = vst.msk [vmem:[#allocation3 + $0x40] sm:$0xff] %vm832_vm4, %v789_v53  ;;  %v1603_v56 = vpack.c.bf16 %v1587_v55, %v1586_v54 }
 0x14a   : > { %685 = vrot.lane.b32.xlu1 %v4982_v1, %s4402_s0  ;;  %683 = vrot.lane.b32.xlu0 %v4984_v2, %s4402_s0 }
 0x14b   : > { %4095 = vmatmul.mubr.msk.bf16.gmra.mrb[4].mxu0 %vm1637_vm11, %v1603_v56 }
 0x14c   : > { %v795_v59 = vpop.permute.xlu1 %794  ;;  %v793_v60 = vpop.permute.xlu0 %792 }
 0x14d   : > { %844 = vst.msk [vmem:[#allocation3 + $0x58] sm:$0xff] %vm832_vm4, %v795_v59  ;;  %843 = vst.msk [vmem:[#allocation3 + $0x50] sm:$0xff] %vm832_vm4, %v793_v60 }
 0x14e   : > { %1529 = vrot.lane.b32.xlu1 %v1474_v57, %s4409_s18  ;;  %1527 = vrot.lane.b32.xlu0 %v1473_v58, %s4409_s18 }
 0x150   : > { %v913_v61 = vpop.permute.xlu1 %912  ;;  %v911_v62 = vpop.permute.xlu0 %910 }
 0x151   : > { %964 = vst.msk [vmem:[#allocation3 + $0x48] sm:$0xff] %vm954_vm5, %v913_v61  ;;  %963 = vst.msk [vmem:[#allocation3 + $0x40] sm:$0xff] %vm954_vm5, %v911_v62 }
 0x152   : > { %689 = vrot.lane.b32.xlu1 %v5024_v11, %s4402_s0  ;;  %687 = vrot.lane.b32.xlu0 %v5026_v12, %s4402_s0 }
 0x154   : > { %v917_v63 = vpop.permute.xlu1 %916  ;;  %v915_v0 = vpop.permute.xlu0 %914 }
 0x155   : > { %966 = vst.msk [vmem:[#allocation3 + $0x58] sm:$0xff] %vm954_vm5, %v917_v63  ;;  %965 = vst.msk [vmem:[#allocation3 + $0x50] sm:$0xff] %vm954_vm5, %v915_v0 }
 0x156   : > { %806 = vrot.lane.b32.xlu1 %v4996_v35, %s4403_s29  ;;  %804 = vrot.lane.b32.xlu0 %v4998_v36, %s4403_s29 }
 0x158   : > { %v1034_v3 = vpop.permute.xlu1 %1033  ;;  %v1032_v4 = vpop.permute.xlu0 %1031 }
 0x159   : > { %1085 = vst.msk [vmem:[#allocation3 + $0x48] sm:$0xff] %vm1075_vm6, %v1034_v3  ;;  %1084 = vst.msk [vmem:[#allocation3 + $0x40] sm:$0xff] %vm1075_vm6, %v1032_v4 }
 0x15a   : > { %810 = vrot.lane.b32.xlu1 %v1474_v57, %s4403_s29  ;;  %808 = vrot.lane.b32.xlu0 %v1473_v58, %s4403_s29 }
 0x15c   : > { %v1038_v5 = vpop.permute.xlu1 %1037  ;;  %v1036_v6 = vpop.permute.xlu0 %1035 }
 0x15d   : > { %1087 = vst.msk [vmem:[#allocation3 + $0x58] sm:$0xff] %vm1075_vm6, %v1038_v5  ;;  %1086 = vst.msk [vmem:[#allocation3 + $0x50] sm:$0xff] %vm1075_vm6, %v1036_v6 }
 0x15e   : > { %928 = vrot.lane.b32.xlu1 %v4810_v17, %s4404_s19  ;;  %926 = vrot.lane.b32.xlu0 %v4812_v18, %s4404_s19  ;;  %v994_v17 = vld [vmem:[#allocation2 + $0xf9] sm:$0xff]  ;;  %v993_v18 = vld [vmem:[#allocation2 + $0xf1] sm:$0xff] }
 0x160   : > { %v1155_v9 = vpop.permute.xlu1 %1154  ;;  %v1153_v10 = vpop.permute.xlu0 %1152 }
 0x161   : > { %1206 = vst.msk [vmem:[#allocation3 + $0x48] sm:$0xff] %vm1196_vm7, %v1155_v9  ;;  %1205 = vst.msk [vmem:[#allocation3 + $0x40] sm:$0xff] %vm1196_vm7, %v1153_v10 }
 0x162   : > { %932 = vrot.lane.b32.xlu1 %v873_v7, %s4404_s19  ;;  %930 = vrot.lane.b32.xlu0 %v872_v8, %s4404_s19 }
 0x164   : > { %v1159_v13 = vpop.permute.xlu1 %1158  ;;  %v1157_v14 = vpop.permute.xlu0 %1156 }
 0x165   : > { %1208 = vst.msk [vmem:[#allocation3 + $0x58] sm:$0xff] %vm1196_vm7, %v1159_v13  ;;  %1207 = vst.msk [vmem:[#allocation3 + $0x50] sm:$0xff] %vm1196_vm7, %v1157_v14 }
 0x166   : > { %1049 = vrot.lane.b32.xlu1 %v5024_v11, %s4405_s22  ;;  %1047 = vrot.lane.b32.xlu0 %v5026_v12, %s4405_s22 }
 0x168   : > { %v1276_v15 = vpop.permute.xlu1 %1275  ;;  %v1274_v16 = vpop.permute.xlu0 %1273 }
 0x169   : > { %1327 = vst.msk [vmem:[#allocation3 + $0x48] sm:$0xff] %vm1317_vm8, %v1276_v15  ;;  %1326 = vst.msk [vmem:[#allocation3 + $0x40] sm:$0xff] %vm1317_vm8, %v1274_v16 }
 0x16a   : > { %1053 = vrot.lane.b32.xlu1 %v994_v17, %s4405_s22  ;;  %1051 = vrot.lane.b32.xlu0 %v993_v18, %s4405_s22 }
 0x16c   : > { %v1280_v19 = vpop.permute.xlu1 %1279  ;;  %v1278_v20 = vpop.permute.xlu0 %1277 }
 0x16d   : > { %1329 = vst.msk [vmem:[#allocation3 + $0x58] sm:$0xff] %vm1317_vm8, %v1280_v19  ;;  %1328 = vst.msk [vmem:[#allocation3 + $0x50] sm:$0xff] %vm1317_vm8, %v1278_v20 }
 0x16e   : > { %1170 = vrot.lane.b32.xlu1 %v1474_v57, %s4406_s9  ;;  %1168 = vrot.lane.b32.xlu0 %v1473_v58, %s4406_s9 }
 0x170   : > { %v1397_v23 = vpop.permute.xlu1 %1396  ;;  %v1395_v24 = vpop.permute.xlu0 %1394 }
 0x171   : > { %1448 = vst.msk [vmem:[#allocation3 + $0x48] sm:$0xff] %vm1438_vm9, %v1397_v23  ;;  %1447 = vst.msk [vmem:[#allocation3 + $0x40] sm:$0xff] %vm1438_vm9, %v1395_v24 }
 0x172   : > { %1174 = vrot.lane.b32.xlu1 %v1115_v21, %s4406_s9  ;;  %1172 = vrot.lane.b32.xlu0 %v1114_v22, %s4406_s9 }
 0x174   : > { %v1401_v25 = vpop.permute.xlu1 %1400  ;;  %v1399_v26 = vpop.permute.xlu0 %1398 }
 0x175   : > { %1450 = vst.msk [vmem:[#allocation3 + $0x58] sm:$0xff] %vm1438_vm9, %v1401_v25  ;;  %1449 = vst.msk [vmem:[#allocation3 + $0x50] sm:$0xff] %vm1438_vm9, %v1399_v26 }
 0x176   : > { %1291 = vrot.lane.b32.xlu1 %v873_v7, %s4407_s11  ;;  %1289 = vrot.lane.b32.xlu0 %v872_v8, %s4407_s11 }
 0x178   : > { %v1518_v29 = vpop.permute.xlu1 %1517  ;;  %v1516_v30 = vpop.permute.xlu0 %1515 }
 0x179   : > { %1569 = vst.msk [vmem:[#allocation3 + $0x48] sm:$0xff] %vm1559_vm10, %v1518_v29  ;;  %1568 = vst.msk [vmem:[#allocation3 + $0x40] sm:$0xff] %vm1559_vm10, %v1516_v30 }
 0x17a   : > { %1295 = vrot.lane.b32.xlu1 %v1236_v27, %s4407_s11  ;;  %1293 = vrot.lane.b32.xlu0 %v1235_v28, %s4407_s11 }
 0x17c   : > { %v678_v1 = vpop.permute.xlu1 %677  ;;  %v676_v2 = vpop.permute.xlu0 %675 }
 0x17d   : > { %725 = vst.msk [vmem:[#allocation3 + $0x68] sm:$0xff] %vm711_vm3, %v678_v1  ;;  %724 = vst.msk [vmem:[#allocation3 + $0x60] sm:$0xff] %vm711_vm3, %v676_v2 }
 0x17e   : > { %1412 = vrot.lane.b32.xlu1 %v994_v17, %s4408_s23  ;;  %1410 = vrot.lane.b32.xlu0 %v993_v18, %s4408_s23 }
 0x180   : > { %v1522_v33 = vpop.permute.xlu1 %1521  ;;  %v1520_v34 = vpop.permute.xlu0 %1519  ;;  %v1588_v35 = vld [vmem:[#allocation3 + $0x40] sm:$0xff]  ;;  %v1589_v36 = vld [vmem:[#allocation3 + $0x48] sm:$0xff] }
 0x181   : > { %1571 = vst.msk [vmem:[#allocation3 + $0x58] sm:$0xff] %vm1559_vm10, %v1522_v33  ;;  %1570 = vst.msk [vmem:[#allocation3 + $0x50] sm:$0xff] %vm1559_vm10, %v1520_v34  ;;  %v1604_v37 = vpack.c.bf16 %v1589_v36, %v1588_v35 }
 0x182   : > { %1416 = vrot.lane.b32.xlu1 %v1357_v31, %s4408_s23  ;;  %1414 = vrot.lane.b32.xlu0 %v1356_v32, %s4408_s23  ;;  %v5167_v31 = vld [vmem:[%s5727_s4] ss:$0 sm:$0xff] }
 0x183   : > { %4098 = vmatprep.mubr.msk.bf16.mxu0 %vm1637_vm11, %v1604_v37 }
 0x184   : > { %v682_v38 = vpop.permute.xlu1 %681  ;;  %v680_v39 = vpop.permute.xlu0 %679 }
 0x185   : > { %727 = vst.msk [vmem:[#allocation3 + $0x78] sm:$0xff] %vm711_vm3, %v682_v38  ;;  %726 = vst.msk [vmem:[#allocation3 + $0x70] sm:$0xff] %vm711_vm3, %v680_v39 }
 0x186   : > { %1533 = vrot.lane.b32.xlu1 %v1115_v21, %s4409_s18  ;;  %1531 = vrot.lane.b32.xlu0 %v1114_v22, %s4409_s18 }
 0x188   : > { %v799_v42 = vpop.permute.xlu1 %798  ;;  %v797_v43 = vpop.permute.xlu0 %796  ;;  %v1590_v44 = vld [vmem:[#allocation3 + $0x50] sm:$0xff]  ;;  %v1591_v11 = vld [vmem:[#allocation3 + $0x58] sm:$0xff] }
 0x189   : > { %846 = vst.msk [vmem:[#allocation3 + $0x68] sm:$0xff] %vm832_vm4, %v799_v42  ;;  %845 = vst.msk [vmem:[#allocation3 + $0x60] sm:$0xff] %vm832_vm4, %v797_v43  ;;  %v1605_v12 = vpack.c.bf16 %v1591_v11, %v1590_v44 }
 0x18a   : > { %1537 = vrot.lane.b32.xlu1 %v1478_v40, %s4409_s18  ;;  %1535 = vrot.lane.b32.xlu0 %v1477_v41, %s4409_s18 }
 0x18b   : > { %4099 = vmatmul.mubr.msk.bf16.gmra.mrb[8].mxu0 %vm1637_vm11, %v1605_v12 }
 0x18c   : > { %v803_v45 = vpop.permute.xlu1 %802  ;;  %v801_v46 = vpop.permute.xlu0 %800 }
 0x18d   : > { %848 = vst.msk [vmem:[#allocation3 + $0x78] sm:$0xff] %vm832_vm4, %v803_v45  ;;  %847 = vst.msk [vmem:[#allocation3 + $0x70] sm:$0xff] %vm832_vm4, %v801_v46 }
 0x190   : > { %v921_v47 = vpop.permute.xlu1 %920  ;;  %v919_v48 = vpop.permute.xlu0 %918 }
 0x191   : > { %968 = vst.msk [vmem:[#allocation3 + $0x68] sm:$0xff] %vm954_vm5, %v921_v47  ;;  %967 = vst.msk [vmem:[#allocation3 + $0x60] sm:$0xff] %vm954_vm5, %v919_v48 }
 0x194   : > { %v925_v49 = vpop.permute.xlu1 %924  ;;  %v923_v50 = vpop.permute.xlu0 %922 }
 0x195   : > { %970 = vst.msk [vmem:[#allocation3 + $0x78] sm:$0xff] %vm954_vm5, %v925_v49  ;;  %969 = vst.msk [vmem:[#allocation3 + $0x70] sm:$0xff] %vm954_vm5, %v923_v50 }
 0x198   : > { %v1042_v51 = vpop.permute.xlu1 %1041  ;;  %v1040_v52 = vpop.permute.xlu0 %1039 }
 0x199   : > { %1089 = vst.msk [vmem:[#allocation3 + $0x68] sm:$0xff] %vm1075_vm6, %v1042_v51  ;;  %1088 = vst.msk [vmem:[#allocation3 + $0x60] sm:$0xff] %vm1075_vm6, %v1040_v52 }
 0x19c   : > { %v1046_v53 = vpop.permute.xlu1 %1045  ;;  %v1044_v54 = vpop.permute.xlu0 %1043 }
 0x19d   : > { %1091 = vst.msk [vmem:[#allocation3 + $0x78] sm:$0xff] %vm1075_vm6, %v1046_v53  ;;  %1090 = vst.msk [vmem:[#allocation3 + $0x70] sm:$0xff] %vm1075_vm6, %v1044_v54 }
 0x1a0   : > { %v1163_v55 = vpop.permute.xlu1 %1162  ;;  %v1161_v56 = vpop.permute.xlu0 %1160 }
 0x1a1   : > { %1210 = vst.msk [vmem:[#allocation3 + $0x68] sm:$0xff] %vm1196_vm7, %v1163_v55  ;;  %1209 = vst.msk [vmem:[#allocation3 + $0x60] sm:$0xff] %vm1196_vm7, %v1161_v56 }
 0x1a4   : > { %v1167_v57 = vpop.permute.xlu1 %1166  ;;  %v1165_v58 = vpop.permute.xlu0 %1164 }
 0x1a5   : > { %1212 = vst.msk [vmem:[#allocation3 + $0x78] sm:$0xff] %vm1196_vm7, %v1167_v57  ;;  %1211 = vst.msk [vmem:[#allocation3 + $0x70] sm:$0xff] %vm1196_vm7, %v1165_v58 }
 0x1a8   : > { %v1284_v59 = vpop.permute.xlu1 %1283  ;;  %v1282_v60 = vpop.permute.xlu0 %1281 }
 0x1a9   : > { %1331 = vst.msk [vmem:[#allocation3 + $0x68] sm:$0xff] %vm1317_vm8, %v1284_v59  ;;  %1330 = vst.msk [vmem:[#allocation3 + $0x60] sm:$0xff] %vm1317_vm8, %v1282_v60 }
 0x1ac   : > { %v1288_v61 = vpop.permute.xlu1 %1287  ;;  %v1286_v62 = vpop.permute.xlu0 %1285 }
 0x1ad   : > { %1333 = vst.msk [vmem:[#allocation3 + $0x78] sm:$0xff] %vm1317_vm8, %v1288_v61  ;;  %1332 = vst.msk [vmem:[#allocation3 + $0x70] sm:$0xff] %vm1317_vm8, %v1286_v62 }
 0x1b0   : > { %v1405_v63 = vpop.permute.xlu1 %1404  ;;  %v1403_v0 = vpop.permute.xlu0 %1402 }
 0x1b1   : > { %1452 = vst.msk [vmem:[#allocation3 + $0x68] sm:$0xff] %vm1438_vm9, %v1405_v63  ;;  %1451 = vst.msk [vmem:[#allocation3 + $0x60] sm:$0xff] %vm1438_vm9, %v1403_v0 }
 0x1b4   : > { %v1409_v3 = vpop.permute.xlu1 %1408  ;;  %v1407_v4 = vpop.permute.xlu0 %1406 }
 0x1b5   : > { %1454 = vst.msk [vmem:[#allocation3 + $0x78] sm:$0xff] %vm1438_vm9, %v1409_v3  ;;  %1453 = vst.msk [vmem:[#allocation3 + $0x70] sm:$0xff] %vm1438_vm9, %v1407_v4 }
 0x1b8   : > { %v1526_v5 = vpop.permute.xlu1 %1525  ;;  %v1524_v6 = vpop.permute.xlu0 %1523 }
 0x1b9   : > { %1573 = vst.msk [vmem:[#allocation3 + $0x68] sm:$0xff] %vm1559_vm10, %v1526_v5  ;;  %1572 = vst.msk [vmem:[#allocation3 + $0x60] sm:$0xff] %vm1559_vm10, %v1524_v6 }
 0x1bc   : > { %v686_v7 = vpop.permute.xlu1 %685  ;;  %v684_v8 = vpop.permute.xlu0 %683 }
 0x1bd   : > { %729 = vst.msk [vmem:[#allocation3 + $0x88] sm:$0xff] %vm711_vm3, %v686_v7  ;;  %728 = vst.msk [vmem:[#allocation3 + $0x80] sm:$0xff] %vm711_vm3, %v684_v8 }
 0x1c0   : > { %v1530_v9 = vpop.permute.xlu1 %1529  ;;  %v1528_v10 = vpop.permute.xlu0 %1527  ;;  %v1592_v13 = vld [vmem:[#allocation3 + $0x60] sm:$0xff]  ;;  %v1593_v14 = vld [vmem:[#allocation3 + $0x68] sm:$0xff] }
 0x1c1   : > { %1575 = vst.msk [vmem:[#allocation3 + $0x78] sm:$0xff] %vm1559_vm10, %v1530_v9  ;;  %1574 = vst.msk [vmem:[#allocation3 + $0x70] sm:$0xff] %vm1559_vm10, %v1528_v10  ;;  %v1606_v17 = vpack.c.bf16 %v1593_v14, %v1592_v13 }
 0x1c3   : > { %4102 = vmatprep.mubr.msk.bf16.mxu0 %vm1637_vm11, %v1606_v17 }
 0x1c4   : > { %v690_v18 = vpop.permute.xlu1 %689  ;;  %v688_v15 = vpop.permute.xlu0 %687 }
 0x1c5   : > { %731 = vst.msk [vmem:[#allocation3 + $0x98] sm:$0xff] %vm711_vm3, %v690_v18  ;;  %730 = vst.msk [vmem:[#allocation3 + $0x90] sm:$0xff] %vm711_vm3, %v688_v15 }
 0x1c8   : > { %v807_v16 = vpop.permute.xlu1 %806  ;;  %v805_v19 = vpop.permute.xlu0 %804  ;;  %v1594_v20 = vld [vmem:[#allocation3 + $0x70] sm:$0xff]  ;;  %v1595_v21 = vld [vmem:[#allocation3 + $0x78] sm:$0xff] }
 0x1c9   : > { %850 = vst.msk [vmem:[#allocation3 + $0x88] sm:$0xff] %vm832_vm4, %v807_v16  ;;  %849 = vst.msk [vmem:[#allocation3 + $0x80] sm:$0xff] %vm832_vm4, %v805_v19  ;;  %v1607_v22 = vpack.c.bf16 %v1595_v21, %v1594_v20 }
 0x1cb   : > { %4103 = vmatmul.mubr.msk.bf16.gmra.mrb[12].mxu0 %vm1637_vm11, %v1607_v22 }
 0x1cc   : > { %v811_v23 = vpop.permute.xlu1 %810  ;;  %v809_v24 = vpop.permute.xlu0 %808 }
 0x1cd   : > { %852 = vst.msk [vmem:[#allocation3 + $0x98] sm:$0xff] %vm832_vm4, %v811_v23  ;;  %851 = vst.msk [vmem:[#allocation3 + $0x90] sm:$0xff] %vm832_vm4, %v809_v24 }
 0x1d0   : > { %v929_v25 = vpop.permute.xlu1 %928  ;;  %v927_v26 = vpop.permute.xlu0 %926 }
 0x1d1   : > { %972 = vst.msk [vmem:[#allocation3 + $0x88] sm:$0xff] %vm954_vm5, %v929_v25  ;;  %971 = vst.msk [vmem:[#allocation3 + $0x80] sm:$0xff] %vm954_vm5, %v927_v26 }
 0x1d4   : > { %v933_v27 = vpop.permute.xlu1 %932  ;;  %v931_v28 = vpop.permute.xlu0 %930 }
 0x1d5   : > { %974 = vst.msk [vmem:[#allocation3 + $0x98] sm:$0xff] %vm954_vm5, %v933_v27  ;;  %973 = vst.msk [vmem:[#allocation3 + $0x90] sm:$0xff] %vm954_vm5, %v931_v28 }
 0x1d8   : > { %v1050_v29 = vpop.permute.xlu1 %1049  ;;  %v1048_v30 = vpop.permute.xlu0 %1047 }
 0x1d9   : > { %1093 = vst.msk [vmem:[#allocation3 + $0x88] sm:$0xff] %vm1075_vm6, %v1050_v29  ;;  %1092 = vst.msk [vmem:[#allocation3 + $0x80] sm:$0xff] %vm1075_vm6, %v1048_v30 }
 0x1dc   : > { %v1054_v1 = vpop.permute.xlu1 %1053  ;;  %v1052_v2 = vpop.permute.xlu0 %1051 }
 0x1dd   : > { %1095 = vst.msk [vmem:[#allocation3 + $0x98] sm:$0xff] %vm1075_vm6, %v1054_v1  ;;  %1094 = vst.msk [vmem:[#allocation3 + $0x90] sm:$0xff] %vm1075_vm6, %v1052_v2 }
 0x1de   : > { %v4092_v32 = vpop.f32.mrb[0].mxu0 }
 0x1df   : > { %v1715_v33 = vadd.f32 %v4092_v32, %v5167_v31  ;;  %v1706_v34 = vpop.f32.mrb[1].mxu0 }
 0x1e0   : > { %v1707_v35 = vadd.f32 %v5167_v31, %v1706_v34  ;;  %v1171_v36 = vpop.permute.xlu1 %1170  ;;  %v1169_v37 = vpop.permute.xlu0 %1168 }
 0x1e1   : > { %v1787_v38 = vmax.f32 %v1715_v33, 0.0  ;;  %1214 = vst.msk [vmem:[#allocation3 + $0x88] sm:$0xff] %vm1196_vm7, %v1171_v36  ;;  %1213 = vst.msk [vmem:[#allocation3 + $0x80] sm:$0xff] %vm1196_vm7, %v1169_v37  ;;  %v4093_v39 = vpop.f32.mrb[2].mxu0 }
 0x1e2   : > { %v1785_v40 = vmax.f32 %v1707_v35, 0.0  ;;  %v1718_v41 = vadd.f32 %v4093_v39, %v5167_v31  ;;  %v1709_v42 = vpop.f32.mrb[3].mxu0 }
 0x1e3   : > { %1807 = vst [vmem:[#allocation4 + $0x19] sm:$0xff] %v1787_v38  ;;  %v1710_v43 = vadd.f32 %v5167_v31, %v1709_v42 }
 0x1e4   : > { %1805 = vst [vmem:[#allocation4 + $0x1] sm:$0xff] %v1785_v40  ;;  %v1788_v44 = vmax.f32 %v1718_v41, 0.0  ;;  %v1175_v11 = vpop.permute.xlu1 %1174  ;;  %v1173_v12 = vpop.permute.xlu0 %1172 }
 0x1e5   : > { %v1786_v45 = vmax.f32 %v1710_v43, 0.0  ;;  %1216 = vst.msk [vmem:[#allocation3 + $0x98] sm:$0xff] %vm1196_vm7, %v1175_v11  ;;  %1215 = vst.msk [vmem:[#allocation3 + $0x90] sm:$0xff] %vm1196_vm7, %v1173_v12 }
 0x1e6   : > { %1808 = vst [vmem:[#allocation4 + $0x21] sm:$0xff] %v1788_v44 }
 0x1e7   : > { %1806 = vst [vmem:[#allocation4 + $0x9] sm:$0xff] %v1786_v45 }
 0x1e8   : > { %v1292_v46 = vpop.permute.xlu1 %1291  ;;  %v1290_v47 = vpop.permute.xlu0 %1289 }
 0x1e9   : > { %1335 = vst.msk [vmem:[#allocation3 + $0x88] sm:$0xff] %vm1317_vm8, %v1292_v46  ;;  %1334 = vst.msk [vmem:[#allocation3 + $0x80] sm:$0xff] %vm1317_vm8, %v1290_v47 }
 0x1ec   : > { %v1296_v48 = vpop.permute.xlu1 %1295  ;;  %v1294_v49 = vpop.permute.xlu0 %1293 }
 0x1ed   : > { %1337 = vst.msk [vmem:[#allocation3 + $0x98] sm:$0xff] %vm1317_vm8, %v1296_v48  ;;  %1336 = vst.msk [vmem:[#allocation3 + $0x90] sm:$0xff] %vm1317_vm8, %v1294_v49  ;;  %v4410_v49 = vmov (!%p3636_p6), 0.0  }
 0x1ee   : > { %1848 = vst [vmem:[#allocation4] sm:$0xff] (!%p3636_p6), %v4410_v49  ;;  %1849 = vst [vmem:[#allocation4 + $0x8] sm:$0xff] (!%p3636_p6), %v4410_v49 }
 0x1ef   : > { %1850 = vst [vmem:[#allocation4 + $0x10] sm:$0x3] (!%p3636_p6), %v4410_v49 }
 0x1f0   : > { %v1413_v50 = vpop.permute.xlu1 %1412  ;;  %v1411_v51 = vpop.permute.xlu0 %1410 }
 0x1f1   : > { %1456 = vst.msk [vmem:[#allocation3 + $0x88] sm:$0xff] %vm1438_vm9, %v1413_v50  ;;  %1455 = vst.msk [vmem:[#allocation3 + $0x80] sm:$0xff] %vm1438_vm9, %v1411_v51 }
 0x1f4   : > { %v1417_v52 = vpop.permute.xlu1 %1416  ;;  %v1415_v53 = vpop.permute.xlu0 %1414 }
 0x1f5   : > { %1458 = vst.msk [vmem:[#allocation3 + $0x98] sm:$0xff] %vm1438_vm9, %v1417_v52  ;;  %1457 = vst.msk [vmem:[#allocation3 + $0x90] sm:$0xff] %vm1438_vm9, %v1415_v53 }
 0x1f8   : > { %v1534_v54 = vpop.permute.xlu1 %1533  ;;  %v1532_v55 = vpop.permute.xlu0 %1531 }
 0x1f9   : > { %1577 = vst.msk [vmem:[#allocation3 + $0x88] sm:$0xff] %vm1559_vm10, %v1534_v54  ;;  %1576 = vst.msk [vmem:[#allocation3 + $0x80] sm:$0xff] %vm1559_vm10, %v1532_v55 }
 0x1fc   : > { %v1538_v56 = vpop.permute.xlu1 %1537  ;;  %v1536_v57 = vpop.permute.xlu0 %1535 }
 0x1fd   : > { %1579 = vst.msk [vmem:[#allocation3 + $0x98] sm:$0xff] %vm1559_vm10, %v1538_v56  ;;  %1578 = vst.msk [vmem:[#allocation3 + $0x90] sm:$0xff] %vm1559_vm10, %v1536_v57 }
 0x200   : > { %v1596_v58 = vld [vmem:[#allocation3 + $0x80] sm:$0xff]  ;;  %v1597_v59 = vld [vmem:[#allocation3 + $0x88] sm:$0xff] }
 0x201   : > { %v1608_v60 = vpack.c.bf16 %v1597_v59, %v1596_v58 }
 0x203   : > { %4106 = vmatprep.mubr.msk.bf16.mxu0 %vm1637_vm11, %v1608_v60 }
 0x204   : > { %v1598_v61 = vld [vmem:[#allocation3 + $0x90] sm:$0xff]  ;;  %v1599_v62 = vld [vmem:[#allocation3 + $0x98] sm:$0xff] }
 0x205   : > { %v1609_v63 = vpack.c.bf16 %v1599_v62, %v1598_v61 }
 0x207   : > { %4107 = vmatmul.mubr.msk.bf16.gmra.mrb[16].mxu0 %vm1637_vm11, %v1609_v63 }
 0x21e   : > { %v4096_v0 = vpop.f32.mrb[4].mxu0 }
 0x21f   : > { %v1731_v3 = vadd.f32 %v4096_v0, %v5167_v31  ;;  %v1722_v4 = vpop.f32.mrb[5].mxu0 }
 0x220   : > { %v1723_v5 = vadd.f32 %v5167_v31, %v1722_v4  ;;  %v4097_v6 = vpop.f32.mrb[6].mxu0 }
 0x221   : > { %v1791_v7 = vmax.f32 %v1731_v3, 0.0  ;;  %v1734_v8 = vadd.f32 %v4097_v6, %v5167_v31  ;;  %v1725_v9 = vpop.f32.mrb[7].mxu0 }
 0x222   : > { %v1789_v10 = vmax.f32 %v1723_v5, 0.0  ;;  %v1726_v13 = vadd.f32 %v5167_v31, %v1725_v9 }
 0x223   : > { %1811 = vst [vmem:[#allocation4 + $0x49] sm:$0xff] %v1791_v7  ;;  %v1792_v14 = vmax.f32 %v1734_v8, 0.0 }
 0x224   : > { %1809 = vst [vmem:[#allocation4 + $0x31] sm:$0xff] %v1789_v10  ;;  %v1790_v17 = vmax.f32 %v1726_v13, 0.0 }
 0x225   : > { %1812 = vst [vmem:[#allocation4 + $0x51] sm:$0xff] %v1792_v14 }
 0x226   : > { %1810 = vst [vmem:[#allocation4 + $0x39] sm:$0xff] %v1790_v17 }
 0x25e   : > { %v4100_v18 = vpop.f32.mrb[8].mxu0 }
 0x25f   : > { %v1747_v15 = vadd.f32 %v4100_v18, %v5167_v31  ;;  %v1738_v16 = vpop.f32.mrb[9].mxu0 }
 0x260   : > { %v1739_v19 = vadd.f32 %v5167_v31, %v1738_v16  ;;  %v4101_v20 = vpop.f32.mrb[10].mxu0 }
 0x261   : > { %v1795_v21 = vmax.f32 %v1747_v15, 0.0  ;;  %v1750_v22 = vadd.f32 %v4101_v20, %v5167_v31  ;;  %v1741_v23 = vpop.f32.mrb[11].mxu0 }
 0x262   : > { %v1793_v24 = vmax.f32 %v1739_v19, 0.0  ;;  %v1742_v25 = vadd.f32 %v5167_v31, %v1741_v23 }
 0x263   : > { %1815 = vst [vmem:[#allocation4 + $0x79] sm:$0xff] %v1795_v21  ;;  %v1796_v26 = vmax.f32 %v1750_v22, 0.0 }
 0x264   : > { %1813 = vst [vmem:[#allocation4 + $0x61] sm:$0xff] %v1793_v24  ;;  %v1794_v27 = vmax.f32 %v1742_v25, 0.0 }
 0x265   : > { %1816 = vst [vmem:[#allocation4 + $0x81] sm:$0xff] %v1796_v26 }
 0x266   : > { %1814 = vst [vmem:[#allocation4 + $0x69] sm:$0xff] %v1794_v27 }
 0x29e   : > { %v4104_v28 = vpop.f32.mrb[12].mxu0 }
 0x29f   : > { %v1763_v29 = vadd.f32 %v4104_v28, %v5167_v31  ;;  %v1754_v30 = vpop.f32.mrb[13].mxu0 }
 0x2a0   : > { %v1755_v1 = vadd.f32 %v5167_v31, %v1754_v30  ;;  %v4105_v2 = vpop.f32.mrb[14].mxu0 }
 0x2a1   : > { %v1799_v32 = vmax.f32 %v1763_v29, 0.0  ;;  %v1766_v33 = vadd.f32 %v4105_v2, %v5167_v31  ;;  %v1757_v34 = vpop.f32.mrb[15].mxu0 }
 0x2a2   : > { %v1797_v35 = vmax.f32 %v1755_v1, 0.0  ;;  %v1758_v36 = vadd.f32 %v5167_v31, %v1757_v34 }
 0x2a3   : > { %1819 = vst [vmem:[#allocation4 + $0xa9] sm:$0xff] %v1799_v32  ;;  %v1800_v37 = vmax.f32 %v1766_v33, 0.0 }
 0x2a4   : > { %1817 = vst [vmem:[#allocation4 + $0x91] sm:$0xff] %v1797_v35  ;;  %v1798_v38 = vmax.f32 %v1758_v36, 0.0 }
 0x2a5   : > { %1820 = vst [vmem:[#allocation4 + $0xb1] sm:$0xff] %v1800_v37 }
 0x2a6   : > { %1818 = vst [vmem:[#allocation4 + $0x99] sm:$0xff] %v1798_v38 }
 0x2da   : > { %v4108_v39 = vpop.f32.mrb[16].mxu0 }
 0x2db   : > { %v1779_v40 = vadd.f32 %v4108_v39, %v5167_v31  ;;  %v1770_v41 = vpop.f32.mrb[17].mxu0 }
 0x2dc   : > { %v1771_v42 = vadd.f32 %v5167_v31, %v1770_v41  ;;  %v4109_v43 = vpop.f32.mrb[18].mxu0  ;;  %1847 = sbr.rel (%p3636_p6) target bundleno = 739 (0x2e3), region = 68 }
 0x2dd   : > { %v1803_v44 = vmax.f32 %v1779_v40, 0.0  ;;  %v1782_v11 = vadd.f32 %v4109_v43, %v5167_v31  ;;  %v1773_v12 = vpop.f32.mrb[19].mxu0 }
 0x2de   : > { %v1801_v45 = vmax.f32 %v1771_v42, 0.0  ;;  %v1774_v46 = vadd.f32 %v5167_v31, %v1773_v12 }
 0x2df   : > { %1823 = vst [vmem:[#allocation4 + $0xd9] sm:$0xff] %v1803_v44  ;;  %v1804_v47 = vmax.f32 %v1782_v11, 0.0 }
 0x2e0   : > { %1821 = vst [vmem:[#allocation4 + $0xc1] sm:$0xff] %v1801_v45  ;;  %v1802_v48 = vmax.f32 %v1774_v46, 0.0 }
 0x2e1   : > { %1824 = vst [vmem:[#allocation4 + $0xe1] sm:$0xff] %v1804_v47 }
 0x2e2   : > { %1822 = vst [vmem:[#allocation4 + $0xc9] sm:$0xff] %v1802_v48 }
 0x2e3 PF: > { %1853 = sbr.rel (%p3638_p9) target bundleno = 746 (0x2ea), region = 72  ;;  %v4411_v50 = vmov (!%p3638_p9), 0.0  }
 0x2e4   : > { %1855 = vst [vmem:[#allocation4 + $0xd8] sm:$0xff] (!%p3638_p9), %v4411_v50  ;;  %1856 = vst [vmem:[#allocation4 + $0xe0] sm:$0xff] (!%p3638_p9), %v4411_v50 }
 0x2e5   : > { %1857 = vst [vmem:[#allocation4 + $0xe8] sm:$0x3] (!%p3638_p9), %v4411_v50 }
 0x2ea PF: > { %v4231_v31 = vld [vmem:[%s5728_s5 + $0x40] sm:$0xff]   ;;  %v4235_v54 = vld [vmem:[%s5728_s5 + $0x48] sm:$0xff]   ;;  %v4239_v58 = vld [vmem:[%s5728_s5 + $0x50] sm:$0xff]   ;;  %s3741_s17 = sshll.u32 %s4381_s27, 4  ;;  %s3731_s18 = sshll.u32 %s4385_s28, 5 }
 0x2eb   : > { %v4232_v51 = vld [vmem:[%s5728_s5] sm:$0xff]   ;;  %3812 = vmatprep.subr.bf16.mxu1 %v4231_v31  ;;  %v4236_v55 = vld [vmem:[%s5728_s5 + $0x8] sm:$0xff]   ;;  %v4240_v59 = vld [vmem:[%s5728_s5 + $0x10] sm:$0xff]   ;;  %s3478_s12 = sadd.s32 %s3741_s17, %s3731_s18  ;;  %s3481_s28 = sshll.u32 %s4635_s26, 4  ;;  %s5664_s28 = int_to_ptr.vmem [resolvable:$true] %s3481_s28 }
 0x2ec   : > { %v4233_v52 = vld [vmem:[%s5728_s5 + $0xc0] sm:$0xff]   ;;  %3813 = vmatpush3.bf16.msra.mxu1 %v4232_v51  ;;  %v4237_v56 = vld [vmem:[%s5728_s5 + $0xc8] sm:$0xff]   ;;  %v4241_v60 = vld [vmem:[%s5728_s5 + $0xd0] sm:$0xff]   ;;  %s3732_s27 = sshll.u32 %s3478_s12, 7  ;;  %s5749_s22 = sand.u32 1, %s4373_s25  }
 0x2ed   : > { %v4234_v53 = vld [vmem:[%s5728_s5 + $0x80] sm:$0xff]   ;;  %3876 = vmatprep.subr.bf16.mxu0 %v4233_v52  ;;  %3814 = vmatprep.subr.bf16.mxu1 %v4235_v54  ;;  %v4238_v57 = vld [vmem:[%s5728_s5 + $0x88] sm:$0xff]   ;;  %v4242_v61 = vld [vmem:[%s5728_s5 + $0x90] sm:$0xff]   ;;  %s5661_s19 = scalar_lea.hbm %s5730_s7, %s3732_s27  ;;  %s5670_s9 = scalar_lea.sflag [#allocation7], %s5749_s22 }
 0x2ee   : > { %3877 = vmatpush3.bf16.msra.mxu0 %v4234_v53  ;;  %v4243_v62 = vld [vmem:[%s5728_s5 + $0x58] sm:$0xff]   ;;  %v4247_v4 = vld [vmem:[%s5728_s5 + $0x60] sm:$0xff]   ;;  %v4251_v8 = vld [vmem:[%s5728_s5 + $0x68] sm:$0xff]   ;;  %s4303_s11 = scalar_lea.vmem %s5664_s28, 2048  ;;  %s4412_s21 = smov [#allocation6]  }
 0x2ef   : > { %3878 = vmatprep.subr.bf16.mxu0 %v4237_v56  ;;  %v4244_v63 = vld [vmem:[%s5728_s5 + $0x18] sm:$0xff]   ;;  %v4248_v5 = vld [vmem:[%s5728_s5 + $0x20] sm:$0xff]   ;;  %v4252_v9 = vld [vmem:[%s5728_s5 + $0x28] sm:$0xff]   ;;  %p4304_p10 = scmp.ne.s32.totalorder %s5664_s28, %s4303_s11  ;;  %s4307_s20 = sshll.u32 %s4412_s21, 4  ;;  %s4308_s20 = int_to_ptr.vmem [resolvable:$false] %s4307_s20 }
 0x2f0   : > { %3815 = vmatpush3.bf16.msra.mxu1 %v4236_v55  ;;  %v4245_v0 = vld [vmem:[%s5728_s5 + $0xd8] sm:$0xff]   ;;  %v4249_v6 = vld [vmem:[%s5728_s5 + $0xe0] sm:$0xff]   ;;  %v4253_v10 = vld [vmem:[%s5728_s5 + $0xe8] sm:$0xff]   ;;  %s4309_s23 = scalar_lea.vmem %s4308_s20, 4096  ;;  %p4310_p13 = scmp.lt.s32.totalorder %s5664_s28, %s4308_s20 }
 0x2f1   : > { %3816 = vmatprep.subr.bf16.mxu1 %v4239_v58  ;;  %v4246_v3 = vld [vmem:[%s5728_s5 + $0x98] sm:$0xff]   ;;  %v4250_v7 = vld [vmem:[%s5728_s5 + $0xa0] sm:$0xff]   ;;  %v4254_v13 = vld [vmem:[%s5728_s5 + $0xa8] sm:$0xff]   ;;  %p4305_p11 = pnand %p4304_p10, %p4505_p3  ;;  %p4311_p0 = scmp.lt.s32.totalorder %s4309_s23, %s4303_s11 }
 0x2f2   : > { %3879 = vmatpush3.bf16.msra.mxu0 %v4238_v57  ;;  %v4255_v14 = vld [vmem:[%s5728_s5 + $0x70] sm:$0xff]   ;;  %v4259_v16 = vld [vmem:[%s5728_s5 + $0x78] sm:$0xff]   ;;  %v1890_v21 = vld [vmem:[#allocation4 + $0x1] sm:$0xff] }
 0x2f3   : > { %3880 = vmatprep.subr.bf16.mxu0 %v4241_v60  ;;  %v4256_v17 = vld [vmem:[%s5728_s5 + $0x30] sm:$0xff]   ;;  %v4260_v19 = vld [vmem:[%s5728_s5 + $0x38] sm:$0xff]   ;;  %v1858_v25 = vld [vmem:[#allocation4] sm:$0xff]  ;;  %p4306_p12 = pneg %p4305_p11  ;;  %p4312_p1 = por %p4311_p0, %p4310_p13 }
 0x2f4   : > { %3817 = vmatpush3.bf16.msra.mxu1 %v4240_v59  ;;  %v4257_v18 = vld [vmem:[%s5728_s5 + $0xf0] sm:$0xff]   ;;  %v4261_v20 = vld [vmem:[%s5728_s5 + $0xf8] sm:$0xff]   ;;  %v1859_v26 = vld [vmem:[#allocation4 + $0x8] sm:$0xff] }
 0x2f5   : > { %3818 = vmatprep.subr.bf16.mxu1 %v4243_v62  ;;  %v4258_v15 = vld [vmem:[%s5728_s5 + $0xb0] sm:$0xff]   ;;  %v4262_v24 = vld [vmem:[%s5728_s5 + $0xb8] sm:$0xff]   ;;  %v2292_v27 = vpack.c.bf16 %v1859_v26, %v1858_v25  ;;  %v4263_v28 = vld [vmem:[%s5728_s5 + $0x140] sm:$0xff]   ;;  %p4313_p2 = pnand %p4312_p1, %p4306_p12 }
 0x2f6   : > { %3881 = vmatpush3.bf16.msra.mxu0 %v4242_v61  ;;  %v1891_v22 = vld [vmem:[#allocation4 + $0x9] sm:$0xff]  ;;  %v1955_v29 = vld [vmem:[#allocation4 + $0x18] sm:$0xff]  ;;  %v1956_v30 = vld [vmem:[#allocation4 + $0x20] sm:$0xff] }
 0x2f7   : > { %3882 = vmatprep.subr.bf16.mxu0 %v4245_v0  ;;  %v2293_v23 = vpack.c.bf16 %v1891_v22, %v1890_v21  ;;  %v2295_v1 = vpack.c.bf16 %v1956_v30, %v1955_v29  ;;  %v4264_v2 = vld [vmem:[%s5728_s5 + $0x100] sm:$0xff]   ;;  %v1923_v33 = vld [vmem:[#allocation4 + $0xa] sm:$0xff]  ;;  %v1958_v40 = vld [vmem:[#allocation4 + $0x38] sm:$0xff] }
 0x2f8   : > { %3819 = vmatpush3.bf16.msra.mxu1 %v4244_v63  ;;  %v1922_v32 = vld [vmem:[#allocation4 + $0x2] sm:$0xff]  ;;  %v1892_v34 = vld [vmem:[#allocation4 + $0x19] sm:$0xff]  ;;  %v1957_v39 = vld [vmem:[#allocation4 + $0x30] sm:$0xff] }
 0x2f9   : > { %3820 = vmatprep.subr.bf16.mxu1 %v4247_v4  ;;  %2979 = vmatprep.mubr.bf16.mxu1 %v2293_v23  ;;  %v2294_v35 = vpack.c.bf16 %v1923_v33, %v1922_v32  ;;  %v1893_v36 = vld [vmem:[#allocation4 + $0x21] sm:$0xff]  ;;  %v5320_v41 = vpack.c.bf16 %v1958_v40, %v1957_v39  ;;  %v1894_v11 = vld [vmem:[#allocation4 + $0x31] sm:$0xff]  ;;  %v1895_v12 = vld [vmem:[#allocation4 + $0x39] sm:$0xff] }
 0x2fa   : > { %3883 = vmatpush3.bf16.msra.mxu0 %v4246_v3  ;;  %3076 = vmatprep.mubr.bf16.mxu0 %v2295_v1  ;;  %v5315_v37 = vpack.c.bf16 %v1893_v36, %v1892_v34  ;;  %v4265_v38 = vld [vmem:[%s5728_s5 + $0x148] sm:$0xff]   ;;  %v1924_v43 = vld [vmem:[#allocation4 + $0x1a] sm:$0xff]  ;;  %v5327_v45 = vpack.c.bf16 %v1895_v12, %v1894_v11  ;;  %v4267_v46 = vld [vmem:[%s5728_s5 + $0x150] sm:$0xff]  }
 0x2fb   : > { %3884 = vmatprep.subr.bf16.mxu0 %v4249_v6  ;;  %v4266_v42 = vld [vmem:[%s5728_s5 + $0x108] sm:$0xff]   ;;  %v1960_v48 = vld [vmem:[#allocation4 + $0x50] sm:$0xff]  ;;  %v1927_v52 = vld [vmem:[#allocation4 + $0x3a] sm:$0xff] }
 0x2fc   : > { %3821 = vmatpush3.bf16.msra.mxu1 %v4248_v5  ;;  %v1925_v44 = vld [vmem:[#allocation4 + $0x22] sm:$0xff]  ;;  %v4268_v50 = vld [vmem:[%s5728_s5 + $0x110] sm:$0xff]   ;;  %v4269_v55 = vld [vmem:[%s5728_s5 + $0x158] sm:$0xff]  }
 0x2fd   : > { %3822 = vmatprep.subr.bf16.mxu1 %v4251_v8  ;;  %v1959_v47 = vld [vmem:[#allocation4 + $0x48] sm:$0xff]  ;;  %v5332_v49 = vpack.c.bf16 %v1925_v44, %v1924_v43  ;;  %v1926_v51 = vld [vmem:[#allocation4 + $0x32] sm:$0xff]  ;;  %v1961_v57 = vld [vmem:[#allocation4 + $0x60] sm:$0xff] }
 0x2fe   : > { %3885 = vmatpush3.bf16.msra.mxu0 %v4250_v7  ;;  %v5337_v31 = vpack.c.bf16 %v1960_v48, %v1959_v47  ;;  %v1896_v53 = vld [vmem:[#allocation4 + $0x49] sm:$0xff]  ;;  %v1897_v54 = vld [vmem:[#allocation4 + $0x51] sm:$0xff]  ;;  %v4271_v60 = vld [vmem:[%s5728_s5 + $0x1c0] sm:$0xff]   ;;  %v5356_v62 = vpack.c.bf16 %v1927_v52, %v1926_v51 }
 0x2ff   : > { %3886 = vmatprep.subr.bf16.mxu0 %v4253_v10  ;;  %v4270_v56 = vld [vmem:[%s5728_s5 + $0x118] sm:$0xff]   ;;  %v1962_v58 = vld [vmem:[#allocation4 + $0x68] sm:$0xff]  ;;  %v5348_v59 = vpack.c.bf16 %v1897_v54, %v1896_v53  ;;  %v4272_v61 = vld [vmem:[%s5728_s5 + $0x180] sm:$0xff]  }
 0x300   : > { %3823 = vmatpush3.bf16.msra.mxu1 %v4252_v9  ;;  %v5359_v63 = vpack.c.bf16 %v1962_v58, %v1961_v57  ;;  %v4273_v0 = vld [vmem:[%s5728_s5 + $0x160] sm:$0xff]   ;;  %v1928_v4 = vld [vmem:[#allocation4 + $0x4a] sm:$0xff]  ;;  %v1929_v5 = vld [vmem:[#allocation4 + $0x52] sm:$0xff] }
 0x301   : > { %3824 = vmatprep.subr.bf16.mxu1 %v4255_v14  ;;  %v4274_v3 = vld [vmem:[%s5728_s5 + $0x120] sm:$0xff]   ;;  %v1899_v7 = vld [vmem:[#allocation4 + $0x69] sm:$0xff]  ;;  %v1963_v9 = vld [vmem:[#allocation4 + $0x78] sm:$0xff] }
 0x302   : > { %3887 = vmatpush3.bf16.msra.mxu0 %v4254_v13  ;;  %v1898_v6 = vld [vmem:[#allocation4 + $0x61] sm:$0xff]  ;;  %v4279_v21 = vld [vmem:[%s5728_s5 + $0x1d0] sm:$0xff]   ;;  %v4281_v26 = vld [vmem:[%s5728_s5 + $0x1d8] sm:$0xff]  }
 0x303   : > { %3888 = vmatprep.subr.bf16.mxu0 %v4257_v18  ;;  %v4275_v8 = vld [vmem:[%s5728_s5 + $0x1c8] sm:$0xff]   ;;  %v5376_v13 = vpack.c.bf16 %v1899_v7, %v1898_v6  ;;  %v1964_v14 = vld [vmem:[#allocation4 + $0x80] sm:$0xff]  ;;  %v5381_v18 = vpack.c.bf16 %v1929_v5, %v1928_v4  ;;  %v1965_v25 = vld [vmem:[#allocation4 + $0x90] sm:$0xff] }
 0x304   : > { %3825 = vmatpush3.bf16.msra.mxu1 %v4256_v17  ;;  %v4276_v10 = vld [vmem:[%s5728_s5 + $0x188] sm:$0xff]   ;;  %v4282_v29 = vld [vmem:[%s5728_s5 + $0x198] sm:$0xff]   ;;  %v4283_v30 = vld [vmem:[%s5728_s5 + $0x170] sm:$0xff]  }
 0x305   : > { %3826 = vmatprep.subr.bf16.mxu1 %v4259_v16  ;;  %v4277_v17 = vld [vmem:[%s5728_s5 + $0x168] sm:$0xff]   ;;  %v5387_v16 = vpack.c.bf16 %v1964_v14, %v1963_v9  ;;  %v1902_v33 = vld [vmem:[#allocation4 + $0x91] sm:$0xff]  ;;  %v1903_v34 = vld [vmem:[#allocation4 + $0x99] sm:$0xff] }
 0x306   : > { %3889 = vmatpush3.bf16.msra.mxu0 %v4258_v15  ;;  %v4278_v15 = vld [vmem:[%s5728_s5 + $0x128] sm:$0xff]   ;;  %v1932_v36 = vld [vmem:[#allocation4 + $0x7a] sm:$0xff]  ;;  %v1968_v43 = vld [vmem:[#allocation4 + $0xb0] sm:$0xff]  ;;  %v5429_v44 = vpack.c.bf16 %v1903_v34, %v1902_v33 }
 0x307   : > { %3890 = vmatprep.subr.bf16.mxu0 %v4261_v20  ;;  %v1901_v20 = vld [vmem:[#allocation4 + $0x81] sm:$0xff]  ;;  %v1931_v23 = vld [vmem:[#allocation4 + $0x6a] sm:$0xff]  ;;  %v4289_v12 = vld [vmem:[%s5728_s5 + $0x178] sm:$0xff]  }
 0x308   : > { %3827 = vmatpush3.bf16.msra.mxu1 %v4260_v19  ;;  %v1900_v19 = vld [vmem:[#allocation4 + $0x79] sm:$0xff]  ;;  %v1930_v22 = vld [vmem:[#allocation4 + $0x62] sm:$0xff]  ;;  %v1905_v51 = vld [vmem:[#allocation4 + $0xb1] sm:$0xff] }
 0x309   : > { %3940 = vmatprep.subr.bf16.mxu1 %v4263_v28  ;;  %v5401_v28 = vpack.c.bf16 %v1901_v20, %v1900_v19  ;;  %v4286_v39 = vld [vmem:[%s5728_s5 + $0x1a0] sm:$0xff]   ;;  %v1967_v40 = vld [vmem:[#allocation4 + $0xa8] sm:$0xff]  ;;  %v4290_v47 = vld [vmem:[%s5728_s5 + $0x138] sm:$0xff]  }
 0x30a   : > { %3891 = vmatpush3.bf16.msra.mxu0 %v4262_v24  ;;  %v4280_v24 = vld [vmem:[%s5728_s5 + $0x190] sm:$0xff]   ;;  %v4288_v11 = vld [vmem:[%s5728_s5 + $0x1a8] sm:$0xff]   ;;  %v5443_v48 = vpack.c.bf16 %v1968_v43, %v1967_v40  ;;  %v1935_v54 = vld [vmem:[#allocation4 + $0x9a] sm:$0xff] }
 0x30b   : > { %2980 = vmatmul.mubr.bf16.vlgmr.msra.gmra.mrb[0].mxu1 %v2292_v27  ;;  %4004 = vmatprep.subr.bf16.mxu0 %v4271_v60  ;;  %v1966_v27 = vld [vmem:[#allocation4 + $0x98] sm:$0xff]  ;;  %v4291_v52 = vld [vmem:[%s5728_s5 + $0x1f0] sm:$0xff]   ;;  %v1970_v57 = vld [vmem:[#allocation4 + $0xc8] sm:$0xff] }
 0x30c   : > { %3941 = vmatpush3.bf16.msra.mxu1 %v4264_v2  ;;  %2987 = vmatprep.mubr.bf16.mxu1 %v5315_v37  ;;  %v4284_v2 = vld [vmem:[%s5728_s5 + $0x130] sm:$0xff]   ;;  %v5415_v32 = vpack.c.bf16 %v1966_v27, %v1965_v25  ;;  %v4293_v58 = vld [vmem:[%s5728_s5 + $0x1f8] sm:$0xff]  }
 0x30d   : > { %3077 = vmatmul.mubr.bf16.vlgmr.msra.gmra.mrb[20].mxu0 %v2294_v35  ;;  %3942 = vmatprep.subr.bf16.mxu1 %v4265_v38  ;;  %v4285_v35 = vld [vmem:[%s5728_s5 + $0x1e0] sm:$0xff]   ;;  %v1934_v53 = vld [vmem:[#allocation4 + $0x92] sm:$0xff]  ;;  %v1936_v5 = vld [vmem:[#allocation4 + $0xaa] sm:$0xff] }
 0x30e   : > { %3084 = vmatprep.mubr.bf16.mxu0 %v5320_v41  ;;  %4005 = vmatpush3.bf16.msra.mxu0 %v4272_v61  ;;  %v1933_v38 = vld [vmem:[#allocation4 + $0x82] sm:$0xff]  ;;  %v4294_v60 = vld [vmem:[%s5728_s5 + $0x1b8] sm:$0xff]   ;;  %v4297_v9 = vld [vmem:[%s5728_s5 + $0x210] sm:$0xff]  }
 0x30f   : > { %4006 = vmatprep.subr.bf16.mxu0 %v4275_v8  ;;  %v1937_v6 = vld [vmem:[#allocation4 + $0xb2] sm:$0xff]  ;;  %v4296_v8 = vld [vmem:[%s5728_s5 + $0x208] sm:$0xff]  }
 0x310   : > { %3943 = vmatpush3.bf16.msra.mxu1 %v4266_v42  ;;  %v4287_v42 = vld [vmem:[%s5728_s5 + $0x1e8] sm:$0xff]   ;;  %v5473_v7 = vpack.c.bf16 %v1937_v6, %v1936_v5  ;;  %v2066_v20 = vld [vmem:[#allocation4 + $0xd8] sm:$0xff] }
 0x311   : > { %3944 = vmatprep.subr.bf16.mxu1 %v4267_v46  ;;  %v5437_v46 = vpack.c.bf16 %v1933_v38, %v1932_v36  ;;  %v2034_v14 = vld [vmem:[#allocation4 + $0xca] sm:$0xff] }
 0x312   : > { %4007 = vmatpush3.bf16.msra.mxu0 %v4276_v10 }
 0x313   : > { %2988 = vmatmul.mubr.bf16.gmra.mrb[4].mxu1 %v2295_v1  ;;  %4008 = vmatprep.subr.bf16.mxu0 %v4279_v21  ;;  %v5409_v1 = vpack.c.bf16 %v1931_v23, %v1930_v22  ;;  %v2067_v21 = vld [vmem:[#allocation4 + $0xe0] sm:$0xff] }
 0x314   : > { %2995 = vmatprep.mubr.bf16.mxu1 %v5327_v45  ;;  %3945 = vmatpush3.bf16.msra.mxu1 %v4268_v50  ;;  %v1904_v50 = vld [vmem:[#allocation4 + $0xa9] sm:$0xff]  ;;  %v2361_v22 = vpack.c.bf16 %v2067_v21, %v2066_v20  ;;  %v2130_v23 = vld [vmem:[#allocation4 + $0xda] sm:$0xff] }
 0x315   : > { %3085 = vmatmul.mubr.bf16.gmra.mrb[24].mxu0 %v5332_v49  ;;  %3946 = vmatprep.subr.bf16.mxu1 %v4269_v55  ;;  %v4292_v55 = vld [vmem:[%s5728_s5 + $0x1b0] sm:$0xff]   ;;  %v5460_v61 = vpack.c.bf16 %v1905_v51, %v1904_v50 }
 0x316   : > { %3092 = vmatprep.mubr.bf16.mxu0 %v5337_v31  ;;  %4009 = vmatpush3.bf16.msra.mxu0 %v4280_v24  ;;  %v2131_v24 = vld [vmem:[#allocation4 + $0xe2] sm:$0xff] }
 0x317   : > { %4010 = vmatprep.subr.bf16.mxu0 %v4281_v26  ;;  %v2363_v25 = vpack.c.bf16 %v2131_v24, %v2130_v23 }
 0x318   : > { %3947 = vmatpush3.bf16.msra.mxu1 %v4270_v56  ;;  %v1969_v56 = vld [vmem:[#allocation4 + $0xc0] sm:$0xff] }
 0x319   : > { %3948 = vmatprep.subr.bf16.mxu1 %v4273_v0  ;;  %v4295_v0 = vld [vmem:[%s5728_s5 + $0x200] sm:$0xff]   ;;  %v5468_v4 = vpack.c.bf16 %v1970_v57, %v1969_v56 }
 0x31a   : > { %4011 = vmatpush3.bf16.msra.mxu0 %v4282_v29 }
 0x31b   : > { %2996 = vmatmul.mubr.bf16.gmra.mrb[8].mxu1 %v5320_v41  ;;  %4012 = vmatprep.subr.bf16.mxu0 %v4285_v35 }
 0x31c   : > { %3003 = vmatprep.mubr.bf16.mxu1 %v5348_v59  ;;  %3949 = vmatpush3.bf16.msra.mxu1 %v4274_v3  ;;  %v5465_v3 = vpack.c.bf16 %v1935_v54, %v1934_v53 }
 0x31d   : > { %3093 = vmatmul.mubr.bf16.gmra.mrb[28].mxu0 %v5356_v62  ;;  %3950 = vmatprep.subr.bf16.mxu1 %v4277_v17 }
 0x31e   : > { %3100 = vmatprep.mubr.bf16.mxu0 %v5359_v63  ;;  %4013 = vmatpush3.bf16.msra.mxu0 %v4286_v39 }
 0x31f   : > { %4014 = vmatprep.subr.bf16.mxu0 %v4287_v42 }
 0x320   : > { %3951 = vmatpush3.bf16.msra.mxu1 %v4278_v15  ;;  %v2098_v15 = vld [vmem:[#allocation4 + $0xd9] sm:$0xff] }
 0x321   : > { %3952 = vmatprep.subr.bf16.mxu1 %v4283_v30 }
 0x322   : > { %4015 = vmatpush3.bf16.msra.mxu0 %v4288_v11 }
 0x323   : > { %3004 = vmatmul.mubr.bf16.gmra.mrb[12].mxu1 %v5337_v31  ;;  %4016 = vmatprep.subr.bf16.mxu0 %v4291_v52 }
 0x324   : > { %3011 = vmatprep.mubr.bf16.mxu1 %v5376_v13  ;;  %3953 = vmatpush3.bf16.msra.mxu1 %v4284_v2 }
 0x325   : > { %3101 = vmatmul.mubr.bf16.gmra.mrb[32].mxu0 %v5381_v18  ;;  %3954 = vmatprep.subr.bf16.mxu1 %v4289_v12 }
 0x326   : > { %3108 = vmatprep.mubr.bf16.mxu0 %v5387_v16  ;;  %4017 = vmatpush3.bf16.msra.mxu0 %v4292_v55 }
 0x327   : > { %4018 = vmatprep.subr.bf16.mxu0 %v4293_v58 }
 0x328   : > { %3955 = vmatpush3.bf16.msra.mxu1 %v4290_v47 }
 0x329   : > { %4110 = vmatprep.subr.bf16.mxu1 %v4295_v0 }
 0x32a   : > { %4019 = vmatpush3.bf16.msra.mxu0 %v4294_v60 }
 0x32b   : > { %3012 = vmatmul.mubr.bf16.gmra.mrb[16].mxu1 %v5359_v63 }
 0x32c   : > { %3019 = vmatprep.mubr.bf16.mxu1 %v5401_v28 }
 0x32d   : > { %3109 = vmatmul.mubr.bf16.gmra.mrb[36].mxu0 %v5409_v1 }
 0x32e   : > { %3116 = vmatprep.mubr.bf16.mxu0 %v5415_v32 }
 0x333   : > { %3020 = vmatmul.mubr.bf16.gmra.mrb[20].mxu1 %v5387_v16 }
 0x334   : > { %3027 = vmatprep.mubr.bf16.mxu1 %v5429_v44 }
 0x335   : > { %3117 = vmatmul.mubr.bf16.gmra.mrb[40].mxu0 %v5437_v46 }
 0x336   : > { %3124 = vmatprep.mubr.bf16.mxu0 %v5443_v48 }
 0x33b   : > { %3028 = vmatmul.mubr.bf16.gmra.mrb[24].mxu1 %v5415_v32 }
 0x33c   : > { %3035 = vmatprep.mubr.bf16.mxu1 %v5460_v61 }
 0x33d   : > { %3125 = vmatmul.mubr.bf16.gmra.mrb[44].mxu0 %v5465_v3 }
 0x33e   : > { %3132 = vmatprep.mubr.bf16.mxu0 %v5468_v4 }
 0x343   : > { %3036 = vmatmul.mubr.bf16.gmra.mrb[28].mxu1 %v5443_v48 }
 0x344   : > { %3173 = vmatprep.mubr.bf16.mxu1 %v5332_v49  ;;  %v4298_v49 = vld [vmem:[%s5728_s5 + $0x218] sm:$0xff]  }
 0x345   : > { %3133 = vmatmul.mubr.bf16.gmra.mrb[48].mxu0 %v5473_v7 }
 0x346   : > { %3270 = vmatprep.mubr.bf16.mxu0 %v5327_v45 }
 0x34b   : > { %3174 = vmatmul.mubr.bf16.vlgmr.msra.gmra.mrb[32].mxu1 %v5315_v37  ;;  %v4299_v37 = vld [vmem:[%s5728_s5 + $0x220] sm:$0xff]  }
 0x34c   : > { %4111 = vmatpush3.bf16.msra.mxu1 %v4295_v0  ;;  %3181 = vmatprep.mubr.bf16.mxu1 %v5356_v62 }
 0x34d   : > { %4112 = vmatprep.subr.bf16.mxu1 %v4296_v8  ;;  %3271 = vmatmul.mubr.bf16.vlgmr.msra.gmra.mrb[52].mxu0 %v5320_v41  ;;  %v4300_v41 = vld [vmem:[%s5728_s5 + $0x228] sm:$0xff]  }
 0x34e   : > { %3278 = vmatprep.mubr.bf16.mxu0 %v5348_v59 }
 0x350   : > { %4113 = vmatpush3.bf16.msra.mxu1 %v4296_v8 }
 0x351   : > { %4114 = vmatprep.subr.bf16.mxu1 %v4297_v9 }
 0x353   : > { %3182 = vmatmul.mubr.bf16.gmra.mrb[36].mxu1 %v5327_v45  ;;  %v4301_v45 = vld [vmem:[%s5728_s5 + $0x230] sm:$0xff]  }
 0x354   : > { %3189 = vmatprep.mubr.bf16.mxu1 %v5381_v18  ;;  %4115 = vmatpush3.bf16.msra.mxu1 %v4297_v9 }
 0x355   : > { %4116 = vmatprep.subr.bf16.mxu1 %v4298_v49  ;;  %3279 = vmatmul.mubr.bf16.gmra.mrb[56].mxu0 %v5337_v31  ;;  %v4302_v31 = vld [vmem:[%s5728_s5 + $0x238] sm:$0xff]  }
 0x356   : > { %3286 = vmatprep.mubr.bf16.mxu0 %v5376_v13 }
 0x358   : > { %4117 = vmatpush3.bf16.msra.mxu1 %v4298_v49 }
 0x359   : > { %4118 = vmatprep.subr.bf16.mxu1 %v4299_v37 }
 0x35b   : > { %3190 = vmatmul.mubr.bf16.gmra.mrb[40].mxu1 %v5348_v59  ;;  %v2096_v59 = vld [vmem:[#allocation4 + $0xc1] sm:$0xff] }
 0x35c   : > { %3197 = vmatprep.mubr.bf16.mxu1 %v5409_v1  ;;  %4119 = vmatpush3.bf16.msra.mxu1 %v4299_v37 }
 0x35d   : > { %4120 = vmatprep.subr.bf16.mxu1 %v4300_v41  ;;  %3287 = vmatmul.mubr.bf16.gmra.mrb[60].mxu0 %v5359_v63  ;;  %v2097_v63 = vld [vmem:[#allocation4 + $0xc9] sm:$0xff] }
 0x35e   : > { %3294 = vmatprep.mubr.bf16.mxu0 %v5401_v28  ;;  %v2353_v10 = vpack.c.bf16 %v2097_v63, %v2096_v59 }
 0x360   : > { %4121 = vmatpush3.bf16.msra.mxu1 %v4300_v41 }
 0x361   : > { %4122 = vmatprep.subr.bf16.mxu1 %v4301_v45 }
 0x363   : > { %3198 = vmatmul.mubr.bf16.gmra.mrb[44].mxu1 %v5376_v13  ;;  %v2033_v13 = vld [vmem:[#allocation4 + $0xc2] sm:$0xff] }
 0x364   : > { %3205 = vmatprep.mubr.bf16.mxu1 %v5437_v46  ;;  %4123 = vmatpush3.bf16.msra.mxu1 %v4301_v45  ;;  %v2360_v17 = vpack.c.bf16 %v2034_v14, %v2033_v13 }
 0x365   : > { %4124 = vmatprep.subr.bf16.mxu1 %v4302_v31  ;;  %3295 = vmatmul.mubr.bf16.gmra.mrb[64].mxu0 %v5387_v16  ;;  %v2099_v16 = vld [vmem:[#allocation4 + $0xe1] sm:$0xff] }
 0x366   : > { %3302 = vmatprep.mubr.bf16.mxu0 %v5429_v44  ;;  %v2362_v19 = vpack.c.bf16 %v2099_v16, %v2098_v15 }
 0x368   : > { %4125 = vmatpush3.bf16.msra.mxu1 %v4302_v31 }
 0x36b   : > { %3206 = vmatmul.mubr.bf16.gmra.mrb[48].mxu1 %v5401_v28 }
 0x36c   : > { %3213 = vmatprep.mubr.bf16.mxu1 %v5465_v3 }
 0x36d   : > { %3303 = vmatmul.mubr.bf16.gmra.mrb[68].mxu0 %v5415_v32 }
 0x36e   : > { %3310 = vmatprep.mubr.bf16.mxu0 %v5460_v61 }
 0x373   : > { %3214 = vmatmul.mubr.bf16.gmra.mrb[52].mxu1 %v5429_v44 }
 0x374   : > { %3221 = vmatprep.mubr.bf16.mxu1 %v5473_v7 }
 0x375   : > { %3311 = vmatmul.mubr.bf16.gmra.mrb[72].mxu0 %v5443_v48 }
 0x376   : > { %3318 = vmatprep.mubr.bf16.mxu0 %v2353_v10 }
 0x37b   : > { %3222 = vmatmul.mubr.bf16.gmra.mrb[56].mxu1 %v5460_v61 }
 0x37c   : > { %3229 = vmatprep.mubr.bf16.mxu1 %v2360_v17 }
 0x37d   : > { %3319 = vmatmul.mubr.bf16.gmra.mrb[76].mxu0 %v5468_v4 }
 0x37e   : > { %3326 = vmatprep.mubr.bf16.mxu0 %v2362_v19 }
 0x383   : > { %3230 = vmatmul.mubr.bf16.gmra.mrb[60].mxu1 %v2353_v10 }
 0x384   : > { %4126 = vmatprep.mubr.bf16.mxu1 %v5356_v62  ;;  %v5534_v62 = vld [vmem:[%s5729_s6] ss:$0 sm:$0xff] }
 0x385   : > { %3327 = vmatmul.mubr.bf16.gmra.mrb[80].mxu0 %v2361_v22 }
 0x38b   : > { %4127 = vmatmul.mubr.bf16.vlgmr.msra.gmra.mrb[64].mxu1 %v5381_v18 }
 0x38c   : > { %4130 = vmatprep.mubr.bf16.mxu1 %v5409_v1 }
 0x393   : > { %4131 = vmatmul.mubr.bf16.gmra.mrb[68].mxu1 %v5437_v46 }
 0x394   : > { %4134 = vmatprep.mubr.bf16.mxu1 %v5465_v3 }
 0x39b   : > { %4135 = vmatmul.mubr.bf16.gmra.mrb[72].mxu1 %v5473_v7 }
 0x39c   : > { %4138 = vmatprep.mubr.bf16.mxu1 %v2360_v17 }
 0x3a3   : > { %4139 = vmatmul.mubr.bf16.gmra.mrb[76].mxu1 %v2363_v25 }
 0x3de   : > { %v3828_v26 = vpop.f32.mrb[0].mxu1 }
 0x3df   : > { %v3829_v18 = vpop.f32.mrb[1].mxu1 }
 0x3e0   : > { %v3830_v27 = vadd.f32 %v3829_v18, %v3828_v26  ;;  %v3831_v28 = vpop.f32.mrb[2].mxu1  ;;  %v3892_v29 = vpop.f32.mrb[20].mxu0 }
 0x3e1   : > { %v3832_v30 = vpop.f32.mrb[3].mxu1  ;;  %v3893_v32 = vpop.f32.mrb[21].mxu0 }
 0x3e2   : > { %v2982_v1 = vadd.f32 %v3830_v27, %v5534_v62  ;;  %v3833_v2 = vadd.f32 %v3832_v30, %v3831_v28  ;;  %v3894_v33 = vadd.f32 %v3893_v32, %v3892_v29  ;;  %v3895_v34 = vpop.f32.mrb[22].mxu0 }
 0x3e3   : > { %v3896_v36 = vpop.f32.mrb[23].mxu0 }
 0x3e4   : > { %v2985_v35 = vadd.f32 %v3833_v2, %v5534_v62  ;;  %v5538_v38 = vadd.f32 %v3894_v33, %v2982_v1  ;;  %v3897_v39 = vadd.f32 %v3896_v36, %v3895_v34 }
 0x3e6   : > { %v3834_v40 = vpop.f32.mrb[4].mxu1  ;;  %v5540_v42 = vadd.f32 %v3897_v39, %v2985_v35 }
 0x3e7   : > { %v3835_v43 = vpop.f32.mrb[5].mxu1 }
 0x3e8   : > { %v3836_v44 = vadd.f32 %v3835_v43, %v3834_v40  ;;  %v3837_v11 = vpop.f32.mrb[6].mxu1  ;;  %v3898_v12 = vpop.f32.mrb[24].mxu0 }
 0x3e9   : > { %v3838_v46 = vpop.f32.mrb[7].mxu1  ;;  %v3899_v50 = vpop.f32.mrb[25].mxu0 }
 0x3ea   : > { %v2990_v47 = vadd.f32 %v3836_v44, %v5534_v62  ;;  %v3839_v48 = vadd.f32 %v3838_v46, %v3837_v11  ;;  %v3900_v51 = vadd.f32 %v3899_v50, %v3898_v12  ;;  %v3901_v52 = vpop.f32.mrb[26].mxu0 }
 0x3eb   : > { %v3902_v54 = vpop.f32.mrb[27].mxu0 }
 0x3ec   : > { %v2993_v53 = vadd.f32 %v3839_v48, %v5534_v62  ;;  %v5544_v55 = vadd.f32 %v3900_v51, %v2990_v47  ;;  %v3903_v56 = vadd.f32 %v3902_v54, %v3901_v52 }
 0x3ee   : > { %v3840_v57 = vpop.f32.mrb[8].mxu1  ;;  %v5546_v58 = vadd.f32 %v3903_v56, %v2993_v53 }
 0x3ef   : > { %v3841_v60 = vpop.f32.mrb[9].mxu1 }
 0x3f0   : > { %v3842_v61 = vadd.f32 %v3841_v60, %v3840_v57  ;;  %v3843_v0 = vpop.f32.mrb[10].mxu1  ;;  %v3904_v3 = vpop.f32.mrb[28].mxu0 }
 0x3f1   : > { %v3844_v4 = vpop.f32.mrb[11].mxu1  ;;  %v3905_v7 = vpop.f32.mrb[29].mxu0 }
 0x3f2   : > { %v2998_v5 = vadd.f32 %v3842_v61, %v5534_v62  ;;  %v3845_v6 = vadd.f32 %v3844_v4, %v3843_v0  ;;  %v3906_v8 = vadd.f32 %v3905_v7, %v3904_v3  ;;  %v3907_v9 = vpop.f32.mrb[30].mxu0 }
 0x3f3   : > { %v3908_v37 = vpop.f32.mrb[31].mxu0 }
 0x3f4   : > { %v3001_v49 = vadd.f32 %v3845_v6, %v5534_v62  ;;  %v5550_v41 = vadd.f32 %v3906_v8, %v2998_v5  ;;  %v3909_v45 = vadd.f32 %v3908_v37, %v3907_v9 }
 0x3f6   : > { %v3846_v31 = vpop.f32.mrb[12].mxu1  ;;  %v5552_v59 = vadd.f32 %v3909_v45, %v3001_v49 }
 0x3f7   : > { %v3847_v63 = vpop.f32.mrb[13].mxu1 }
 0x3f8   : > { %v3848_v10 = vadd.f32 %v3847_v63, %v3846_v31  ;;  %v3849_v13 = vpop.f32.mrb[14].mxu1  ;;  %v3910_v14 = vpop.f32.mrb[32].mxu0 }
 0x3f9   : > { %v3850_v17 = vpop.f32.mrb[15].mxu1  ;;  %v3911_v19 = vpop.f32.mrb[33].mxu0 }
 0x3fa   : > { %v3006_v15 = vadd.f32 %v3848_v10, %v5534_v62  ;;  %v3851_v16 = vadd.f32 %v3850_v17, %v3849_v13  ;;  %v3912_v20 = vadd.f32 %v3911_v19, %v3910_v14  ;;  %v3913_v21 = vpop.f32.mrb[34].mxu0 }
 0x3fb   : > { %v3914_v23 = vpop.f32.mrb[35].mxu0 }
 0x3fc   : > { %v3009_v22 = vadd.f32 %v3851_v16, %v5534_v62  ;;  %v5556_v24 = vadd.f32 %v3912_v20, %v3006_v15  ;;  %v3915_v25 = vadd.f32 %v3914_v23, %v3913_v21 }
 0x3fe   : > { %v3852_v26 = vpop.f32.mrb[16].mxu1  ;;  %v5558_v18 = vadd.f32 %v3915_v25, %v3009_v22 }
 0x3ff   : > { %v3853_v27 = vpop.f32.mrb[17].mxu1 }
 0x400   : > { %v3854_v28 = vadd.f32 %v3853_v27, %v3852_v26  ;;  %v3855_v29 = vpop.f32.mrb[18].mxu1  ;;  %v3916_v30 = vpop.f32.mrb[36].mxu0 }
 0x401   : > { %v3856_v1 = vpop.f32.mrb[19].mxu1  ;;  %v3917_v33 = vpop.f32.mrb[37].mxu0 }
 0x402   : > { %v3014_v2 = vadd.f32 %v3854_v28, %v5534_v62  ;;  %v3857_v32 = vadd.f32 %v3856_v1, %v3855_v29  ;;  %v3918_v34 = vadd.f32 %v3917_v33, %v3916_v30  ;;  %v3919_v35 = vpop.f32.mrb[38].mxu0 }
 0x403   : > { %v3920_v39 = vpop.f32.mrb[39].mxu0 }
 0x404   : > { %v3017_v36 = vadd.f32 %v3857_v32, %v5534_v62  ;;  %v5562_v40 = vadd.f32 %v3918_v34, %v3014_v2  ;;  %v3921_v43 = vadd.f32 %v3920_v39, %v3919_v35 }
 0x406   : > { %v3858_v44 = vpop.f32.mrb[20].mxu1  ;;  %v5564_v11 = vadd.f32 %v3921_v43, %v3017_v36 }
 0x407   : > { %v3859_v12 = vpop.f32.mrb[21].mxu1 }
 0x408   : > { %v3860_v46 = vadd.f32 %v3859_v12, %v3858_v44  ;;  %v3861_v47 = vpop.f32.mrb[22].mxu1  ;;  %v3922_v48 = vpop.f32.mrb[40].mxu0 }
 0x409   : > { %v3862_v50 = vpop.f32.mrb[23].mxu1  ;;  %v3923_v53 = vpop.f32.mrb[41].mxu0 }
 0x40a   : > { %v3022_v51 = vadd.f32 %v3860_v46, %v5534_v62  ;;  %v3863_v52 = vadd.f32 %v3862_v50, %v3861_v47  ;;  %v3924_v54 = vadd.f32 %v3923_v53, %v3922_v48  ;;  %v3925_v56 = vpop.f32.mrb[42].mxu0 }
 0x40b   : > { %v3926_v60 = vpop.f32.mrb[43].mxu0 }
 0x40c   : > { %v3025_v57 = vadd.f32 %v3863_v52, %v5534_v62  ;;  %v5568_v61 = vadd.f32 %v3924_v54, %v3022_v51  ;;  %v3927_v0 = vadd.f32 %v3926_v60, %v3925_v56 }
 0x40e   : > { %v3864_v3 = vpop.f32.mrb[24].mxu1  ;;  %v5570_v4 = vadd.f32 %v3927_v0, %v3025_v57 }
 0x40f   : > { %v3865_v5 = vpop.f32.mrb[25].mxu1 }
 0x410   : > { %v3866_v6 = vadd.f32 %v3865_v5, %v3864_v3  ;;  %v3867_v7 = vpop.f32.mrb[26].mxu1  ;;  %v3928_v8 = vpop.f32.mrb[44].mxu0 }
 0x411   : > { %v3868_v9 = vpop.f32.mrb[27].mxu1  ;;  %v3929_v45 = vpop.f32.mrb[45].mxu0 }
 0x412   : > { %v3030_v49 = vadd.f32 %v3866_v6, %v5534_v62  ;;  %v3869_v37 = vadd.f32 %v3868_v9, %v3867_v7  ;;  %v3930_v31 = vadd.f32 %v3929_v45, %v3928_v8  ;;  %v3931_v63 = vpop.f32.mrb[46].mxu0 }
 0x413   : > { %v3932_v13 = vpop.f32.mrb[47].mxu0 }
 0x414   : > { %v3033_v10 = vadd.f32 %v3869_v37, %v5534_v62  ;;  %v5574_v14 = vadd.f32 %v3930_v31, %v3030_v49  ;;  %v3933_v17 = vadd.f32 %v3932_v13, %v3931_v63 }
 0x416   : > { %v3870_v15 = vpop.f32.mrb[28].mxu1  ;;  %v5576_v16 = vadd.f32 %v3933_v17, %v3033_v10 }
 0x417   : > { %v3871_v19 = vpop.f32.mrb[29].mxu1 }
 0x418   : > { %v3872_v20 = vadd.f32 %v3871_v19, %v3870_v15  ;;  %v3873_v21 = vpop.f32.mrb[30].mxu1  ;;  %v3934_v22 = vpop.f32.mrb[48].mxu0 }
 0x419   : > { %v3874_v23 = vpop.f32.mrb[31].mxu1  ;;  %v3935_v27 = vpop.f32.mrb[49].mxu0 }
 0x41a   : > { %v3038_v25 = vadd.f32 %v3872_v20, %v5534_v62  ;;  %v3875_v26 = vadd.f32 %v3874_v23, %v3873_v21  ;;  %v3936_v28 = vadd.f32 %v3935_v27, %v3934_v22  ;;  %v3937_v29 = vpop.f32.mrb[50].mxu0 }
 0x41b   : > { %v3938_v1 = vpop.f32.mrb[51].mxu0 }
 0x41c   : > { %v3041_v30 = vadd.f32 %v3875_v26, %v5534_v62  ;;  %v5580_v2 = vadd.f32 %v3936_v28, %v3038_v25  ;;  %v3939_v32 = vadd.f32 %v3938_v1, %v3937_v29 }
 0x41e   : > { %v3956_v33 = vpop.f32.mrb[32].mxu1  ;;  %v5582_v34 = vadd.f32 %v3939_v32, %v3041_v30 }
 0x41f   : > { %v3957_v35 = vpop.f32.mrb[33].mxu1 }
 0x420   : > { %v3958_v36 = vadd.f32 %v3957_v35, %v3956_v33  ;;  %v3959_v39 = vpop.f32.mrb[34].mxu1  ;;  %v4020_v43 = vpop.f32.mrb[52].mxu0 }
 0x421   : > { %v3960_v44 = vpop.f32.mrb[35].mxu1  ;;  %v4021_v47 = vpop.f32.mrb[53].mxu0 }
 0x422   : > { %v3176_v12 = vadd.f32 %v3958_v36, %v5538_v38  ;;  %v3961_v46 = vadd.f32 %v3960_v44, %v3959_v39  ;;  %v4022_v48 = vadd.f32 %v4021_v47, %v4020_v43  ;;  %v4023_v50 = vpop.f32.mrb[54].mxu0 }
 0x423   : > { %v4024_v51 = vpop.f32.mrb[55].mxu0 }
 0x424   : > { %v3179_v62 = vadd.f32 %v3961_v46, %v5540_v42  ;;  %v4025_v52 = vadd.f32 %v4024_v51, %v4023_v50  ;;  %v5586_v53 = vadd.f32 %v4022_v48, %v3176_v12 }
 0x426   : > { %v3962_v54 = vpop.f32.mrb[36].mxu1  ;;  %v5588_v57 = vadd.f32 %v4025_v52, %v3179_v62 }
 0x427   : > { %v3963_v56 = vpop.f32.mrb[37].mxu1 }
 0x428   : > { %v3964_v60 = vadd.f32 %v3963_v56, %v3962_v54  ;;  %v3965_v0 = vpop.f32.mrb[38].mxu1  ;;  %v4026_v3 = vpop.f32.mrb[56].mxu0 }
 0x429   : > { %v3966_v5 = vpop.f32.mrb[39].mxu1  ;;  %v4027_v7 = vpop.f32.mrb[57].mxu0 }
 0x42a   : > { %v3184_v38 = vadd.f32 %v3964_v60, %v5544_v55  ;;  %v3967_v6 = vadd.f32 %v3966_v5, %v3965_v0  ;;  %v4028_v8 = vadd.f32 %v4027_v7, %v4026_v3  ;;  %v4029_v9 = vpop.f32.mrb[58].mxu0 }
 0x42b   : > { %v4030_v49 = vpop.f32.mrb[59].mxu0 }
 0x42c   : > { %v3187_v42 = vadd.f32 %v3967_v6, %v5546_v58  ;;  %v4031_v37 = vadd.f32 %v4030_v49, %v4029_v9  ;;  %v5592_v45 = vadd.f32 %v4028_v8, %v3184_v38 }
 0x42e   : > { %v3968_v31 = vpop.f32.mrb[40].mxu1  ;;  %v5594_v10 = vadd.f32 %v4031_v37, %v3187_v42 }
 0x42f   : > { %v3969_v63 = vpop.f32.mrb[41].mxu1 }
 0x430   : > { %v3970_v13 = vadd.f32 %v3969_v63, %v3968_v31  ;;  %v3971_v17 = vpop.f32.mrb[42].mxu1  ;;  %v4032_v15 = vpop.f32.mrb[60].mxu0 }
 0x431   : > { %v3972_v19 = vpop.f32.mrb[43].mxu1  ;;  %v4033_v21 = vpop.f32.mrb[61].mxu0 }
 0x432   : > { %v3192_v55 = vadd.f32 %v3970_v13, %v5550_v41  ;;  %v3973_v20 = vadd.f32 %v3972_v19, %v3971_v17  ;;  %v4034_v22 = vadd.f32 %v4033_v21, %v4032_v15  ;;  %v4035_v23 = vpop.f32.mrb[62].mxu0 }
 0x433   : > { %v4036_v25 = vpop.f32.mrb[63].mxu0 }
 0x434   : > { %v3195_v58 = vadd.f32 %v3973_v20, %v5552_v59  ;;  %v4037_v26 = vadd.f32 %v4036_v25, %v4035_v23  ;;  %v5598_v27 = vadd.f32 %v4034_v22, %v3192_v55 }
 0x436   : > { %v3974_v28 = vpop.f32.mrb[44].mxu1  ;;  %v5600_v30 = vadd.f32 %v4037_v26, %v3195_v58 }
 0x437   : > { %v3975_v29 = vpop.f32.mrb[45].mxu1 }
 0x438   : > { %v3976_v1 = vadd.f32 %v3975_v29, %v3974_v28  ;;  %v3977_v32 = vpop.f32.mrb[46].mxu1  ;;  %v4038_v33 = vpop.f32.mrb[64].mxu0 }
 0x439   : > { %v3978_v35 = vpop.f32.mrb[47].mxu1  ;;  %v4039_v39 = vpop.f32.mrb[65].mxu0 }
 0x43a   : > { %v3200_v41 = vadd.f32 %v3976_v1, %v5556_v24  ;;  %v3979_v36 = vadd.f32 %v3978_v35, %v3977_v32  ;;  %v4040_v43 = vadd.f32 %v4039_v39, %v4038_v33  ;;  %v4041_v44 = vpop.f32.mrb[66].mxu0 }
 0x43b   : > { %v4042_v12 = vpop.f32.mrb[67].mxu0 }
 0x43c   : > { %v3203_v59 = vadd.f32 %v3979_v36, %v5558_v18  ;;  %v4043_v46 = vadd.f32 %v4042_v12, %v4041_v44  ;;  %v5604_v47 = vadd.f32 %v4040_v43, %v3200_v41 }
 0x43e   : > { %v3980_v48 = vpop.f32.mrb[48].mxu1  ;;  %v5606_v62 = vadd.f32 %v4043_v46, %v3203_v59 }
 0x43f   : > { %v3981_v50 = vpop.f32.mrb[49].mxu1 }
 0x440   : > { %v3982_v51 = vadd.f32 %v3981_v50, %v3980_v48  ;;  %v3983_v52 = vpop.f32.mrb[50].mxu1  ;;  %v4044_v54 = vpop.f32.mrb[68].mxu0 }
 0x441   : > { %v3984_v56 = vpop.f32.mrb[51].mxu1  ;;  %v4045_v0 = vpop.f32.mrb[69].mxu0 }
 0x442   : > { %v3208_v24 = vadd.f32 %v3982_v51, %v5562_v40  ;;  %v3985_v60 = vadd.f32 %v3984_v56, %v3983_v52  ;;  %v4046_v3 = vadd.f32 %v4045_v0, %v4044_v54  ;;  %v4047_v5 = vpop.f32.mrb[70].mxu0 }
 0x443   : > { %v4048_v38 = vpop.f32.mrb[71].mxu0 }
 0x444   : > { %v3211_v18 = vadd.f32 %v3985_v60, %v5564_v11  ;;  %v4049_v6 = vadd.f32 %v4048_v38, %v4047_v5  ;;  %v5610_v7 = vadd.f32 %v4046_v3, %v3208_v24 }
 0x446   : > { %v3986_v8 = vpop.f32.mrb[52].mxu1  ;;  %v5612_v42 = vadd.f32 %v4049_v6, %v3211_v18 }
 0x447   : > { %v3987_v9 = vpop.f32.mrb[53].mxu1 }
 0x448   : > { %v3988_v49 = vadd.f32 %v3987_v9, %v3986_v8  ;;  %v3989_v37 = vpop.f32.mrb[54].mxu1  ;;  %v4050_v31 = vpop.f32.mrb[72].mxu0 }
 0x449   : > { %v3990_v63 = vpop.f32.mrb[55].mxu1  ;;  %v4051_v17 = vpop.f32.mrb[73].mxu0 }
 0x44a   : > { %v3216_v40 = vadd.f32 %v3988_v49, %v5568_v61  ;;  %v3991_v13 = vadd.f32 %v3990_v63, %v3989_v37  ;;  %v4052_v15 = vadd.f32 %v4051_v17, %v4050_v31  ;;  %v4053_v19 = vpop.f32.mrb[74].mxu0 }
 0x44b   : > { %v4054_v55 = vpop.f32.mrb[75].mxu0 }
 0x44c   : > { %v3219_v11 = vadd.f32 %v3991_v13, %v5570_v4  ;;  %v4055_v20 = vadd.f32 %v4054_v55, %v4053_v19  ;;  %v5616_v21 = vadd.f32 %v4052_v15, %v3216_v40 }
 0x44e   : > { %v3992_v22 = vpop.f32.mrb[56].mxu1  ;;  %v5618_v58 = vadd.f32 %v4055_v20, %v3219_v11 }
 0x44f   : > { %v3993_v23 = vpop.f32.mrb[57].mxu1 }
 0x450   : > { %v3994_v25 = vadd.f32 %v3993_v23, %v3992_v22  ;;  %v3995_v26 = vpop.f32.mrb[58].mxu1  ;;  %v4056_v28 = vpop.f32.mrb[76].mxu0 }
 0x451   : > { %v3996_v29 = vpop.f32.mrb[59].mxu1  ;;  %v4057_v32 = vpop.f32.mrb[77].mxu0 }
 0x452   : > { %v3224_v61 = vadd.f32 %v3994_v25, %v5574_v14  ;;  %v3997_v1 = vadd.f32 %v3996_v29, %v3995_v26  ;;  %v4058_v33 = vadd.f32 %v4057_v32, %v4056_v28  ;;  %v4059_v35 = vpop.f32.mrb[78].mxu0 }
 0x453   : > { %v4060_v41 = vpop.f32.mrb[79].mxu0 }
 0x454   : > { %v3227_v4 = vadd.f32 %v3997_v1, %v5576_v16  ;;  %v4061_v36 = vadd.f32 %v4060_v41, %v4059_v35  ;;  %v5622_v39 = vadd.f32 %v4058_v33, %v3224_v61 }
 0x456   : > { %v3998_v43 = vpop.f32.mrb[60].mxu1  ;;  %v5624_v59 = vadd.f32 %v4061_v36, %v3227_v4 }
 0x457   : > { %v3999_v44 = vpop.f32.mrb[61].mxu1 }
 0x458   : > { %v4000_v12 = vadd.f32 %v3999_v44, %v3998_v43  ;;  %v4001_v46 = vpop.f32.mrb[62].mxu1  ;;  %v4062_v48 = vpop.f32.mrb[80].mxu0 }
 0x459   : > { %v4002_v50 = vpop.f32.mrb[63].mxu1  ;;  %v4063_v52 = vpop.f32.mrb[81].mxu0 }
 0x45a   : > { %v3232_v14 = vadd.f32 %v4000_v12, %v5580_v2  ;;  %v4003_v51 = vadd.f32 %v4002_v50, %v4001_v46  ;;  %v4064_v54 = vadd.f32 %v4063_v52, %v4062_v48  ;;  %v4065_v56 = vpop.f32.mrb[82].mxu0 }
 0x45b   : > { %v4066_v24 = vpop.f32.mrb[83].mxu0 }
 0x45c   : > { %v3235_v16 = vadd.f32 %v4003_v51, %v5582_v34  ;;  %v4067_v60 = vadd.f32 %v4066_v24, %v4065_v56  ;;  %v3329_v0 = vadd.f32 %v4064_v54, %v3232_v14 }
 0x45e   : > { %v4128_v3 = vpop.f32.mrb[64].mxu1  ;;  %v3332_v38 = vadd.f32 %v4067_v60, %v3235_v16 }
 0x45f   : > { %v3378_v5 = vadd.f32 %v4128_v3, %v5592_v45  ;;  %v3369_v18 = vpop.f32.mrb[65].mxu1 }
 0x460   : > { %v3370_v2 = vadd.f32 %v3369_v18, %v5586_v53  ;;  %v4129_v6 = vpop.f32.mrb[66].mxu1 }
 0x461   : > { %v3434_v8 = vmax.f32 %v3378_v5, 0.0  ;;  %v3381_v9 = vadd.f32 %v4129_v6, %v5594_v10  ;;  %v3372_v49 = vpop.f32.mrb[67].mxu1 }
 0x462   : > { %v3432_v37 = vmax.f32 %v3370_v2, 0.0  ;;  %v3373_v34 = vadd.f32 %v3372_v49, %v5588_v57 }
 0x463   : > { %3450 = vst [vmem:[%s4635_s26 + $0x10] sm:$0xff] %v3434_v8  ;;  %v3435_v31 = vmax.f32 %v3381_v9, 0.0 }
 0x464   : > { %3448 = vst [vmem:[%s4635_s26] sm:$0xff] %v3432_v37  ;;  %v3433_v63 = vmax.f32 %v3373_v34, 0.0 }
 0x465   : > { %3451 = vst [vmem:[%s4635_s26 + $0x18] sm:$0xff] %v3435_v31 }
 0x466   : > { %3449 = vst [vmem:[%s4635_s26 + $0x8] sm:$0xff] %v3433_v63  ;;  %v4132_v45 = vpop.f32.mrb[68].mxu1 }
 0x467   : > { %v3394_v53 = vadd.f32 %v4132_v45, %v5604_v47  ;;  %v3385_v40 = vpop.f32.mrb[69].mxu1 }
 0x468   : > { %v3386_v10 = vadd.f32 %v3385_v40, %v5598_v27  ;;  %v4133_v13 = vpop.f32.mrb[70].mxu1 }
 0x469   : > { %v3438_v17 = vmax.f32 %v3394_v53, 0.0  ;;  %v3397_v57 = vadd.f32 %v4133_v13, %v5606_v62  ;;  %v3388_v15 = vpop.f32.mrb[71].mxu1 }
 0x46a   : > { %v3436_v19 = vmax.f32 %v3386_v10, 0.0  ;;  %v3389_v11 = vadd.f32 %v3388_v15, %v5600_v30 }
 0x46b   : > { %3454 = vst [vmem:[%s4635_s26 + $0x30] sm:$0xff] %v3438_v17  ;;  %v3439_v55 = vmax.f32 %v3397_v57, 0.0 }
 0x46c   : > { %3452 = vst [vmem:[%s4635_s26 + $0x20] sm:$0xff] %v3436_v19  ;;  %v3437_v20 = vmax.f32 %v3389_v11, 0.0 }
 0x46d   : > { %3455 = vst [vmem:[%s4635_s26 + $0x38] sm:$0xff] %v3439_v55 }
 0x46e   : > { %3453 = vst [vmem:[%s4635_s26 + $0x28] sm:$0xff] %v3437_v20  ;;  %v4136_v47 = vpop.f32.mrb[72].mxu1 }
 0x46f   : > { %v3410_v27 = vadd.f32 %v4136_v47, %v5616_v21  ;;  %v3401_v22 = vpop.f32.mrb[73].mxu1 }
 0x470   : > { %v3402_v62 = vadd.f32 %v3401_v22, %v5610_v7  ;;  %v4137_v23 = vpop.f32.mrb[74].mxu1 }
 0x471   : > { %v3442_v30 = vmax.f32 %v3410_v27, 0.0  ;;  %v3413_v25 = vadd.f32 %v4137_v23, %v5618_v58  ;;  %v3404_v26 = vpop.f32.mrb[75].mxu1 }
 0x472   : > { %v3440_v28 = vmax.f32 %v3402_v62, 0.0  ;;  %v3405_v29 = vadd.f32 %v3404_v26, %v5612_v42 }
 0x473   : > { %3458 = vst [vmem:[%s4635_s26 + $0x50] sm:$0xff] %v3442_v30  ;;  %v3443_v61 = vmax.f32 %v3413_v25, 0.0 }
 0x474   : > { %3456 = vst [vmem:[%s4635_s26 + $0x40] sm:$0xff] %v3440_v28  ;;  %v3441_v1 = vmax.f32 %v3405_v29, 0.0 }
 0x475   : > { %3459 = vst [vmem:[%s4635_s26 + $0x58] sm:$0xff] %v3443_v61 }
 0x476   : > { %3457 = vst [vmem:[%s4635_s26 + $0x48] sm:$0xff] %v3441_v1  ;;  %v4140_v7 = vpop.f32.mrb[76].mxu1 }
 0x477   : > { %v3426_v21 = vadd.f32 %v4140_v7, %v3329_v0  ;;  %v3417_v32 = vpop.f32.mrb[77].mxu1 }
 0x478   : > { %v3418_v58 = vadd.f32 %v3417_v32, %v5622_v39  ;;  %v4141_v42 = vpop.f32.mrb[78].mxu1 }
 0x479   : > { %v3446_v33 = vmax.f32 %v3426_v21, 0.0  ;;  %v3429_v35 = vadd.f32 %v4141_v42, %v3332_v38  ;;  %v3420_v4 = vpop.f32.mrb[79].mxu1 }
 0x47a   : > { %v3444_v41 = vmax.f32 %v3418_v58, 0.0  ;;  %v3421_v36 = vadd.f32 %v3420_v4, %v5624_v59 }
 0x47b   : > { %3462 = vst [vmem:[%s4635_s26 + $0x70] sm:$0xff] %v3446_v33  ;;  %v3447_v43 = vmax.f32 %v3429_v35, 0.0 }
 0x47c   : > { %3460 = vst [vmem:[%s4635_s26 + $0x60] sm:$0xff] %v3444_v41  ;;  %v3445_v39 = vmax.f32 %v3421_v36, 0.0 }
 0x47d   : > { %3463 = vst [vmem:[%s4635_s26 + $0x78] sm:$0xff] %v3447_v43 }
 0x47e   : > { %3461 = vst [vmem:[%s4635_s26 + $0x68] sm:$0xff] %v3445_v39 }
 0x47f   : > { %4316 = shalt.err (!%p4313_p2)
}
 0x480   : > { %s4317_s26 = scalar_lea.hbm %s5661_s19, 2048  ;;  %s4321_s16 = scalar_lea.hbm %s5730_s7, 8192 }
 0x481   : > { %p4318_p4 = scmp.ne.s32.totalorder %s5661_s19, %s4317_s26  ;;  %p4322_p7 = scmp.lt.u32.totalorder %s5661_s19, %s5730_s7 }
 0x482   : > { %p4323_p9 = scmp.lt.u32.totalorder %s4321_s16, %s4317_s26  ;;  %p4325_p11 = scmp.lt.u32.totalorder %s4317_s26, %s5661_s19 }
 0x483   : > { %p4319_p5 = pnand %p4318_p4, %p4505_p3 }
 0x484   : > { %p4324_p10 = por %p4323_p9, %p4322_p7 }
 0x485   : > { %p4320_p6 = pneg %p4319_p5 }
 0x486   : > { %p4326_p12 = por %p4325_p11, %p4324_p10 }
 0x488   : > { %p4327_p13 = pnand %p4326_p12, %p4320_p6 }
 0x48a   : > { %4330 = shalt.err (!%p4327_p13)
}
 0x48b   : > { %s4413_s12 = smov 128  }
 0x48c   : > { %4143 = dma.vmem_to_hbm [thread:$0]  (%p4505_p3), %s5664_s28, 2048, %s5661_s19, %s5670_s9, %s4413_s12, %s4413_s12, %s4403_s29  }
 0x48d PF: > { %p4149_p0 = scmp.ge.s32.totalorder %s4397_s8, 2  ;;  %s3496_s27 = sand.u32 1, %s4369_s24  }
 0x48e   : > { %s3497_s30 = scalar_lea.sflag [#allocation7], %s3496_s27 }
 0x48f   : > { %p4146_p1 = pnand %p4149_p0, %p4514_p8 }
 0x491   : > { %4364 = dma.done.wait (!%p4146_p1), %s3497_s30, 2048  }
 0x492   : > { %4366 = vsyncadd (!%p4146_p1), %s3497_s30, 4294965248  ;;  %s20_s8 = sadd.s32 1, %s4397_s8   ;;  %s5750_s14 = sld [smem:[#allocation9_spill]] }
 0x493   : > { %p17_p2 = scmp.ge.s32.totalorder %s20_s8, 6   ;;  %s5751_s26 = sld [smem:[#allocation14_spill]] }
 0x494   : > { %s5752_s27 = sld [smem:[#allocation10_spill]]  ;;  %s5753_s28 = sld [smem:[#allocation11_spill]] }
 0x495   : > { %s5754_s29 = sld [smem:[#allocation12_spill]]  ;;  %s5755_s30 = sld [smem:[#allocation13_spill]] }
 0x496   : > { %s5756_s24 = smov %s4373_s25  ;;  %19 = sbr.rel (!%p17_p2) target bundleno = 7 (0x7), region = 120 }
 0x498   : > { %s5757_s25 = smov %s5750_s14 }
 0x49d   :  { %3502 = vsyncpa [#allocation7], 1 }
 0x49e   :  { %3504 = vsyncpa [#allocation7 + $0x1], 1 }

</bundles_post_ra>
